<compile_context>
chip_gen: v6e
topology: v6e:2x2x1
jax: 0.10.0
libtpu: 0.0.40
codegen_flags: <defaults>
</compile_context>

<pallas_src>
import jax
import jax.numpy as jnp
from jax.experimental import pallas as pl
from jax.experimental.pallas import tpu as pltpu


# ----------------------------------------------------------------------------
# Pallas kernel: fused encoder -> reparameterize -> decoder for one batch tile
# ----------------------------------------------------------------------------
def _mgvae_kernel(
    # scalar (SMEM)
    std_ref,            # (1,)  exp(0.5 * prior_log_variance)
    # per-tile inputs (VMEM)
    x_ref,              # (TB, Dp)  float32
    eps_ref,            # (TB, Lp)  float32
    # weights (bf16) / biases (f32), resident across grid steps
    ew1_ref, eb1_ref,   # (Dp, Hp), (1, Hp)
    ew2_ref, eb2_ref,   # (Hp, Hp), (1, Hp)
    wmu_ref, bmu_ref,   # (Hp, Lp), (1, Lp)
    dw1_ref, db1_ref,   # (Lp, Hp), (1, Hp)
    dw2_ref, db2_ref,   # (Hp, Hp), (1, Hp)
    dw3_ref, db3_ref,   # (Hp, Dp), (1, Dp)
    # outputs
    recons_ref,         # (TB, Dp)
    z_ref,              # (TB, Lp)
    mu_ref,             # (TB, Lp)
):
    bf16 = jnp.bfloat16

    # --- encoder: Linear -> ReLU -> Linear -> ReLU (bf16 MXU, f32 accumulate)
    x = x_ref[...].astype(bf16)
    h = jnp.dot(x, ew1_ref[...], preferred_element_type=jnp.float32) + eb1_ref[...]
    h = jnp.maximum(h, 0.0)
    h = jnp.dot(h.astype(bf16), ew2_ref[...],
                preferred_element_type=jnp.float32) + eb2_ref[...]
    h = jnp.maximum(h, 0.0)

    # --- fc_mu ---
    mu = jnp.dot(h.astype(bf16), wmu_ref[...],
                 preferred_element_type=jnp.float32) + bmu_ref[...]

    # --- reparameterize: std is a scalar (log_var is a constant prior) ---
    z = eps_ref[...] * std_ref[0] + mu

    # --- decoder: Linear -> ReLU -> Linear -> ReLU -> Linear -> Tanh ---
    d = jnp.dot(z.astype(bf16), dw1_ref[...],
                preferred_element_type=jnp.float32) + db1_ref[...]
    d = jnp.maximum(d, 0.0)
    d = jnp.dot(d.astype(bf16), dw2_ref[...],
                preferred_element_type=jnp.float32) + db2_ref[...]
    d = jnp.maximum(d, 0.0)
    d = jnp.dot(d.astype(bf16), dw3_ref[...],
                preferred_element_type=jnp.float32) + db3_ref[...]

    recons_ref[...] = jnp.tanh(d)
    z_ref[...] = z
    mu_ref[...] = mu


# ----------------------------------------------------------------------------
# Wrapper
# ----------------------------------------------------------------------------
def _round_up(n, m):
    return ((n + m - 1) // m) * m


def _pad2(a, rows, cols):
    return jnp.pad(a, ((0, rows - a.shape[0]), (0, cols - a.shape[1])))


def mgvae_forward(x, eps, params, block_rows=512):
    """MGVAE_Tabular forward. Returns [recons, input, z, mu, log_var]."""
    B, D_in = x.shape
    L = params["wmu"].shape[1]
    H = params["ew1"].shape[1]

    # ---- pad feature dims to lane multiples, batch to the tile size ----
    Dp = _round_up(D_in, 128)
    Hp = _round_up(H, 128)
    Lp = _round_up(L, 128)
    tb = min(block_rows, _round_up(B, 8))
    Bp = _round_up(B, tb)
    grid = (Bp // tb,)

    xp = _pad2(x.astype(jnp.float32), Bp, Dp)
    epsp = _pad2(eps.astype(jnp.float32), Bp, Lp)

    bf16 = jnp.bfloat16
    ew1 = _pad2(params["ew1"], Dp, Hp).astype(bf16)
    eb1 = _pad2(params["eb1"], 1, Hp)
    ew2 = _pad2(params["ew2"], Hp, Hp).astype(bf16)
    eb2 = _pad2(params["eb2"], 1, Hp)
    wmu = _pad2(params["wmu"], Hp, Lp).astype(bf16)
    bmu = _pad2(params["bmu"], 1, Lp)
    dw1 = _pad2(params["dw1"], Lp, Hp).astype(bf16)
    db1 = _pad2(params["db1"], 1, Hp)
    dw2 = _pad2(params["dw2"], Hp, Hp).astype(bf16)
    db2 = _pad2(params["db2"], 1, Hp)
    dw3 = _pad2(params["dw3"], Hp, Dp).astype(bf16)
    db3 = _pad2(params["db3"], 1, Dp)

    # scalar std = exp(0.5 * prior_log_variance)  (log_var is a constant prior)
    std = jnp.exp(0.5 * params["plv"].astype(jnp.float32)).reshape((1,))

    def tile_spec(cols):
        return pl.BlockSpec((tb, cols), lambda i: (i, 0))

    def resident_spec(shape):
        return pl.BlockSpec(shape, lambda i: (0, 0))

    in_specs = [
        pl.BlockSpec(memory_space=pltpu.MemorySpace.SMEM),  # std
        tile_spec(Dp),                                      # x
        tile_spec(Lp),                                      # eps
        resident_spec((Dp, Hp)), resident_spec((1, Hp)),    # ew1, eb1
        resident_spec((Hp, Hp)), resident_spec((1, Hp)),    # ew2, eb2
        resident_spec((Hp, Lp)), resident_spec((1, Lp)),    # wmu, bmu
        resident_spec((Lp, Hp)), resident_spec((1, Hp)),    # dw1, db1
        resident_spec((Hp, Hp)), resident_spec((1, Hp)),    # dw2, db2
        resident_spec((Hp, Dp)), resident_spec((1, Dp)),    # dw3, db3
    ]
    out_specs = (tile_spec(Dp), tile_spec(Lp), tile_spec(Lp))
    out_shape = (
        jax.ShapeDtypeStruct((Bp, Dp), jnp.float32),  # recons (padded)
        jax.ShapeDtypeStruct((Bp, Lp), jnp.float32),  # z      (padded)
        jax.ShapeDtypeStruct((Bp, Lp), jnp.float32),  # mu     (padded)
    )

    # advisory cost estimate for XLA's scheduler
    mac = Dp * Hp + Hp * Hp + Hp * Lp + Lp * Hp + Hp * Hp + Hp * Dp
    cost = pl.CostEstimate(
        flops=2 * Bp * mac,
        transcendentals=Bp * Dp,
        bytes_accessed=(
            Bp * Dp * 4 + Bp * Lp * 4            # x, eps
            + 2 * mac                             # bf16 weights
            + 4 * (3 * Hp + Lp + 2 * Hp + Dp)     # f32 biases
            + Bp * Dp * 4 + 2 * Bp * Lp * 4       # outputs
        ),
    )

    recons_p, z_p, mu_p = pl.pallas_call(
        _mgvae_kernel,
        grid=grid,
        in_specs=in_specs,
        out_specs=out_specs,
        out_shape=out_shape,
        compiler_params=pltpu.CompilerParams(
            dimension_semantics=("parallel",)),
        cost_estimate=cost,
    )(
        std, xp, epsp,
        ew1, eb1, ew2, eb2, wmu, bmu,
        dw1, db1, dw2, db2, dw3, db3,
    )

    recons = recons_p[:B, :D_in]
    z = z_p[:B, :L]
    mu = mu_p[:B, :L]
    # log_var = prior_log_variance * ones((B, L))  (constant tile, made here)
    log_var = params["plv"][0] * jnp.ones((B, L), jnp.float32)
    return [recons, x, z, mu, log_var]


# ----------------------------------------------------------------------------
# Deterministic parameter init.  PyTorch nn.Linear weights (out, in) are kept
# pre-transposed to (in, out); biases are (1, out) for clean broadcasting.
# ----------------------------------------------------------------------------
def init_params(key, input_dim, latent_dim, hidden_size):
    ks = jax.random.split(key, 13)

    def lin(k, fan_in, fan_out):
        return jax.random.normal(k, (fan_in, fan_out), jnp.float32) * (
            1.0 / jnp.sqrt(fan_in))

    def bias(k, fan_out):
        return jax.random.normal(k, (1, fan_out), jnp.float32) * 0.01

    return {
        "plv": jax.random.normal(ks[0], (1,), jnp.float32),  # prior_log_variance
        "ew1": lin(ks[1], input_dim, hidden_size), "eb1": bias(ks[2], hidden_size),
        "ew2": lin(ks[3], hidden_size, hidden_size), "eb2": bias(ks[4], hidden_size),
        "wmu": lin(ks[5], hidden_size, latent_dim), "bmu": bias(ks[6], latent_dim),
        "dw1": lin(ks[7], latent_dim, hidden_size), "db1": bias(ks[8], hidden_size),
        "dw2": lin(ks[9], hidden_size, hidden_size), "db2": bias(ks[10], hidden_size),
        "dw3": lin(ks[11], hidden_size, input_dim), "db3": bias(ks[12], input_dim),
    }


# Pure-JAX reference mirroring the kernel's numerics (bf16 MXU operands,
# f32 accumulate / elementwise) — semantics identical to the PyTorch forward
# given the same eps, up to the bf16 matmul precision.
def _reference_forward(x, eps, p):
    bf16 = jnp.bfloat16

    def mm(a, w):
        return jnp.dot(a.astype(bf16), w.astype(bf16),
                       preferred_element_type=jnp.float32)

    h = jnp.maximum(mm(x, p["ew1"]) + p["eb1"], 0.0)
    h = jnp.maximum(mm(h, p["ew2"]) + p["eb2"], 0.0)
    mu = mm(h, p["wmu"]) + p["bmu"]
    log_var = p["plv"][0] * jnp.ones_like(mu)
    z = eps * jnp.exp(0.5 * log_var) + mu
    d = jnp.maximum(mm(z, p["dw1"]) + p["db1"], 0.0)
    d = jnp.maximum(mm(d, p["dw2"]) + p["db2"], 0.0)
    recon = jnp.tanh(mm(d, p["dw3"]) + p["db3"])
    return recon, z, mu, log_var


if __name__ == "__main__":
    # Real module dims (166 / 40 / 300) with a small batch; padded internally.
    B, INPUT_DIM, LATENT_DIM, HIDDEN = 256, 166, 40, 300

    key = jax.random.PRNGKey(0)
    k_x, k_eps, k_p = jax.random.split(key, 3)

    x = jax.random.normal(k_x, (B, INPUT_DIM), jnp.float32)
    eps = jax.random.normal(k_eps, (B, LATENT_DIM), jnp.float32)
    params = init_params(k_p, INPUT_DIM, LATENT_DIM, HIDDEN)

    outs = mgvae_forward(x, eps, params, block_rows=128)   # grid = (2,)
    outs = jax.block_until_ready(outs)
    recons, x_out, z, mu, log_var = outs

    # correctness check against the pure-JAX reference
    r_ref, z_ref, mu_ref, lv_ref = _reference_forward(x, eps, params)
    assert recons.shape == (B, INPUT_DIM) and z.shape == (B, LATENT_DIM)
    assert mu.shape == (B, LATENT_DIM) and log_var.shape == (B, LATENT_DIM)
    assert jnp.allclose(recons, r_ref, atol=2e-2, rtol=2e-2), "recons mismatch"
    assert jnp.allclose(z, z_ref, atol=2e-2, rtol=2e-2), "z mismatch"
    assert jnp.allclose(mu, mu_ref, atol=2e-2, rtol=2e-2), "mu mismatch"
    assert jnp.allclose(log_var, lv_ref, atol=1e-6), "log_var mismatch"

    print("KERNEL_OK")
</pallas_src>

<mosaic_0001>
module attributes {stable_mosaic.version = 11 : i64} {
  func.func @_mgvae_kernel(%arg0: i32, %arg1: memref<1xf32, #tpu.memory_space<smem>>, %arg2: memref<128x256xf32, #tpu.memory_space<vmem>>, %arg3: memref<128x128xf32, #tpu.memory_space<vmem>>, %arg4: memref<256x384xbf16, #tpu.memory_space<vmem>>, %arg5: memref<1x384xf32, #tpu.memory_space<vmem>>, %arg6: memref<384x384xbf16, #tpu.memory_space<vmem>>, %arg7: memref<1x384xf32, #tpu.memory_space<vmem>>, %arg8: memref<384x128xbf16, #tpu.memory_space<vmem>>, %arg9: memref<1x128xf32, #tpu.memory_space<vmem>>, %arg10: memref<128x384xbf16, #tpu.memory_space<vmem>>, %arg11: memref<1x384xf32, #tpu.memory_space<vmem>>, %arg12: memref<384x384xbf16, #tpu.memory_space<vmem>>, %arg13: memref<1x384xf32, #tpu.memory_space<vmem>>, %arg14: memref<384x256xbf16, #tpu.memory_space<vmem>>, %arg15: memref<1x256xf32, #tpu.memory_space<vmem>>, %arg16: memref<128x256xf32, #tpu.memory_space<vmem>>, %arg17: memref<128x128xf32, #tpu.memory_space<vmem>>, %arg18: memref<128x128xf32, #tpu.memory_space<vmem>>) attributes {dimension_semantics = [#tpu.dimension_semantics<parallel>], iteration_bounds = array<i64: 2>, scalar_prefetch = 0 : i64, scratch_operands = 0 : i64, tpu.core_type = #tpu.core_type<tc>, window_params = [{transform_indices = @transform_0, window_bounds = array<i64: 1>}, {transform_indices = @transform_1, window_bounds = array<i64: 128, 256>}, {transform_indices = @transform_2, window_bounds = array<i64: 128, 128>}, {pipeline_mode = #tpu.pipeline_mode<synchronous>, transform_indices = @transform_3, window_bounds = array<i64: 256, 384>}, {pipeline_mode = #tpu.pipeline_mode<synchronous>, transform_indices = @transform_4, window_bounds = array<i64: 1, 384>}, {pipeline_mode = #tpu.pipeline_mode<synchronous>, transform_indices = @transform_5, window_bounds = array<i64: 384, 384>}, {pipeline_mode = #tpu.pipeline_mode<synchronous>, transform_indices = @transform_6, window_bounds = array<i64: 1, 384>}, {pipeline_mode = #tpu.pipeline_mode<synchronous>, transform_indices = @transform_7, window_bounds = array<i64: 384, 128>}, {pipeline_mode = #tpu.pipeline_mode<synchronous>, transform_indices = @transform_8, window_bounds = array<i64: 1, 128>}, {pipeline_mode = #tpu.pipeline_mode<synchronous>, transform_indices = @transform_9, window_bounds = array<i64: 128, 384>}, {pipeline_mode = #tpu.pipeline_mode<synchronous>, transform_indices = @transform_10, window_bounds = array<i64: 1, 384>}, {pipeline_mode = #tpu.pipeline_mode<synchronous>, transform_indices = @transform_11, window_bounds = array<i64: 384, 384>}, {pipeline_mode = #tpu.pipeline_mode<synchronous>, transform_indices = @transform_12, window_bounds = array<i64: 1, 384>}, {pipeline_mode = #tpu.pipeline_mode<synchronous>, transform_indices = @transform_13, window_bounds = array<i64: 384, 256>}, {pipeline_mode = #tpu.pipeline_mode<synchronous>, transform_indices = @transform_14, window_bounds = array<i64: 1, 256>}, {transform_indices = @transform_15, window_bounds = array<i64: 128, 256>}, {transform_indices = @transform_16, window_bounds = array<i64: 128, 128>}, {transform_indices = @transform_17, window_bounds = array<i64: 128, 128>}]} {
    %c0 = arith.constant 0 : index
    %c0_0 = arith.constant 0 : index
    %0 = vector.load %arg2[%c0, %c0_0] : memref<128x256xf32, #tpu.memory_space<vmem>>, vector<128x256xf32>
    %1 = arith.truncf %0 : vector<128x256xf32> to vector<128x256xbf16>
    %c0_1 = arith.constant 0 : index
    %c0_2 = arith.constant 0 : index
    %2 = vector.load %arg4[%c0_1, %c0_2] : memref<256x384xbf16, #tpu.memory_space<vmem>>, vector<256x384xbf16>
    %cst = arith.constant dense<0.000000e+00> : vector<128x384xf32>
    %3 = tpu.matmul %1, %2, %cst {dimension_numbers = #tpu.dot_dimension_numbers<[1], [0], [0], [1], [0, 0, 1, 1], [], []>} : vector<128x256xbf16>, vector<256x384xbf16>, vector<128x384xf32> -> vector<128x384xf32>
    %c0_3 = arith.constant 0 : index
    %c0_4 = arith.constant 0 : index
    %4 = vector.load %arg5[%c0_3, %c0_4] : memref<1x384xf32, #tpu.memory_space<vmem>>, vector<1x384xf32>
    %5 = vector.broadcast %4 : vector<1x384xf32> to vector<128x384xf32>
    %6 = arith.addf %3, %5 : vector<128x384xf32>
    %cst_5 = arith.constant 0.000000e+00 : f32
    %7 = vector.broadcast %cst_5 : f32 to vector<128x384xf32>
    %8 = arith.maximumf %6, %7 : vector<128x384xf32>
    %9 = arith.truncf %8 : vector<128x384xf32> to vector<128x384xbf16>
    %c0_6 = arith.constant 0 : index
    %c0_7 = arith.constant 0 : index
    %10 = vector.load %arg6[%c0_6, %c0_7] : memref<384x384xbf16, #tpu.memory_space<vmem>>, vector<384x384xbf16>
    %cst_8 = arith.constant dense<0.000000e+00> : vector<128x384xf32>
    %11 = tpu.matmul %9, %10, %cst_8 {dimension_numbers = #tpu.dot_dimension_numbers<[1], [0], [0], [1], [0, 0, 1, 1], [], []>} : vector<128x384xbf16>, vector<384x384xbf16>, vector<128x384xf32> -> vector<128x384xf32>
    %c0_9 = arith.constant 0 : index
    %c0_10 = arith.constant 0 : index
    %12 = vector.load %arg7[%c0_9, %c0_10] : memref<1x384xf32, #tpu.memory_space<vmem>>, vector<1x384xf32>
    %13 = vector.broadcast %12 : vector<1x384xf32> to vector<128x384xf32>
    %14 = arith.addf %11, %13 : vector<128x384xf32>
    %cst_11 = arith.constant 0.000000e+00 : f32
    %15 = vector.broadcast %cst_11 : f32 to vector<128x384xf32>
    %16 = arith.maximumf %14, %15 : vector<128x384xf32>
    %17 = arith.truncf %16 : vector<128x384xf32> to vector<128x384xbf16>
    %c0_12 = arith.constant 0 : index
    %c0_13 = arith.constant 0 : index
    %18 = vector.load %arg8[%c0_12, %c0_13] : memref<384x128xbf16, #tpu.memory_space<vmem>>, vector<384x128xbf16>
    %cst_14 = arith.constant dense<0.000000e+00> : vector<128x128xf32>
    %19 = tpu.matmul %17, %18, %cst_14 {dimension_numbers = #tpu.dot_dimension_numbers<[1], [0], [0], [1], [0, 0, 1, 1], [], []>} : vector<128x384xbf16>, vector<384x128xbf16>, vector<128x128xf32> -> vector<128x128xf32>
    %c0_15 = arith.constant 0 : index
    %c0_16 = arith.constant 0 : index
    %20 = vector.load %arg9[%c0_15, %c0_16] : memref<1x128xf32, #tpu.memory_space<vmem>>, vector<1x128xf32>
    %21 = vector.broadcast %20 : vector<1x128xf32> to vector<128x128xf32>
    %22 = arith.addf %19, %21 : vector<128x128xf32>
    %c0_17 = arith.constant 0 : index
    %c0_18 = arith.constant 0 : index
    %23 = vector.load %arg3[%c0_17, %c0_18] : memref<128x128xf32, #tpu.memory_space<vmem>>, vector<128x128xf32>
    %c0_19 = arith.constant 0 : index
    %24 = memref.load %arg1[%c0_19] : memref<1xf32, #tpu.memory_space<smem>>
    %25 = vector.broadcast %24 : f32 to vector<128x128xf32>
    %26 = arith.mulf %23, %25 : vector<128x128xf32>
    %27 = arith.addf %26, %22 : vector<128x128xf32>
    %28 = arith.truncf %27 : vector<128x128xf32> to vector<128x128xbf16>
    %c0_20 = arith.constant 0 : index
    %c0_21 = arith.constant 0 : index
    %29 = vector.load %arg10[%c0_20, %c0_21] : memref<128x384xbf16, #tpu.memory_space<vmem>>, vector<128x384xbf16>
    %cst_22 = arith.constant dense<0.000000e+00> : vector<128x384xf32>
    %30 = tpu.matmul %28, %29, %cst_22 {dimension_numbers = #tpu.dot_dimension_numbers<[1], [0], [0], [1], [0, 0, 1, 1], [], []>} : vector<128x128xbf16>, vector<128x384xbf16>, vector<128x384xf32> -> vector<128x384xf32>
    %c0_23 = arith.constant 0 : index
    %c0_24 = arith.constant 0 : index
    %31 = vector.load %arg11[%c0_23, %c0_24] : memref<1x384xf32, #tpu.memory_space<vmem>>, vector<1x384xf32>
    %32 = vector.broadcast %31 : vector<1x384xf32> to vector<128x384xf32>
    %33 = arith.addf %30, %32 : vector<128x384xf32>
    %cst_25 = arith.constant 0.000000e+00 : f32
    %34 = vector.broadcast %cst_25 : f32 to vector<128x384xf32>
    %35 = arith.maximumf %33, %34 : vector<128x384xf32>
    %36 = arith.truncf %35 : vector<128x384xf32> to vector<128x384xbf16>
    %c0_26 = arith.constant 0 : index
    %c0_27 = arith.constant 0 : index
    %37 = vector.load %arg12[%c0_26, %c0_27] : memref<384x384xbf16, #tpu.memory_space<vmem>>, vector<384x384xbf16>
    %cst_28 = arith.constant dense<0.000000e+00> : vector<128x384xf32>
    %38 = tpu.matmul %36, %37, %cst_28 {dimension_numbers = #tpu.dot_dimension_numbers<[1], [0], [0], [1], [0, 0, 1, 1], [], []>} : vector<128x384xbf16>, vector<384x384xbf16>, vector<128x384xf32> -> vector<128x384xf32>
    %c0_29 = arith.constant 0 : index
    %c0_30 = arith.constant 0 : index
    %39 = vector.load %arg13[%c0_29, %c0_30] : memref<1x384xf32, #tpu.memory_space<vmem>>, vector<1x384xf32>
    %40 = vector.broadcast %39 : vector<1x384xf32> to vector<128x384xf32>
    %41 = arith.addf %38, %40 : vector<128x384xf32>
    %cst_31 = arith.constant 0.000000e+00 : f32
    %42 = vector.broadcast %cst_31 : f32 to vector<128x384xf32>
    %43 = arith.maximumf %41, %42 : vector<128x384xf32>
    %44 = arith.truncf %43 : vector<128x384xf32> to vector<128x384xbf16>
    %c0_32 = arith.constant 0 : index
    %c0_33 = arith.constant 0 : index
    %45 = vector.load %arg14[%c0_32, %c0_33] : memref<384x256xbf16, #tpu.memory_space<vmem>>, vector<384x256xbf16>
    %cst_34 = arith.constant dense<0.000000e+00> : vector<128x256xf32>
    %46 = tpu.matmul %44, %45, %cst_34 {dimension_numbers = #tpu.dot_dimension_numbers<[1], [0], [0], [1], [0, 0, 1, 1], [], []>} : vector<128x384xbf16>, vector<384x256xbf16>, vector<128x256xf32> -> vector<128x256xf32>
    %c0_35 = arith.constant 0 : index
    %c0_36 = arith.constant 0 : index
    %47 = vector.load %arg15[%c0_35, %c0_36] : memref<1x256xf32, #tpu.memory_space<vmem>>, vector<1x256xf32>
    %48 = vector.broadcast %47 : vector<1x256xf32> to vector<128x256xf32>
    %49 = arith.addf %46, %48 : vector<128x256xf32>
    %50 = math.tanh %49 : vector<128x256xf32>
    %c0_37 = arith.constant 0 : index
    %c0_38 = arith.constant 0 : index
    %51 = vector.load %arg16[%c0_37, %c0_38] : memref<128x256xf32, #tpu.memory_space<vmem>>, vector<128x256xf32>
    tpu.vector_store %arg16[%c0_37, %c0_38], %50 {strides = array<i32>} : memref<128x256xf32, #tpu.memory_space<vmem>>, vector<128x256xf32>,
    %c0_39 = arith.constant 0 : index
    %c0_40 = arith.constant 0 : index
    %52 = vector.load %arg17[%c0_39, %c0_40] : memref<128x128xf32, #tpu.memory_space<vmem>>, vector<128x128xf32>
    tpu.vector_store %arg17[%c0_39, %c0_40], %27 {strides = array<i32>} : memref<128x128xf32, #tpu.memory_space<vmem>>, vector<128x128xf32>,
    %c0_41 = arith.constant 0 : index
    %c0_42 = arith.constant 0 : index
    %53 = vector.load %arg18[%c0_41, %c0_42] : memref<128x128xf32, #tpu.memory_space<vmem>>, vector<128x128xf32>
    tpu.vector_store %arg18[%c0_41, %c0_42], %22 {strides = array<i32>} : memref<128x128xf32, #tpu.memory_space<vmem>>, vector<128x128xf32>,
    return
  }
  func.func @transform_0(%arg0: i32) -> i32 {
    %c0_i32 = arith.constant 0 : i32
    %c0_i32_0 = arith.constant 0 : i32
    return %c0_i32 : i32
  }
  func.func @transform_1(%arg0: i32) -> (i32, i32) {
    %c0_i32 = arith.constant 0 : i32
    %c0_i32_0 = arith.constant 0 : i32
    return %arg0, %c0_i32 : i32, i32
  }
  func.func @transform_2(%arg0: i32) -> (i32, i32) {
    %c0_i32 = arith.constant 0 : i32
    %c0_i32_0 = arith.constant 0 : i32
    return %arg0, %c0_i32 : i32, i32
  }
  func.func @transform_3(%arg0: i32) -> (i32, i32) {
    %c0_i32 = arith.constant 0 : i32
    %c0_i32_0 = arith.constant 0 : i32
    %c0_i32_1 = arith.constant 0 : i32
    return %c0_i32, %c0_i32_0 : i32, i32
  }
  func.func @transform_4(%arg0: i32) -> (i32, i32) {
    %c0_i32 = arith.constant 0 : i32
    %c0_i32_0 = arith.constant 0 : i32
    %c0_i32_1 = arith.constant 0 : i32
    return %c0_i32, %c0_i32_0 : i32, i32
  }
  func.func @transform_5(%arg0: i32) -> (i32, i32) {
    %c0_i32 = arith.constant 0 : i32
    %c0_i32_0 = arith.constant 0 : i32
    %c0_i32_1 = arith.constant 0 : i32
    return %c0_i32, %c0_i32_0 : i32, i32
  }
  func.func @transform_6(%arg0: i32) -> (i32, i32) {
    %c0_i32 = arith.constant 0 : i32
    %c0_i32_0 = arith.constant 0 : i32
    %c0_i32_1 = arith.constant 0 : i32
    return %c0_i32, %c0_i32_0 : i32, i32
  }
  func.func @transform_7(%arg0: i32) -> (i32, i32) {
    %c0_i32 = arith.constant 0 : i32
    %c0_i32_0 = arith.constant 0 : i32
    %c0_i32_1 = arith.constant 0 : i32
    return %c0_i32, %c0_i32_0 : i32, i32
  }
  func.func @transform_8(%arg0: i32) -> (i32, i32) {
    %c0_i32 = arith.constant 0 : i32
    %c0_i32_0 = arith.constant 0 : i32
    %c0_i32_1 = arith.constant 0 : i32
    return %c0_i32, %c0_i32_0 : i32, i32
  }
  func.func @transform_9(%arg0: i32) -> (i32, i32) {
    %c0_i32 = arith.constant 0 : i32
    %c0_i32_0 = arith.constant 0 : i32
    %c0_i32_1 = arith.constant 0 : i32
    return %c0_i32, %c0_i32_0 : i32, i32
  }
  func.func @transform_10(%arg0: i32) -> (i32, i32) {
    %c0_i32 = arith.constant 0 : i32
    %c0_i32_0 = arith.constant 0 : i32
    %c0_i32_1 = arith.constant 0 : i32
    return %c0_i32, %c0_i32_0 : i32, i32
  }
  func.func @transform_11(%arg0: i32) -> (i32, i32) {
    %c0_i32 = arith.constant 0 : i32
    %c0_i32_0 = arith.constant 0 : i32
    %c0_i32_1 = arith.constant 0 : i32
    return %c0_i32, %c0_i32_0 : i32, i32
  }
  func.func @transform_12(%arg0: i32) -> (i32, i32) {
    %c0_i32 = arith.constant 0 : i32
    %c0_i32_0 = arith.constant 0 : i32
    %c0_i32_1 = arith.constant 0 : i32
    return %c0_i32, %c0_i32_0 : i32, i32
  }
  func.func @transform_13(%arg0: i32) -> (i32, i32) {
    %c0_i32 = arith.constant 0 : i32
    %c0_i32_0 = arith.constant 0 : i32
    %c0_i32_1 = arith.constant 0 : i32
    return %c0_i32, %c0_i32_0 : i32, i32
  }
  func.func @transform_14(%arg0: i32) -> (i32, i32) {
    %c0_i32 = arith.constant 0 : i32
    %c0_i32_0 = arith.constant 0 : i32
    %c0_i32_1 = arith.constant 0 : i32
    return %c0_i32, %c0_i32_0 : i32, i32
  }
  func.func @transform_15(%arg0: i32) -> (i32, i32) {
    %c0_i32 = arith.constant 0 : i32
    %c0_i32_0 = arith.constant 0 : i32
    return %arg0, %c0_i32 : i32, i32
  }
  func.func @transform_16(%arg0: i32) -> (i32, i32) {
    %c0_i32 = arith.constant 0 : i32
    %c0_i32_0 = arith.constant 0 : i32
    return %arg0, %c0_i32 : i32, i32
  }
  func.func @transform_17(%arg0: i32) -> (i32, i32) {
    %c0_i32 = arith.constant 0 : i32
    %c0_i32_0 = arith.constant 0 : i32
    return %arg0, %c0_i32 : i32, i32
  }
}

</mosaic_0001>

<bundles_post_ra>
// kernel: tpu_custom_call.1
= control target key start
LH: loop header
LB: loop body
LE: loop exit
PB: predicated region body
PF: predicated region fallthrough
CT: control target
= control target key end

     0   :  { %s8317_s0 = inlined_call_operand.<no memory space> [shape: f32[1], index: 0, kind: input, shape index: {}]   ;;  %s8318_s1 = inlined_call_operand.hbm [shape: f32[256,256], index: 1, kind: input, shape index: {}]   ;;  %s8319_s2 = inlined_call_operand.hbm [shape: f32[256,128], index: 2, kind: input, shape index: {}]   ;;  %s8320_s3 = inlined_call_operand.hbm [shape: bf16[256,384], index: 3, kind: input, shape index: {}]   ;;  %s8321_s4 = inlined_call_operand.vmem [shape: f32[1,384], index: 4, kind: input, shape index: {}]   ;;  %s8322_s5 = inlined_call_operand.hbm [shape: bf16[384,384], index: 5, kind: input, shape index: {}]   ;;  %s8323_s6 = inlined_call_operand.vmem [shape: f32[1,384], index: 6, kind: input, shape index: {}]   ;;  %s8324_s7 = inlined_call_operand.hbm [shape: bf16[384,128], index: 7, kind: input, shape index: {}]   ;;  %s8325_s8 = inlined_call_operand.hbm [shape: f32[1,128], index: 8, kind: input, shape index: {}]   ;;  %s8326_s9 = inlined_call_operand.hbm [shape: bf16[128,384], index: 9, kind: input, shape index: {}]   ;;  %s8327_s10 = inlined_call_operand.vmem [shape: f32[1,384], index: 10, kind: input, shape index: {}]   ;;  %s8328_s11 = inlined_call_operand.hbm [shape: bf16[384,384], index: 11, kind: input, shape index: {}]   ;;  %s8329_s12 = inlined_call_operand.vmem [shape: f32[1,384], index: 12, kind: input, shape index: {}]   ;;  %s8330_s13 = inlined_call_operand.hbm [shape: bf16[384,256], index: 13, kind: input, shape index: {}]   ;;  %s8331_s14 = inlined_call_operand.vmem [shape: f32[1,256], index: 14, kind: input, shape index: {}]   ;;  %s8332_s15 = inlined_call_operand.hbm [shape: f32[256,256], index: 15, kind: output, shape index: {0}]   ;;  %s8333_s16 = inlined_call_operand.hbm [shape: f32[256,128], index: 16, kind: output, shape index: {1}]   ;;  %s8334_s17 = inlined_call_operand.hbm [shape: f32[256,128], index: 17, kind: output, shape index: {2}]  }
   0x1   :  { %8352 = sst [smem:[#allocation34_spill]] %s8317_s0 }
   0x2   :  { %8353 = sst [smem:[#allocation35_spill]] %s8318_s1 }
   0x3   :  { %8354 = sst [smem:[#allocation36_spill]] %s8320_s3 }
   0x4   :  { %8355 = sst [smem:[#allocation37_spill]] %s8322_s5 }
   0x5   :  { %8356 = sst [smem:[#allocation38_spill]] %s8324_s7 }
   0x6   :  { %8357 = sst [smem:[#allocation39_spill]] %s8325_s8 }
   0x7   :  { %8358 = sst [smem:[#allocation40_spill]] %s8326_s9 }
   0x8   :  { %8359 = sst [smem:[#allocation41_spill]] %s8328_s11 }
   0x9   :  { %8360 = sst [smem:[#allocation42_spill]] %s8330_s13 }
   0xa   :  { %8361 = sst [smem:[#allocation43_spill]] %s8331_s14 }
   0xb   :  { %8362 = sst [smem:[#allocation44_spill]] %s8332_s15 }
   0xc   :  { %s8363_s26 = sld [smem:[#allocation34_spill]] }
  0x12   :  { %23 = sst [smem:[#allocation2]] %s8363_s26 }
  0x13   :  { %24 = vsyncpa [#allocation4], 0 }
  0x14   :  { %26 = vsyncpa [#allocation4 + $0x1], 0 }
  0x15   :  { %27 = vsyncpa [#allocation7], 0 }
  0x16   :  { %29 = vsyncpa [#allocation7 + $0x1], 0 }
  0x17   :  { %30 = vsyncpa [#allocation10], 0 }
  0x18   :  { %31 = vsyncpa [#allocation13], 0 }
  0x19   :  { %32 = vsyncpa [#allocation16], 0 }
  0x1a   :  { %33 = vsyncpa [#allocation5], 0 }
  0x1b   :  { %35 = vsyncpa [#allocation5 + $0x1], 0 }
  0x1c   :  { %36 = vsyncpa [#allocation20], 0 }
  0x1d   :  { %38 = vsyncpa [#allocation20 + $0x1], 0  ;;  %s7066_s27 = smov 0   ;;  %s7068_s28 = smov 0  }
  0x1e   :  { %s7070_s29 = smov 0   ;;  %s7072_s0 = smov 0  }
  0x1f LB: > { %8364 = sst [smem:[#allocation30_spill]] %s6942_s29  ;;  %s6948_s30 = smov [#allocation8]   ;;  %s6946_s0 = sphi %s7072_s0, %s8404_s0   ;;  %s6942_s29 = sphi %s7070_s29, %s8406_s29   ;;  %s6938_s28 = sphi %s7068_s28, %s8408_s28   ;;  %s6934_s27 = sphi %s7066_s27, %s8407_s27  }
  0x20   : > { %s467_s18 = sshll.u32 %s6948_s30, 4  ;;  %s7087_s19 = sadd.s32 4294967295, %s6946_s0   ;;  %s468_s18 = int_to_ptr.vmem [resolvable:$true] %s467_s18 }
  0x21   : > { %p5190_p0 = scmp.ge.s32.totalorder %s6946_s0, 1  ;;  %p8344_p1 = scmp.eq.s32.totalorder %s7087_s19, 0 }
  0x22   : > { %p452_p2 = scmp.lt.s32.totalorder %s6946_s0, 3  ;;  %s6949_s20 = smov [#allocation9]  }
  0x23   : > { %s483_s21 = sshll.u32 %s6949_s20, 4  ;;  %s6950_s23 = smov [#allocation12]   ;;  %s7105_s21 = int_to_ptr.vmem [resolvable:$true] %s483_s21 }
  0x24   : > { %p7092_p3 = pnand %p5190_p0, %p452_p2  ;;  %s513_s24 = sshll.u32 %s6950_s23, 4  ;;  %s7107_s24 = int_to_ptr.vmem [resolvable:$true] %s513_s24 }
  0x25   : > { %s6579_s26 = scalar_lea.vmem %s468_s18, 6144  ;;  %p6587_p11 = scmp.lt.s32.totalorder %s468_s18, %s468_s18 }
  0x26   : > { %p6013_p5 = pneg %p7092_p3  ;;  %p6580_p8 = scmp.ne.s32.totalorder %s468_s18, %s6579_s26 }
  0x27   : > { %p6588_p12 = scmp.lt.s32.totalorder %s6579_s26, %s6579_s26 }
  0x28   : > { %p7101_p6 = pnand %p6013_p5, %p8344_p1 }
  0x29   : > { %p6589_p13 = por %p6588_p12, %p6587_p11 }
  0x2a   : > { %p7111_p7 = pneg %p7101_p6 }
  0x2c   : > { %p6582_p9 = pnand %p6580_p8, %p7111_p7 }
  0x2e   : > { %p6583_p10 = pneg %p6582_p9 }
  0x30   : > { %p6590_p0 = pnand %p6589_p13, %p6583_p10 }
  0x32   : > { %6593 = shalt.err (!%p6590_p0)
}
  0x33   : > { %s8337_s30 = smov 192   ;;  %s8339_s20 = smov 12  }
  0x34   : > { %s8368_s3 = sld [smem:[#allocation36_spill]]  ;;  %s6605_s14 = scalar_lea.vmem %s7105_s21, 9216 }
  0x35   : > { %p6606_p2 = scmp.ne.s32.totalorder %s7105_s21, %s6605_s14  ;;  %p6613_p9 = scmp.lt.s32.totalorder %s7105_s21, %s7105_s21 }
  0x36   : > { %p6614_p10 = scmp.lt.s32.totalorder %s6605_s14, %s6605_s14 }
  0x37   : > { %p6608_p5 = pnand %p6606_p2, %p7111_p7 }
  0x38   : > { %p6615_p11 = por %p6614_p10, %p6613_p9 }
  0x39   : > { %p6609_p8 = pneg %p6608_p5 }
  0x3a   : > { %6016 = dma.hbm_to_vmem [thread:$0]  (!%p7101_p6), %s8368_s3, 6144, %s468_s18, [#allocation7], %s8337_s30, %s8337_s30, %s8339_s20  }
  0x3b   : > { %p6616_p12 = pnand %p6615_p11, %p6609_p8 }
  0x3d   : > { %6619 = shalt.err (!%p6616_p12)
}
  0x3e   : > { %s8369_s5 = sld [smem:[#allocation37_spill]]  ;;  %s6631_s18 = scalar_lea.vmem %s7107_s24, 16 }
  0x3f   : > { %p6632_p13 = scmp.ne.s32.totalorder %s7107_s24, %s6631_s18  ;;  %s6638_s14 = scalar_lea.vmem %s7107_s24, 32 }
  0x40   : > { %p6639_p5 = scmp.lt.s32.totalorder %s7107_s24, %s7107_s24  ;;  %p6640_p8 = scmp.lt.s32.totalorder %s6638_s14, %s6631_s18 }
  0x41   : > { %p6634_p0 = pnand %p6632_p13, %p7111_p7 }
  0x42   : > { %p6641_p9 = por %p6640_p8, %p6639_p5 }
  0x43   : > { %p6635_p2 = pneg %p6634_p0 }
  0x44   : > { %6019 = dma.hbm_to_vmem [thread:$0]  (!%p7101_p6), %s8369_s5, 9216, %s7105_s21, [#allocation10], %s8337_s30, %s8337_s30, %s8339_s20  }
  0x45   : > { %p6642_p10 = pnand %p6641_p9, %p6635_p2 }
  0x47   : > { %6645 = shalt.err (!%p6642_p10)
}
  0x48   : > { %s8370_s8 = sld [smem:[#allocation39_spill]]  ;;  %s6953_s21 = smov [#allocation15]  }
  0x49   : > { %s539_s15 = sshll.u32 %s6953_s21, 4  ;;  %s6954_s30 = smov [#allocation11]   ;;  %s540_s15 = int_to_ptr.vmem [resolvable:$true] %s539_s15 }
  0x4a   : > { %s499_s20 = sshll.u32 %s6954_s30, 4  ;;  %s6657_s3 = scalar_lea.vmem %s540_s15, 9216  ;;  %s500_s20 = int_to_ptr.vmem [resolvable:$true] %s499_s20 }
  0x4b   : > { %p6658_p11 = scmp.ne.s32.totalorder %s540_s15, %s6657_s3  ;;  %p6665_p0 = scmp.lt.s32.totalorder %s540_s15, %s540_s15 }
  0x4c   : > { %p6666_p2 = scmp.lt.s32.totalorder %s6657_s3, %s6657_s3 }
  0x4d   : > { %p6660_p12 = pnand %p6658_p11, %p7111_p7 }
  0x4e   : > { %6025 = dma.hbm_to_vmem [thread:$0]  (!%p7101_p6), %s8370_s8, 16, %s7107_s24, [#allocation13]  }
  0x4f   : > { %p6661_p13 = pneg %p6660_p12  ;;  %p6667_p5 = por %p6666_p2, %p6665_p0 }
  0x51   : > { %p6668_p8 = pnand %p6667_p5, %p6661_p13 }
  0x53   : > { %6671 = shalt.err (!%p6668_p8)
}
  0x54   : > { %s8371_s18 = smov 12   ;;  %s8372_s14 = smov 192  }
  0x55   : > { %s8373_s11 = sld [smem:[#allocation41_spill]]  ;;  %s6683_s30 = scalar_lea.vmem %s500_s20, 3072 }
  0x56   : > { %p6684_p9 = scmp.ne.s32.totalorder %s500_s20, %s6683_s30  ;;  %p6691_p12 = scmp.lt.s32.totalorder %s500_s20, %s500_s20 }
  0x57   : > { %p6692_p0 = scmp.lt.s32.totalorder %s6683_s30, %s6683_s30 }
  0x58   : > { %p6686_p10 = pnand %p6684_p9, %p7111_p7 }
  0x59   : > { %p6693_p13 = por %p6692_p0, %p6691_p12 }
  0x5a   : > { %p6687_p11 = pneg %p6686_p10 }
  0x5b   : > { %6031 = dma.hbm_to_vmem [thread:$0]  (!%p7101_p6), %s8373_s11, 9216, %s540_s15, [#allocation16], %s8372_s14, %s8372_s14, %s8371_s18  }
  0x5c   : > { %p6694_p2 = pnand %p6693_p13, %p6687_p11 }
  0x5e   : > { %6697 = shalt.err (!%p6694_p2)
}
  0x5f   : > { %s6955_s3 = smov 64   ;;  %s6956_s26 = smov 4  }
  0x60   : > { %s8374_s7 = sld [smem:[#allocation38_spill]]  ;;  %s6957_s15 = smov [#allocation14]  }
  0x61   : > { %s523_s23 = sshll.u32 %s6957_s15, 4  ;;  %s6958_s5 = smov [#allocation17]   ;;  %s524_s23 = int_to_ptr.vmem [resolvable:$true] %s523_s23 }
  0x62   : > { %s555_s8 = sshll.u32 %s6958_s5, 4  ;;  %s6709_s11 = scalar_lea.vmem %s524_s23, 3072  ;;  %s556_s8 = int_to_ptr.vmem [resolvable:$true] %s555_s8 }
  0x63   : > { %p6710_p5 = scmp.ne.s32.totalorder %s524_s23, %s6709_s11  ;;  %p6717_p10 = scmp.lt.s32.totalorder %s524_s23, %s524_s23 }
  0x64   : > { %p6718_p11 = scmp.lt.s32.totalorder %s6709_s11, %s6709_s11 }
  0x65   : > { %p6712_p8 = pnand %p6710_p5, %p7111_p7 }
  0x66   : > { %6022 = dma.hbm_to_vmem [thread:$0]  (!%p7101_p6), %s8374_s7, 3072, %s500_s20, [#allocation10], %s6955_s3, %s6955_s3, %s6956_s26  }
  0x67   : > { %p6713_p9 = pneg %p6712_p8  ;;  %p6719_p12 = por %p6718_p11, %p6717_p10 }
  0x69   : > { %p6720_p0 = pnand %p6719_p12, %p6713_p9 }
  0x6b   : > { %6723 = shalt.err (!%p6720_p0)
}
  0x6c   : > { %s8375_s9 = sld [smem:[#allocation40_spill]]  ;;  %s6735_s5 = scalar_lea.vmem %s556_s8, 6144 }
  0x6d   : > { %p6736_p13 = scmp.ne.s32.totalorder %s556_s8, %s6735_s5  ;;  %p6743_p8 = scmp.lt.s32.totalorder %s556_s8, %s556_s8 }
  0x6e   : > { %p6744_p10 = scmp.lt.s32.totalorder %s6735_s5, %s6735_s5 }
  0x6f   : > { %p6738_p2 = pnand %p6736_p13, %p7111_p7 }
  0x70   : > { %p6745_p9 = por %p6744_p10, %p6743_p8 }
  0x71   : > { %p6739_p5 = pneg %p6738_p2 }
  0x72   : > { %6028 = dma.hbm_to_vmem [thread:$0]  (!%p7101_p6), %s8375_s9, 3072, %s524_s23, [#allocation13], %s8372_s14, %s8372_s14, %s8371_s18  }
  0x73   : > { %p6746_p11 = pnand %p6745_p9, %p6739_p5 }
  0x75   : > { %6749 = shalt.err (!%p6746_p11)
}
  0x76   : > { %s8342_s11 = smov 128   ;;  %s8343_s25 = smov 8  }
  0x77   : > { %s8376_s13 = sld [smem:[#allocation42_spill]]  ;;  %s8341_s3 = sadd.s32 4294967294, %s6946_s0  }
  0x78   : > { %s7192_s26 = sadd.s32 1, %s6946_s0   ;;  %s72_s21 = sadd.s32 1, %s6942_s29 }
  0x79   : > { %8377 = sst [smem:[#allocation31_spill]] %s7192_s26  ;;  %s69_s24 = ssub.s32 %s6946_s0, %s7192_s26 }
  0x7a   : > { %p79_p7 = scmp.ne.s32.totalorder %s6942_s29, %s6938_s28  ;;  %p70_p12 = scmp.eq.s32.totalorder %s69_s24, 0 }
  0x7b   : > { %p80_p0 = scmp.eq.s32.totalorder %s6946_s0, 0  ;;  %p85_p13 = scmp.ne.s32.totalorder %s6938_s28, %s6934_s27 }
  0x7c   : > { %p387_p2 = scmp.eq.s32.totalorder %s7087_s19, 1  ;;  %p393_p10 = scmp.eq.s32.totalorder %s8341_s3, 1 }
  0x7d   : > { %6034 = dma.hbm_to_vmem [thread:$0]  (!%p7101_p6), %s8376_s13, 6144, %s556_s8, [#allocation16], %s8342_s11, %s8342_s11, %s8343_s25  }
  0x7e   : > { %s7204_s22 = scalar_select %p70_p12, %s6942_s29, %s72_s21  }
  0x7f   : > { %p81_p5 = por %p80_p0, %p79_p7  ;;  %p7208_p8 = por %p8344_p1, %p85_p13 }
  0x80   : > { %8378 = sst [smem:[#allocation32_spill]] %s7204_s22  ;;  %p7212_p6 = por %p387_p2, %p79_p7 }
  0x81   : > { %s8379_s15 = scalar_select %p7208_p8, 1, 0 }
  0x82   : > { %s8380_s8 = scalar_select %p7212_p6, 1, 0 }
  0x83   : > { %p6059_p9 = scmp.lt.s32.totalorder %s6946_s0, 2  ;;  %s7220_s23 = sand.u32 1, %s6942_s29  }
  0x84   : > { %p7222_p11 = por %p393_p10, %p85_p13  ;;  %s5199_s30 = sshll.u32 %s7220_s23, 8 }
  0x85   : > { %s5521_s5 = sshll.u32 %s6946_s0, 12  ;;  %s8383_s21 = sld [smem:[#allocation35_spill]] }
  0x86   : > { %s8381_s20 = scalar_select %p7222_p11, 1, 0 }
  0x87   : > { %s576_s3 = scalar_lea.vmem [#allocation3], %s5199_s30  ;;  %p7233_p7 = pnand %p6059_p9, %p81_p5 }
  0x88   : > { %8382 = sst [smem:[#allocation33_spill]] %s8381_s20  ;;  %s584_s11 = sshll.u32 %s576_s3, 4  ;;  %s7237_s11 = int_to_ptr.vmem [resolvable:$true] %s584_s11 }
  0x89   : > { %p6752_p0 = pneg %p7233_p7 }
  0x8b   : > { %s7231_s24 = scalar_lea.hbm %s8383_s21, %s5521_s5  ;;  %s6755_s3 = scalar_lea.hbm %s8383_s21, 8192 }
  0x8c   : > { %s6750_s9 = scalar_lea.hbm %s7231_s24, 4096  ;;  %p6756_p5 = scmp.lt.s32.totalorder %s7231_s24, %s8383_s21 }
  0x8d   : > { %p6751_p12 = scmp.ne.s32.totalorder %s7231_s24, %s6750_s9  ;;  %p6757_p10 = scmp.lt.s32.totalorder %s6755_s3, %s6750_s9 }
  0x8f   : > { %p6753_p13 = pnand %p6752_p0, %p6751_p12  ;;  %p6758_p9 = por %p6757_p10, %p6756_p5 }
  0x91   : > { %p6754_p2 = pneg %p6753_p13 }
  0x93   : > { %p6759_p4 = pnand %p6758_p9, %p6754_p2 }
  0x95   : > { %6762 = shalt.err (!%p6759_p4)
}
  0x96   : > { %s6763_s7 = scalar_lea.vmem %s7237_s11, 4096  ;;  %s6961_s5 = smov [#allocation3]  }
  0x97   : > { %p6764_p1 = scmp.ne.s32.totalorder %s7237_s11, %s6763_s7  ;;  %s6768_s30 = sshll.u32 %s6961_s5, 4  ;;  %s6769_s30 = int_to_ptr.vmem [resolvable:$false] %s6768_s30 }
  0x98   : > { %s6770_s13 = scalar_lea.vmem %s6769_s30, 8192  ;;  %p6771_p11 = scmp.lt.s32.totalorder %s7237_s11, %s6769_s30 }
  0x99   : > { %p6766_p12 = pnand %p6764_p1, %p6752_p0  ;;  %p6772_p6 = scmp.lt.s32.totalorder %s6770_s13, %s6763_s7 }
  0x9b   : > { %p6767_p13 = pneg %p6766_p12  ;;  %p6773_p8 = por %p6772_p6, %p6771_p11 }
  0x9d   : > { %p6774_p5 = pnand %p6773_p8, %p6767_p13 }
  0x9f   : > { %6777 = shalt.err (!%p6774_p5)
}
  0xa0   : > { %s6962_s9 = smov 256   ;;  %s6963_s3 = smov 16  }
  0xa1   : > { %s8385_s18 = scalar_lea.sflag [#allocation4], %s7220_s23  ;;  %s594_s14 = sand.u32 1, %s6946_s0  }
  0xa2   : > { %6038 = dma.hbm_to_vmem [thread:$0]  (!%p7233_p7), %s7231_s24, 4096, %s7237_s11, %s8385_s18, %s6962_s9, %s6962_s9, %s6963_s3  }
  0xa3   : > { %s5203_s5 = sshll.u32 %s7220_s23, 7  ;;  %s5522_s30 = sshll.u32 %s6946_s0, 11 }
  0xa4   : > { %s598_s7 = scalar_lea.vmem [#allocation6], %s5203_s5  ;;  %s7272_s29 = scalar_lea.hbm %s8319_s2, %s5522_s30 }
  0xa5   : > { %s605_s13 = sshll.u32 %s598_s7, 4  ;;  %s595_s26 = scalar_lea.sflag [#allocation7], %s594_s14  ;;  %s7274_s13 = int_to_ptr.vmem [resolvable:$true] %s605_s13 }
  0xa6   : > { %s6778_s20 = scalar_lea.hbm %s7272_s29, 2048  ;;  %s6783_s24 = scalar_lea.hbm %s8319_s2, 4096 }
  0xa7   : > { %p6779_p1 = scmp.ne.s32.totalorder %s7272_s29, %s6778_s20  ;;  %p6784_p6 = scmp.lt.s32.totalorder %s7272_s29, %s8319_s2 }
  0xa8   : > { %p6785_p11 = scmp.lt.s32.totalorder %s6783_s24, %s6778_s20 }
  0xa9   : > { %p6781_p4 = pnand %p6779_p1, %p6752_p0 }
  0xaa   : > { %p6786_p2 = por %p6785_p11, %p6784_p6 }
  0xab   : > { %p6782_p8 = pneg %p6781_p4 }
  0xad   : > { %p6787_p10 = pnand %p6786_p2, %p6782_p8 }
  0xaf   : > { %6790 = shalt.err (!%p6787_p10)
}
  0xb0   : > { %s6791_s21 = scalar_lea.vmem %s7274_s13, 2048  ;;  %s6964_s3 = smov [#allocation6]  }
  0xb1   : > { %p6792_p9 = scmp.ne.s32.totalorder %s7274_s13, %s6791_s21  ;;  %s6796_s18 = sshll.u32 %s6964_s3, 4  ;;  %s6797_s18 = int_to_ptr.vmem [resolvable:$false] %s6796_s18 }
  0xb2   : > { %s6798_s14 = scalar_lea.vmem %s6797_s18, 4096  ;;  %p6799_p5 = scmp.lt.s32.totalorder %s7274_s13, %s6797_s18 }
  0xb3   : > { %p6794_p12 = pnand %p6792_p9, %p6752_p0  ;;  %p6800_p1 = scmp.lt.s32.totalorder %s6798_s14, %s6791_s21 }
  0xb5   : > { %p6795_p13 = pneg %p6794_p12  ;;  %p6801_p4 = por %p6800_p1, %p6799_p5 }
  0xb7   : > { %p6802_p6 = pnand %p6801_p4, %p6795_p13 }
  0xb9   : > { %6805 = shalt.err (!%p6802_p6)
}
  0xba   : > { %s8386_s20 = smov 8   ;;  %s8387_s5 = smov 128  }
  0xbb   : > { %6041 = dma.hbm_to_vmem [thread:$0]  (!%p7233_p7), %s7272_s29, 2048, %s7274_s13, %s595_s26, %s8387_s5, %s8387_s5, %s8386_s20  }
  0xbc   : > { %617 = sbr.rel (%p7092_p3) target bundleno = 1730 (0x6c2), region = 80  ;;  %s7304_s30 = sand.u32 (!%p7092_p3), 1, %s6938_s28  }
  0xbd   : > { %s5207_s7 = sshll.u32 (!%p7092_p3), %s7304_s30, 8  ;;  %s620_s11 = scalar_lea.sflag (!%p7092_p3), [#allocation4], %s7304_s30 }
  0xbe   : > { %s7310_s25 = scalar_lea.vmem (!%p7092_p3), [#allocation3], %s5207_s7  ;;  %p8388_p0 = scmp.ne.s32.totalorder (!%p7092_p3), %s8379_s15, 0 }
  0xc1   : > { %6901 = dma.done.wait (%p8388_p0), %s620_s11, 4096  }
  0xc2   : > { %6903 = vsyncadd (%p8388_p0), %s620_s11, 4294963200  ;;  %s628_s29 = sand.u32 1, %s7087_s19   ;;  %s7318_s1 = sshll.u32 %s7304_s30, 7 }
  0xc3   : > { %s629_s26 = scalar_lea.sflag [#allocation7], %s628_s29  ;;  %s7323_s13 = scalar_lea.vmem [#allocation6], %s7318_s1 }
  0xc4   : > { %6905 = dma.done.wait (%p8388_p0), %s629_s26, 2048  }
  0xc5   : > { %6907 = vsyncadd (%p8388_p0), %s629_s26, 4294965248  ;;  %p8389_p3 = scmp.eq.s32.totalorder %s7087_s19, 0 }
  0xc7   : > { %6909 = dma.done.wait (%p8389_p3), [#allocation7], 6144   ;;  %p8390_p7 = pmov %p8389_p3 }
  0xc8   : > { %p8391_p8 = pmov %p8389_p3 }
  0xc9   : > { %6911 = vsyncadd (%p8390_p7), [#allocation7], 4294961152 }
  0xca   : > { %6913 = dma.done.wait (%p8391_p8), [#allocation10], 12288   ;;  %p8392_p11 = pmov %p8389_p3 }
  0xcb   : > { %p8393_p2 = pmov %p8389_p3 }
  0xcc   : > { %6915 = vsyncadd (%p8392_p11), [#allocation10], 4294955008 }
  0xcd   : > { %6917 = dma.done.wait (%p8393_p2), [#allocation13], 3088   ;;  %p8394_p10 = pmov %p8393_p2 }
  0xce   : > { %p8395_p9 = pmov %p8393_p2 }
  0xcf   : > { %6919 = vsyncadd (%p8394_p10), [#allocation13], 4294964208 }
  0xd0   : > { %6921 = dma.done.wait (%p8395_p9), [#allocation16], 15360   ;;  %p8396_p12 = pmov %p8393_p2 }
  0xd1   : > { %v6120_v0 = vld [vmem:[#allocation8 + $0xac] ss:$12 sps:$4 sm:$0xff]   ;;  %v6122_v1 = vld [vmem:[#allocation8 + $0x170] ss:$12 sps:$4 sm:$0xff]   ;;  %v6123_v2 = vld [vmem:[#allocation8 + $0xa8] ss:$12 sps:$4 sm:$0xff]  }
  0xd2   : > { %6923 = vsyncadd (%p8396_p12), [#allocation16], 4294951936  ;;  %1117 = vmatprep.subr.bf16.mxu0 %v6120_v0  ;;  %5527 = vmatprep.subr.bf16.mxu1 %v6122_v1  ;;  %v6124_v3 = vld [vmem:[#allocation8 + $0xb0] ss:$12 sps:$4 sm:$0xff]   ;;  %v6125_v4 = vld [vmem:[#allocation8 + $0x94] ss:$12 sps:$4 sm:$0xff]  }
  0xd3   : > { %1118 = vmatpush1.bf16.msra.mxu0 %v6123_v2  ;;  %5528 = vmatpush3.bf16.msra.mxu1 %v6124_v3  ;;  %v6127_v5 = vld [vmem:[#allocation8 + $0x158] ss:$12 sps:$4 sm:$0xff]   ;;  %v6128_v6 = vld [vmem:[#allocation8 + $0x90] ss:$12 sps:$4 sm:$0xff]   ;;  %v6132_v9 = vld [vmem:[#allocation8 + $0x140] ss:$12 sps:$4 sm:$0xff]  }
  0xd4   : > { %1119 = vmatprep.subr.bf16.mxu0 %v6125_v4  ;;  %v6129_v7 = vld [vmem:[#allocation8 + $0x98] ss:$12 sps:$4 sm:$0xff]   ;;  %5529 = vmatprep.subr.bf16.mxu1 %v6127_v5  ;;  %v6130_v8 = vld [vmem:[#allocation8 + $0x7c] ss:$12 sps:$4 sm:$0xff]   ;;  %v6134_v11 = vld [vmem:[#allocation8 + $0x80] ss:$12 sps:$4 sm:$0xff]  }
  0xd5   : > { %v6133_v10 = vld [vmem:[#allocation8 + $0x78] ss:$12 sps:$4 sm:$0xff]   ;;  %v6137_v13 = vld [vmem:[#allocation8 + $0x128] ss:$12 sps:$4 sm:$0xff]   ;;  %v6138_v14 = vld [vmem:[#allocation8 + $0x60] ss:$12 sps:$4 sm:$0xff]  }
  0xd6   : > { %v6135_v12 = vld [vmem:[#allocation8 + $0x64] ss:$12 sps:$4 sm:$0xff]   ;;  %v6139_v15 = vld [vmem:[#allocation8 + $0x68] ss:$12 sps:$4 sm:$0xff]   ;;  %v6140_v16 = vld [vmem:[#allocation8 + $0x4c] ss:$12 sps:$4 sm:$0xff]  }
  0xd7   : > { %1120 = vmatpush1.bf16.msra.mxu0 %v6128_v6  ;;  %5530 = vmatpush3.bf16.msra.mxu1 %v6129_v7  ;;  %v6142_v17 = vld [vmem:[#allocation8 + $0x110] ss:$12 sps:$4 sm:$0xff]   ;;  %v6143_v18 = vld [vmem:[#allocation8 + $0x48] ss:$12 sps:$4 sm:$0xff]   ;;  %v6147_v21 = vld [vmem:[#allocation8 + $0xf8] ss:$12 sps:$4 sm:$0xff]  }
  0xd8   : > { %1121 = vmatprep.subr.bf16.mxu0 %v6130_v8  ;;  %5531 = vmatprep.subr.bf16.mxu1 %v6132_v9  ;;  %v6144_v19 = vld [vmem:[#allocation8 + $0x50] ss:$12 sps:$4 sm:$0xff]   ;;  %v6145_v20 = vld [vmem:[#allocation8 + $0x34] ss:$12 sps:$4 sm:$0xff]   ;;  %v6149_v23 = vld [vmem:[#allocation8 + $0x38] ss:$12 sps:$4 sm:$0xff]  }
  0xd9   : > { %v6148_v22 = vld [vmem:[#allocation8 + $0x30] ss:$12 sps:$4 sm:$0xff]   ;;  %v6152_v25 = vld [vmem:[#allocation8 + $0xe0] ss:$12 sps:$4 sm:$0xff]   ;;  %v6153_v26 = vld [vmem:[#allocation8 + $0x18] ss:$12 sps:$4 sm:$0xff]  }
  0xda   : > { %v6150_v24 = vld [vmem:[#allocation8 + $0x1c] ss:$12 sps:$4 sm:$0xff]   ;;  %v6154_v27 = vld [vmem:[#allocation8 + $0x20] ss:$12 sps:$4 sm:$0xff]   ;;  %v6155_v28 = vld [vmem:[#allocation8 + $0x4] ss:$12 sps:$4 sm:$0xff]  }
  0xdb   : > { %1122 = vmatpush1.bf16.msra.mxu0 %v6133_v10  ;;  %5532 = vmatpush3.bf16.msra.mxu1 %v6134_v11  ;;  %v6157_v29 = vld [vmem:[#allocation8 + $0xc8] ss:$12 sps:$4 sm:$0xff]   ;;  %v6158_v30 = vld [vmem:[#allocation8] ss:$12 sps:$4 sm:$0xff]   ;;  %v735_v32 = vld [vmem:[%s7310_s25 + $0x18] sm:$0xff]  ;;  %s2797_s22 = sld [smem:[#allocation2]] }
  0xdc   : > { %1123 = vmatprep.subr.bf16.mxu0 %v6135_v12  ;;  %5533 = vmatprep.subr.bf16.mxu1 %v6137_v13  ;;  %v733_v31 = vld [vmem:[%s7310_s25 + $0x8] sm:$0xff]  ;;  %v732_v36 = vld [vmem:[%s7310_s25] sm:$0xff]  ;;  %v734_v37 = vld [vmem:[%s7310_s25 + $0x10] sm:$0xff]  ;;  %s7722_s21 = scalar_lea.vmem [#allocation21], %s7318_s1  ;;  %s7730_s3 = scalar_lea.vmem [#allocation19], %s7318_s1 }
  0xdd   : > { %v6159_v33 = vld [vmem:[#allocation8 + $0x8] ss:$12 sps:$4 sm:$0xff]   ;;  %v765_v34 = vpack.c.bf16 %v735_v32, %v733_v31  ;;  %v6160_v35 = vld [vmem:[#allocation8 + $0x16c] ss:$12 sps:$4 sm:$0xff]   ;;  %v7351_v40 = vpack.c.bf16 %v734_v37, %v732_v36  ;;  %v6165_v44 = vld [vmem:[#allocation8 + $0x150] ss:$12 sps:$4 sm:$0xff]  }
  0xde   : > { %v737_v38 = vld [vmem:[%s7310_s25 + $0x28] sm:$0xff]  ;;  %v739_v39 = vld [vmem:[%s7310_s25 + $0x38] sm:$0xff]  ;;  %v6163_v42 = vld [vmem:[#allocation8 + $0x154] ss:$12 sps:$4 sm:$0xff]   ;;  %s5525_s11 = sshll.u32 %s7087_s19, 11  ;;  %s8092_s15 = scalar_lea.sflag [#allocation20], %s628_s29 }
  0xdf   : > { %1124 = vmatpush1.bf16.msra.mxu0 %v6138_v14  ;;  %5534 = vmatpush3.bf16.msra.mxu1 %v6139_v15  ;;  %v6162_v41 = vld [vmem:[#allocation8 + $0x168] ss:$12 sps:$4 sm:$0xff]   ;;  %v7353_v43 = vpack.c.bf16 %v739_v39, %v737_v38  ;;  %v736_v46 = vld [vmem:[%s7310_s25 + $0x20] sm:$0xff]  ;;  %v743_v49 = vld [vmem:[%s7310_s25 + $0x58] sm:$0xff]  ;;  %p8397_p5 = scmp.ne.s32.totalorder %s8380_s8, 0  ;;  %s6966_s24 = smov [#allocation19]  }
  0xe0   : > { %1125 = vmatprep.subr.bf16.mxu0 %v6140_v16  ;;  %5535 = vmatprep.subr.bf16.mxu1 %v6142_v17  ;;  %v6166_v45 = vld [vmem:[#allocation8 + $0x13c] ss:$12 sps:$4 sm:$0xff]   ;;  %v738_v47 = vld [vmem:[%s7310_s25 + $0x30] sm:$0xff]  ;;  %v6168_v51 = vld [vmem:[#allocation8 + $0x138] ss:$12 sps:$4 sm:$0xff]   ;;  %s6810_s9 = sshll.u32 %s6966_s24, 4  ;;  %s6811_s9 = int_to_ptr.vmem [resolvable:$false] %s6810_s9 }
  0xe1   : > { %1262 = vmatprep.mubr.bf16.mxu1 %v765_v34  ;;  %1149 = vmatprep.mubr.bf16.mxu0 %v765_v34  ;;  %v741_v48 = vld [vmem:[%s7310_s25 + $0x48] sm:$0xff]  ;;  %v7361_v50 = vpack.c.bf16 %v738_v47, %v736_v46  ;;  %v6169_v52 = vld [vmem:[#allocation8 + $0x124] ss:$12 sps:$4 sm:$0xff]   ;;  %v747_v59 = vld [vmem:[%s7310_s25 + $0x78] sm:$0xff] }
  0xe2   : > { %v7363_v53 = vpack.c.bf16 %v743_v49, %v741_v48  ;;  %v6171_v54 = vld [vmem:[#allocation8 + $0x120] ss:$12 sps:$4 sm:$0xff]   ;;  %v742_v57 = vld [vmem:[%s7310_s25 + $0x50] sm:$0xff]  ;;  %v6178_v3 = vld [vmem:[#allocation8 + $0xdc] ss:$12 sps:$4 sm:$0xff]  }
  0xe3   : > { %1126 = vmatpush1.bf16.msra.mxu0 %v6143_v18  ;;  %5536 = vmatpush3.bf16.msra.mxu1 %v6144_v19  ;;  %v6172_v55 = vld [vmem:[#allocation8 + $0x10c] ss:$12 sps:$4 sm:$0xff]   ;;  %v740_v56 = vld [vmem:[%s7310_s25 + $0x40] sm:$0xff]  ;;  %v6174_v60 = vld [vmem:[#allocation8 + $0x108] ss:$12 sps:$4 sm:$0xff]  }
  0xe4   : > { %1127 = vmatprep.subr.bf16.mxu0 %v6145_v20  ;;  %5537 = vmatprep.subr.bf16.mxu1 %v6147_v21  ;;  %v745_v58 = vld [vmem:[%s7310_s25 + $0x68] sm:$0xff]  ;;  %v7371_v61 = vpack.c.bf16 %v742_v57, %v740_v56  ;;  %v6175_v62 = vld [vmem:[#allocation8 + $0xf4] ss:$12 sps:$4 sm:$0xff]   ;;  %v6177_v1 = vld [vmem:[#allocation8 + $0xf0] ss:$12 sps:$4 sm:$0xff]  }
  0xe5   : > { %v7373_v63 = vpack.c.bf16 %v747_v59, %v745_v58  ;;  %v6186_v0 = vld [vmem:[#allocation9 + $0xac] ss:$12 sps:$4 sm:$0xff]   ;;  %v6184_v2 = vld [vmem:[#allocation9 + $0xa8] ss:$12 sps:$4 sm:$0xff]   ;;  %v744_v4 = vld [vmem:[%s7310_s25 + $0x60] sm:$0xff] }
  0xe6   : > { %v6192_v5 = vld [vmem:[#allocation9 + $0x94] ss:$12 sps:$4 sm:$0xff]   ;;  %v749_v7 = vld [vmem:[%s7310_s25 + $0x88] sm:$0xff]  ;;  %v751_v8 = vld [vmem:[%s7310_s25 + $0x98] sm:$0xff] }
  0xe7   : > { %1128 = vmatpush1.bf16.msra.mxu0 %v6148_v22  ;;  %5538 = vmatpush3.bf16.msra.mxu1 %v6149_v23  ;;  %v746_v6 = vld [vmem:[%s7310_s25 + $0x70] sm:$0xff]  ;;  %v6198_v10 = vld [vmem:[#allocation9 + $0x7c] ss:$12 sps:$4 sm:$0xff]   ;;  %v6180_v12 = vld [vmem:[#allocation8 + $0xd8] ss:$12 sps:$4 sm:$0xff]   ;;  %v7383_v14 = vpack.c.bf16 %v751_v8, %v749_v7 }
  0xe8   : > { %1129 = vmatprep.subr.bf16.mxu0 %v6150_v24  ;;  %5539 = vmatprep.subr.bf16.mxu1 %v6152_v25  ;;  %v6190_v9 = vld [vmem:[#allocation9 + $0x90] ss:$12 sps:$4 sm:$0xff]   ;;  %v7381_v11 = vpack.c.bf16 %v746_v6, %v744_v4  ;;  %v6183_v15 = vld [vmem:[#allocation8 + $0xc0] ss:$12 sps:$4 sm:$0xff]   ;;  %v6196_v16 = vld [vmem:[#allocation9 + $0x78] ss:$12 sps:$4 sm:$0xff]  }
  0xe9   : > { %v6181_v13 = vld [vmem:[#allocation8 + $0xc4] ss:$12 sps:$4 sm:$0xff]   ;;  %v6189_v19 = vld [vmem:[#allocation9 + $0x22c] ss:$12 sps:$4 sm:$0xff]   ;;  %v6187_v25 = vld [vmem:[#allocation9 + $0x228] ss:$12 sps:$4 sm:$0xff]  }
  0xea   : > { %v748_v17 = vld [vmem:[%s7310_s25 + $0x80] sm:$0xff]  ;;  %v750_v18 = vld [vmem:[%s7310_s25 + $0x90] sm:$0xff]  ;;  %v753_v21 = vld [vmem:[%s7310_s25 + $0xa8] sm:$0xff]  ;;  %v6965_v6 = vmov 0  }
  0xeb   : > { %1130 = vmatpush1.bf16.msra.mxu0 %v6153_v26  ;;  %5540 = vmatpush3.bf16.msra.mxu1 %v6154_v27  ;;  %v6204_v20 = vld [vmem:[#allocation9 + $0x64] ss:$12 sps:$4 sm:$0xff]   ;;  %v755_v22 = vld [vmem:[%s7310_s25 + $0xb8] sm:$0xff]  ;;  %v6202_v23 = vld [vmem:[#allocation9 + $0x60] ss:$12 sps:$4 sm:$0xff]   ;;  %v772_v26 = vpack.c.bf16 %v750_v18, %v748_v17 }
  0xec   : > { %1131 = vmatprep.subr.bf16.mxu0 %v6155_v28  ;;  %5541 = vmatprep.subr.bf16.mxu1 %v6157_v29  ;;  %v6210_v24 = vld [vmem:[#allocation9 + $0x4c] ss:$12 sps:$4 sm:$0xff]   ;;  %v6195_v27 = vld [vmem:[#allocation9 + $0x214] ss:$12 sps:$4 sm:$0xff]   ;;  %v775_v29 = vpack.c.bf16 %v755_v22, %v753_v21  ;;  %v6193_v32 = vld [vmem:[#allocation9 + $0x210] ss:$12 sps:$4 sm:$0xff]  }
  0xed   : > { %v6208_v28 = vld [vmem:[#allocation9 + $0x48] ss:$12 sps:$4 sm:$0xff]   ;;  %v759_v34 = vld [vmem:[%s7310_s25 + $0xd8] sm:$0xff]  ;;  %v6207_v38 = vld [vmem:[#allocation9 + $0x1e4] ss:$12 sps:$4 sm:$0xff]  }
  0xee   : > { %v754_v31 = vld [vmem:[%s7310_s25 + $0xb0] sm:$0xff]  ;;  %v6199_v36 = vld [vmem:[#allocation9 + $0x1f8] ss:$12 sps:$4 sm:$0xff]   ;;  %v6222_v56 = vld [vmem:[#allocation9 + $0x1c] ss:$12 sps:$4 sm:$0xff]  }
  0xef   : > { %1132 = vmatpush1.bf16.msra.mxu0 %v6158_v30  ;;  %5542 = vmatpush3.bf16.msra.mxu1 %v6159_v33  ;;  %v752_v30 = vld [vmem:[%s7310_s25 + $0xa0] sm:$0xff]  ;;  %v757_v33 = vld [vmem:[%s7310_s25 + $0xc8] sm:$0xff]  ;;  %v6258_v17 = vld [vmem:[#allocation9 + $0x230] ss:$12 sps:$4 sm:$0xff]  }
  0xf0   : > { %1133 = vmatprep.subr.bf16.mxu0 %v6160_v35  ;;  %1896 = vmatprep.subr.bf16.mxu1 %v6186_v0  ;;  %v6201_v35 = vld [vmem:[#allocation9 + $0x1fc] ss:$12 sps:$4 sm:$0xff]   ;;  %v774_v37 = vpack.c.bf16 %v754_v31, %v752_v30  ;;  %v777_v39 = vpack.c.bf16 %v759_v34, %v757_v33  ;;  %v760_v49 = vld [vmem:[%s7310_s25 + $0xe0] sm:$0xff]  ;;  %v6234_v0 = vld [vmem:[#allocation9 + $0x16c] ss:$12 sps:$4 sm:$0xff]  }
  0xf1   : > { %v6211_v46 = vld [vmem:[#allocation9 + $0x1c8] ss:$12 sps:$4 sm:$0xff]   ;;  %v6220_v57 = vld [vmem:[#allocation9 + $0x18] ss:$12 sps:$4 sm:$0xff]   ;;  %v6241_v8 = vld [vmem:[#allocation9 + $0x120] ss:$12 sps:$4 sm:$0xff]  }
  0xf2   : > { %1263 = vmatmul.mubr.bf16.vlgmr.msra.gmra.mxu1 %v7351_v40  ;;  %v6225_v58 = vld [vmem:[#allocation9 + $0x19c] ss:$12 sps:$4 sm:$0xff]   ;;  %v6223_v59 = vld [vmem:[#allocation9 + $0x198] ss:$12 sps:$4 sm:$0xff]   ;;  %v7415_v22 = vld [vmem:[%s8321_s4] sm:$0x7] }
  0xf3   : > { %1134 = vmatpush2.bf16.msra.mxu0 %v6162_v41  ;;  %1270 = vmatprep.mubr.bf16.mxu1 %v7353_v43  ;;  %v758_v41 = vld [vmem:[%s7310_s25 + $0xd0] sm:$0xff]  ;;  %v6240_v4 = vld [vmem:[#allocation9 + $0x13c] ss:$12 sps:$4 sm:$0xff]  }
  0xf4   : > { %1135 = vmatprep.subr.bf16.mxu0 %v6163_v42  ;;  %1897 = vmatpush1.bf16.msra.mxu1 %v6184_v2  ;;  %v6205_v42 = vld [vmem:[#allocation9 + $0x1e0] ss:$12 sps:$4 sm:$0xff]   ;;  %v6243_v7 = vld [vmem:[#allocation9 + $0x124] ss:$12 sps:$4 sm:$0xff]  }
  0xf5   : > { %1898 = vmatprep.subr.bf16.mxu1 %v6192_v5  ;;  %v6237_v2 = vld [vmem:[#allocation9 + $0x154] ss:$12 sps:$4 sm:$0xff]   ;;  %v6238_v5 = vld [vmem:[#allocation9 + $0x138] ss:$12 sps:$4 sm:$0xff]   ;;  %v6256_v18 = vld [vmem:[#allocation9 + $0x170] ss:$12 sps:$4 sm:$0xff]  }
  0xf7   : > { %1136 = vmatpush2.bf16.msra.mxu0 %v6165_v44  ;;  %v763_v44 = vld [vmem:[%s7310_s25 + $0xf8] sm:$0xff] }
  0xf8   : > { %1137 = vmatprep.subr.bf16.mxu0 %v6166_v45  ;;  %1899 = vmatpush1.bf16.msra.mxu1 %v6190_v9  ;;  %v6213_v45 = vld [vmem:[#allocation9 + $0x1cc] ss:$12 sps:$4 sm:$0xff]  }
  0xf9   : > { %1900 = vmatprep.subr.bf16.mxu1 %v6198_v10  ;;  %v6246_v9 = vld [vmem:[#allocation9 + $0x10c] ss:$12 sps:$4 sm:$0xff]   ;;  %v6244_v10 = vld [vmem:[#allocation9 + $0x108] ss:$12 sps:$4 sm:$0xff]  }
  0xfa   : > { %1271 = vmatmul.mubr.bf16.gmra.mxu1 %v7361_v50 }
  0xfb   : > { %1138 = vmatpush2.bf16.msra.mxu0 %v6168_v51  ;;  %1278 = vmatprep.mubr.bf16.mxu1 %v7363_v53 }
  0xfc   : > { %1139 = vmatprep.subr.bf16.mxu0 %v6169_v52  ;;  %1901 = vmatpush1.bf16.msra.mxu1 %v6196_v16  ;;  %v6214_v52 = vld [vmem:[#allocation9 + $0x30] ss:$12 sps:$4 sm:$0xff]   ;;  %v6253_v16 = vld [vmem:[#allocation9 + $0xc0] ss:$12 sps:$4 sm:$0xff]  }
  0xfd   : > { %1902 = vmatprep.subr.bf16.mxu1 %v6204_v20 }
  0xff   : > { %1140 = vmatpush2.bf16.msra.mxu0 %v6171_v54  ;;  %v6219_v54 = vld [vmem:[#allocation9 + $0x1b4] ss:$12 sps:$4 sm:$0xff]  }
 0x100   : > { %1141 = vmatprep.subr.bf16.mxu0 %v6172_v55  ;;  %1903 = vmatpush1.bf16.msra.mxu1 %v6202_v23  ;;  %v6217_v55 = vld [vmem:[#allocation9 + $0x1b0] ss:$12 sps:$4 sm:$0xff]  }
 0x101   : > { %1904 = vmatprep.subr.bf16.mxu1 %v6210_v24 }
 0x102   : > { %1279 = vmatmul.mubr.bf16.gmra.mxu1 %v7371_v61 }
 0x103   : > { %1142 = vmatpush2.bf16.msra.mxu0 %v6174_v60  ;;  %1286 = vmatprep.mubr.bf16.mxu1 %v7373_v63  ;;  %v6228_v60 = vld [vmem:[#allocation9 + $0x4] ss:$12 sps:$4 sm:$0xff]  }
 0x104   : > { %1143 = vmatprep.subr.bf16.mxu0 %v6175_v62  ;;  %1905 = vmatpush1.bf16.msra.mxu1 %v6208_v28  ;;  %v6231_v62 = vld [vmem:[#allocation9 + $0x184] ss:$12 sps:$4 sm:$0xff]  }
 0x107   : > { %1144 = vmatpush2.bf16.msra.mxu0 %v6177_v1  ;;  %v6232_v1 = vld [vmem:[#allocation9 + $0x168] ss:$12 sps:$4 sm:$0xff]  }
 0x108   : > { %1145 = vmatprep.subr.bf16.mxu0 %v6178_v3  ;;  %v6235_v3 = vld [vmem:[#allocation9 + $0x150] ss:$12 sps:$4 sm:$0xff]  }
 0x10a   : > { %1287 = vmatmul.mubr.bf16.gmra.mxu1 %v7381_v11 }
 0x10b   : > { %1146 = vmatpush2.bf16.msra.mxu0 %v6180_v12  ;;  %1294 = vmatprep.mubr.bf16.mxu1 %v7383_v14  ;;  %v6247_v12 = vld [vmem:[#allocation9 + $0xf0] ss:$12 sps:$4 sm:$0xff]  }
 0x10c   : > { %1147 = vmatprep.subr.bf16.mxu0 %v6181_v13  ;;  %v6252_v13 = vld [vmem:[#allocation9 + $0xdc] ss:$12 sps:$4 sm:$0xff]  }
 0x10f   : > { %1148 = vmatpush2.bf16.msra.mxu0 %v6183_v15  ;;  %v6255_v15 = vld [vmem:[#allocation9 + $0xc4] ss:$12 sps:$4 sm:$0xff]  }
 0x110   : > { %2009 = vmatprep.subr.bf16.mxu0 %v6189_v19  ;;  %v846_v19 = vlaneseq }
 0x112   : > { %1150 = vmatmul.mubr.bf16.vlgmr.msra.gmra.mxu0 %v7351_v40  ;;  %1295 = vmatmul.mubr.bf16.gmra.mxu1 %v772_v26  ;;  %v756_v40 = vld [vmem:[%s7310_s25 + $0xc0] sm:$0xff]  ;;  %v847_v20 = vshrl.u32 %v846_v19, 7 }
 0x113   : > { %1159 = vmatprep.mubr.bf16.mxu0 %v7353_v43  ;;  %1302 = vmatprep.mubr.bf16.mxu1 %v775_v29  ;;  %v761_v43 = vld [vmem:[%s7310_s25 + $0xe8] sm:$0xff]  ;;  %v776_v47 = vpack.c.bf16 %v758_v41, %v756_v40  ;;  %v6259_v40 = vld [vmem:[#allocation9 + $0x218] ss:$12 sps:$4 sm:$0xff]  }
 0x114   : > { %2010 = vmatpush1.bf16.msra.mxu0 %v6187_v25  ;;  %v779_v48 = vpack.c.bf16 %v763_v44, %v761_v43  ;;  %v7410_v21 = vsub.s32 2, %v847_v20 }
 0x115   : > { %2011 = vmatprep.subr.bf16.mxu0 %v6195_v27 }
 0x116   : > { %v7419_v24 = vrot.slane %v7415_v22, %v7410_v21 }
 0x118   : > { %2012 = vmatpush1.bf16.msra.mxu0 %v6193_v32 }
 0x119   : > { %2013 = vmatprep.subr.bf16.mxu0 %v6201_v35 }
 0x11a   : > { %1160 = vmatmul.mubr.bf16.gmra.mxu0 %v7361_v50  ;;  %1303 = vmatmul.mubr.bf16.gmra.mxu1 %v774_v37  ;;  %v762_v50 = vld [vmem:[%s7310_s25 + $0xf0] sm:$0xff]  ;;  %s4950_s25 = sshll.u32 %s7730_s3, 4  ;;  %s8086_s25 = int_to_ptr.vmem [resolvable:$true] %s4950_s25 }
 0x11b   : > { %1169 = vmatprep.mubr.bf16.mxu0 %v7363_v53  ;;  %1310 = vmatprep.mubr.bf16.mxu1 %v777_v39  ;;  %v778_v51 = vpack.c.bf16 %v762_v50, %v760_v49  ;;  %v6216_v53 = vld [vmem:[#allocation9 + $0x34] ss:$12 sps:$4 sm:$0xff]   ;;  %s6806_s23 = scalar_lea.vmem %s8086_s25, 2048  ;;  %p6813_p6 = scmp.lt.s32.totalorder %s8086_s25, %s6811_s9 }
 0x11c   : > { %2014 = vmatpush1.bf16.msra.mxu0 %v6199_v36  ;;  %1906 = vmatprep.subr.bf16.mxu1 %v6216_v53  ;;  %v6263_v53 = vld [vmem:[#allocation9 + $0x1e8] ss:$12 sps:$4 sm:$0xff]   ;;  %p6807_p13 = scmp.ne.s32.totalorder %s8086_s25, %s6806_s23 }
 0x11d   : > { %2015 = vmatprep.subr.bf16.mxu0 %v6207_v38  ;;  %1907 = vmatpush1.bf16.msra.mxu1 %v6214_v52 }
 0x11e   : > { %1908 = vmatprep.subr.bf16.mxu1 %v6222_v56  ;;  %p6808_p1 = pnand %p6807_p13, %p8397_p5 }
 0x120   : > { %2016 = vmatpush1.bf16.msra.mxu0 %v6205_v42  ;;  %p6809_p4 = pneg %p6808_p1 }
 0x121   : > { %2017 = vmatprep.subr.bf16.mxu0 %v6213_v45  ;;  %1909 = vmatpush1.bf16.msra.mxu1 %v6220_v57 }
 0x122   : > { %1170 = vmatmul.mubr.bf16.gmra.mxu0 %v7371_v61  ;;  %1311 = vmatmul.mubr.bf16.gmra.mxu1 %v776_v47  ;;  %v6226_v61 = vld [vmem:[#allocation9] ss:$12 sps:$4 sm:$0xff]  }
 0x123   : > { %1179 = vmatprep.mubr.bf16.mxu0 %v7373_v63  ;;  %1318 = vmatprep.mubr.bf16.mxu1 %v779_v48  ;;  %v6229_v63 = vld [vmem:[#allocation9 + $0x180] ss:$12 sps:$4 sm:$0xff]  }
 0x124   : > { %2018 = vmatpush1.bf16.msra.mxu0 %v6211_v46  ;;  %1910 = vmatprep.subr.bf16.mxu1 %v6228_v60  ;;  %v6262_v46 = vld [vmem:[#allocation9 + $0x200] ss:$12 sps:$4 sm:$0xff]  }
 0x125   : > { %2019 = vmatprep.subr.bf16.mxu0 %v6219_v54  ;;  %1911 = vmatpush1.bf16.msra.mxu1 %v6226_v61 }
 0x126   : > { %1912 = vmatprep.subr.bf16.mxu1 %v6234_v0  ;;  %v7435_v0 = vsub.s32 1, %v847_v20 }
 0x128   : > { %2020 = vmatpush1.bf16.msra.mxu0 %v6217_v55 }
 0x129   : > { %2021 = vmatprep.subr.bf16.mxu0 %v6225_v58  ;;  %1913 = vmatpush2.bf16.msra.mxu1 %v6232_v1 }
 0x12a   : > { %1180 = vmatmul.mubr.bf16.gmra.mxu0 %v7381_v11  ;;  %1319 = vmatmul.mubr.bf16.gmra.mxu1 %v778_v51  ;;  %v6249_v11 = vld [vmem:[#allocation9 + $0xf4] ss:$12 sps:$4 sm:$0xff]  }
 0x12b   : > { %1189 = vmatprep.mubr.bf16.mxu0 %v7383_v14  ;;  %1914 = vmatprep.subr.bf16.mxu1 %v6237_v2  ;;  %v6250_v14 = vld [vmem:[#allocation9 + $0xd8] ss:$12 sps:$4 sm:$0xff]  }
 0x12c   : > { %2022 = vmatpush1.bf16.msra.mxu0 %v6223_v59  ;;  %v6266_v59 = vld [vmem:[#allocation9 + $0x1d0] ss:$12 sps:$4 sm:$0xff]  }
 0x12d   : > { %2023 = vmatprep.subr.bf16.mxu0 %v6231_v62  ;;  %1915 = vmatpush2.bf16.msra.mxu1 %v6235_v3  ;;  %v7440_v3 = vsub.s32 0, %v847_v20 }
 0x12e   : > { %1916 = vmatprep.subr.bf16.mxu1 %v6240_v4  ;;  %v6267_v4 = vld [vmem:[#allocation9 + $0x1b8] ss:$12 sps:$4 sm:$0xff]  }
 0x130   : > { %2024 = vmatpush1.bf16.msra.mxu0 %v6229_v63 }
 0x131   : > { %1917 = vmatpush2.bf16.msra.mxu1 %v6238_v5  ;;  %5847 = vmatprep.subr.bf16.mxu0 %v6258_v17 }
 0x132   : > { %1190 = vmatmul.mubr.bf16.gmra.mxu0 %v772_v26  ;;  %1918 = vmatprep.subr.bf16.mxu1 %v6243_v7 }
 0x133   : > { %1199 = vmatprep.mubr.bf16.mxu0 %v775_v29 }
 0x135   : > { %1919 = vmatpush2.bf16.msra.mxu1 %v6241_v8 }
 0x136   : > { %1920 = vmatprep.subr.bf16.mxu1 %v6246_v9 }
 0x139   : > { %1921 = vmatpush2.bf16.msra.mxu1 %v6244_v10  ;;  %v7445_v10 = vrot.slane %v7415_v22, %v7435_v0 }
 0x13a   : > { %1200 = vmatmul.mubr.bf16.gmra.mxu0 %v774_v37  ;;  %1922 = vmatprep.subr.bf16.mxu1 %v6249_v11 }
 0x13b   : > { %1209 = vmatprep.mubr.bf16.mxu0 %v777_v39 }
 0x13d   : > { %1923 = vmatpush2.bf16.msra.mxu1 %v6247_v12 }
 0x13e   : > { %1924 = vmatprep.subr.bf16.mxu1 %v6252_v13  ;;  %v7451_v13 = vrot.slane %v7415_v22, %v7440_v3 }
 0x141   : > { %1925 = vmatpush2.bf16.msra.mxu1 %v6250_v14 }
 0x142   : > { %1210 = vmatmul.mubr.bf16.gmra.mxu0 %v776_v47  ;;  %1926 = vmatprep.subr.bf16.mxu1 %v6255_v15  ;;  %v6270_v15 = vld [vmem:[#allocation9 + $0x1a0] ss:$12 sps:$4 sm:$0xff]  }
 0x143   : > { %1219 = vmatprep.mubr.bf16.mxu0 %v779_v48 }
 0x145   : > { %1927 = vmatpush2.bf16.msra.mxu1 %v6253_v16 }
 0x146   : > { %5591 = vmatprep.subr.bf16.mxu1 %v6256_v18 }
 0x14a   : > { %1220 = vmatmul.mubr.bf16.gmra.mxu0 %v778_v51 }
 0x14b   : > { %2041 = vmatprep.mubr.bf16.mxu0 %v6965_v6 }
 0x1b2   : > { %v5543_v23 = vpop.f32.mrf.mxu1 }
 0x1b4   : > { %v5544_v25 = vpop.f32.mrf.mxu1 }
 0x1b5   : > { %v5545_v26 = vadd.f32 %v5544_v25, %v5543_v23 }
 0x1b6   : > { %v5546_v27 = vpop.f32.mrf.mxu1 }
 0x1b7   : > { %v1265_v28 = vadd.f32 %v5545_v26, %v7419_v24 }
 0x1b8   : > { %v5547_v29 = vpop.f32.mrf.mxu1 }
 0x1b9   : > { %v5548_v30 = vadd.f32 %v5547_v29, %v5546_v27  ;;  %v1329_v32 = vmax.f32 %v1265_v28, 0.0  ;;  %v6271_v29 = vld [vmem:[#allocation9 + $0x188] ss:$12 sps:$4 sm:$0xff]  }
 0x1ba   : > { %v5549_v31 = vpop.f32.mrf.mxu1 }
 0x1bb   : > { %v1268_v33 = vadd.f32 %v5548_v30, %v7419_v24 }
 0x1bc   : > { %v5550_v34 = vpop.f32.mrf.mxu1 }
 0x1bd   : > { %v1332_v35 = vmax.f32 %v1268_v33, 0.0  ;;  %v5551_v36 = vadd.f32 %v5550_v34, %v5549_v31 }
 0x1be   : > { %v5552_v37 = vpop.f32.mrf.mxu1 }
 0x1bf   : > { %v7423_v38 = vpack.c.bf16 %v1332_v35, %v1329_v32  ;;  %v1273_v39 = vadd.f32 %v5551_v36, %v7419_v24 }
 0x1c0   : > { %v5553_v41 = vpop.f32.mrf.mxu1 }
 0x1c1   : > { %v5554_v42 = vadd.f32 %v5553_v41, %v5552_v37  ;;  %2042 = vmatmul.mubr.bf16.vlgmr.msra.gmra.mxu0 %v7423_v38  ;;  %v1335_v44 = vmax.f32 %v1273_v39, 0.0 }
 0x1c2   : > { %v5555_v43 = vpop.f32.mrf.mxu1  ;;  %2051 = vmatprep.mubr.bf16.mxu0 %v6965_v6  ;;  %5848 = vmatpush3.bf16.msra.mxu0 %v6258_v17 }
 0x1c3   : > { %v1276_v45 = vadd.f32 %v5554_v42, %v7419_v24  ;;  %5849 = vmatprep.subr.bf16.mxu0 %v6259_v40 }
 0x1c4   : > { %v5556_v47 = vpop.f32.mrf.mxu1 }
 0x1c5   : > { %v1338_v48 = vmax.f32 %v1276_v45, 0.0  ;;  %v5557_v49 = vadd.f32 %v5556_v47, %v5555_v43  ;;  %v6257_v45 = vld [vmem:[#allocation9 + $0xb0] ss:$12 sps:$4 sm:$0xff]  }
 0x1c6   : > { %v5558_v50 = vpop.f32.mrf.mxu1  ;;  %5850 = vmatpush3.bf16.msra.mxu0 %v6259_v40 }
 0x1c7   : > { %v1281_v51 = vadd.f32 %v5557_v49, %v7419_v24  ;;  %v7430_v52 = vpack.c.bf16 %v1338_v48, %v1335_v44  ;;  %5851 = vmatprep.subr.bf16.mxu0 %v6262_v46 }
 0x1c8   : > { %v5559_v54 = vpop.f32.mrf.mxu1 }
 0x1c9   : > { %v5560_v55 = vadd.f32 %v5559_v54, %v5558_v50  ;;  %2052 = vmatmul.mubr.bf16.gmra.mxu0 %v7430_v52  ;;  %v1341_v57 = vmax.f32 %v1281_v51, 0.0  ;;  %v6260_v50 = vld [vmem:[#allocation9 + $0x158] ss:$12 sps:$4 sm:$0xff]  }
 0x1ca   : > { %v5561_v56 = vpop.f32.mrf.mxu1  ;;  %2061 = vmatprep.mubr.bf16.mxu0 %v6965_v6  ;;  %5852 = vmatpush3.bf16.msra.mxu0 %v6262_v46 }
 0x1cb   : > { %v1284_v58 = vadd.f32 %v5560_v55, %v7419_v24  ;;  %5853 = vmatprep.subr.bf16.mxu0 %v6263_v53 }
 0x1cc   : > { %v5562_v60 = vpop.f32.mrf.mxu1 }
 0x1cd   : > { %v1344_v61 = vmax.f32 %v1284_v58, 0.0  ;;  %v5563_v62 = vadd.f32 %v5562_v60, %v5561_v56 }
 0x1ce   : > { %v5564_v63 = vpop.f32.mrf.mxu1  ;;  %5854 = vmatpush3.bf16.msra.mxu0 %v6263_v53 }
 0x1cf   : > { %v1289_v1 = vadd.f32 %v5563_v62, %v7419_v24  ;;  %v7438_v2 = vpack.c.bf16 %v1344_v61, %v1341_v57  ;;  %5855 = vmatprep.subr.bf16.mxu0 %v6266_v59  ;;  %v6261_v61 = vld [vmem:[#allocation9 + $0x98] ss:$12 sps:$4 sm:$0xff]  }
 0x1d0   : > { %v5565_v5 = vpop.f32.mrf.mxu1 }
 0x1d1   : > { %v5566_v7 = vadd.f32 %v5565_v5, %v5564_v63  ;;  %2062 = vmatmul.mubr.bf16.gmra.mxu0 %v7438_v2  ;;  %v1347_v11 = vmax.f32 %v1289_v1, 0.0 }
 0x1d2   : > { %v1151_v8 = vpop.f32.mrf.mxu0  ;;  %v5567_v9 = vpop.f32.mrf.mxu1  ;;  %2071 = vmatprep.mubr.bf16.mxu0 %v6965_v6  ;;  %5856 = vmatpush3.bf16.msra.mxu0 %v6266_v59 }
 0x1d3   : > { %v1292_v12 = vadd.f32 %v5566_v7, %v7419_v24  ;;  %5857 = vmatprep.subr.bf16.mxu0 %v6267_v4  ;;  %v1152_v26 = vadd.f32 %v1151_v8, %v7451_v13 }
 0x1d4   : > { %v1153_v14 = vpop.f32.mrf.mxu0  ;;  %v5568_v16 = vpop.f32.mrf.mxu1 }
 0x1d5   : > { %v1350_v17 = vmax.f32 %v1292_v12, 0.0  ;;  %v5569_v18 = vadd.f32 %v5568_v16, %v5567_v9  ;;  %v1154_v20 = vadd.f32 %v1153_v14, %v7445_v10  ;;  %v1327_v39 = vmax.f32 %v1152_v26, 0.0 }
 0x1d6   : > { %v1155_v19 = vpop.f32.mrf.mxu0  ;;  %v5570_v25 = vpop.f32.mrf.mxu1  ;;  %5858 = vmatpush3.bf16.msra.mxu0 %v6267_v4  ;;  %v6264_v4 = vld [vmem:[#allocation9 + $0x140] ss:$12 sps:$4 sm:$0xff]  }
 0x1d7   : > { %v1156_v23 = vadd.f32 %v1155_v19, %v7451_v13  ;;  %v1297_v27 = vadd.f32 %v5569_v18, %v7419_v24  ;;  %v7457_v22 = vpack.c.bf16 %v1350_v17, %v1347_v11  ;;  %5859 = vmatprep.subr.bf16.mxu0 %v6270_v15  ;;  %v1328_v35 = vmax.f32 %v1154_v20, 0.0  ;;  %v6265_v17 = vld [vmem:[#allocation9 + $0x80] ss:$12 sps:$4 sm:$0xff]  }
 0x1d8   : > { %v1157_v28 = vpop.f32.mrf.mxu0  ;;  %v5571_v31 = vpop.f32.mrf.mxu1 }
 0x1d9   : > { %v1158_v30 = vadd.f32 %v1157_v28, %v7445_v10  ;;  %v1330_v32 = vmax.f32 %v1156_v23, 0.0  ;;  %v5572_v33 = vadd.f32 %v5571_v31, %v5570_v25  ;;  %2072 = vmatmul.mubr.bf16.gmra.mxu0 %v7457_v22  ;;  %v1353_v40 = vmax.f32 %v1297_v27, 0.0  ;;  %v6268_v25 = vld [vmem:[#allocation9 + $0x128] ss:$12 sps:$4 sm:$0xff]  }
 0x1da   : > { %v1161_v34 = vpop.f32.mrf.mxu0  ;;  %v5573_v37 = vpop.f32.mrf.mxu1  ;;  %2081 = vmatprep.mubr.bf16.mxu0 %v6965_v6  ;;  %5860 = vmatpush3.bf16.msra.mxu0 %v6270_v15 }
 0x1db   : > { %v1331_v36 = vmax.f32 %v1158_v30, 0.0  ;;  %v1300_v41 = vadd.f32 %v5572_v33, %v7419_v24  ;;  %5861 = vmatprep.subr.bf16.mxu0 %v6271_v29  ;;  %v7465_v46 = vpack.c.bf16 %v1330_v32, %v1327_v39  ;;  %v1162_v55 = vadd.f32 %v1161_v34, %v7451_v13 }
 0x1dc   : > { %v1163_v42 = vpop.f32.mrf.mxu0  ;;  %v5574_v43 = vpop.f32.mrf.mxu1 }
 0x1dd   : > { %v7463_v44 = vpack.c.bf16 %v1331_v36, %v1328_v35  ;;  %v1356_v47 = vmax.f32 %v1300_v41, 0.0  ;;  %v5575_v48 = vadd.f32 %v5574_v43, %v5573_v37  ;;  %v1164_v51 = vadd.f32 %v1163_v42, %v7445_v10  ;;  %v6269_v35 = vld [vmem:[#allocation9 + $0x68] ss:$12 sps:$4 sm:$0xff]  }
 0x1de   : > { %v1165_v49 = vpop.f32.mrf.mxu0  ;;  %v5576_v54 = vpop.f32.mrf.mxu1  ;;  %5862 = vmatpush3.bf16.msra.mxu0 %v6271_v29  ;;  %v1333_v9 = vmax.f32 %v1162_v55, 0.0 }
 0x1df   : > { %v1166_v53 = vadd.f32 %v1165_v49, %v7451_v13  ;;  %1928 = vmatprep.mubr.bf16.mxu1 %v7463_v44  ;;  %v1305_v56 = vadd.f32 %v5575_v48, %v7419_v24  ;;  %v7473_v58 = vpack.c.bf16 %v1356_v47, %v1353_v40  ;;  %v1334_v5 = vmax.f32 %v1164_v51, 0.0  ;;  %v6272_v40 = vld [vmem:[#allocation9 + $0x110] ss:$12 sps:$4 sm:$0xff]  }
 0x1e0   : > { %v1167_v57 = vpop.f32.mrf.mxu0  ;;  %1929 = vmatmul.mubr.bf16.vlgmr.msra.gmra.mxu1 %v7465_v46  ;;  %v5577_v60 = vpop.f32.mrf.mxu1 }
 0x1e1   : > { %v1168_v59 = vadd.f32 %v1167_v57, %v7445_v10  ;;  %5592 = vmatpush3.bf16.msra.mxu1 %v6257_v45  ;;  %v1336_v62 = vmax.f32 %v1166_v53, 0.0  ;;  %v5578_v63 = vadd.f32 %v5577_v60, %v5576_v54  ;;  %2082 = vmatmul.mubr.bf16.gmra.mxu0 %v7473_v58  ;;  %v1359_v11 = vmax.f32 %v1305_v56, 0.0  ;;  %v6273_v53 = vld [vmem:[#allocation9 + $0x50] ss:$12 sps:$4 sm:$0xff]  }
 0x1e2   : > { %v1171_v1 = vpop.f32.mrf.mxu0  ;;  %5593 = vmatprep.subr.bf16.mxu1 %v6260_v50  ;;  %v5579_v8 = vpop.f32.mrf.mxu1  ;;  %2091 = vmatprep.mubr.bf16.mxu0 %v6965_v6 }
 0x1e3   : > { %v1337_v7 = vmax.f32 %v1168_v59, 0.0  ;;  %v1308_v12 = vadd.f32 %v5578_v63, %v7419_v24  ;;  %v7481_v18 = vpack.c.bf16 %v1336_v62, %v1333_v9  ;;  %v1172_v29 = vadd.f32 %v1171_v1, %v7451_v13  ;;  %v6274_v59 = vld [vmem:[#allocation9 + $0xf8] ss:$12 sps:$4 sm:$0xff]  }
 0x1e4   : > { %v1173_v14 = vpop.f32.mrf.mxu0  ;;  %v5580_v15 = vpop.f32.mrf.mxu1  ;;  %v6275_v9 = vld [vmem:[#allocation9 + $0x38] ss:$12 sps:$4 sm:$0xff]  }
 0x1e5   : > { %v7479_v16 = vpack.c.bf16 %v1337_v7, %v1334_v5  ;;  %5594 = vmatpush3.bf16.msra.mxu1 %v6261_v61  ;;  %v1362_v19 = vmax.f32 %v1308_v12, 0.0  ;;  %v5581_v20 = vadd.f32 %v5580_v15, %v5579_v8  ;;  %v1174_v26 = vadd.f32 %v1173_v14, %v7445_v10  ;;  %v6276_v15 = vld [vmem:[#allocation9 + $0xe0] ss:$12 sps:$4 sm:$0xff]  }
 0x1e6   : > { %v1175_v23 = vpop.f32.mrf.mxu0  ;;  %5595 = vmatprep.subr.bf16.mxu1 %v6264_v4  ;;  %v5582_v28 = vpop.f32.mrf.mxu1  ;;  %v1339_v45 = vmax.f32 %v1172_v29, 0.0 }
 0x1e7   : > { %v1176_v27 = vadd.f32 %v1175_v23, %v7451_v13  ;;  %1938 = vmatprep.mubr.bf16.mxu1 %v7479_v16  ;;  %v1313_v30 = vadd.f32 %v5581_v20, %v7419_v24  ;;  %v7489_v32 = vpack.c.bf16 %v1362_v19, %v1359_v11  ;;  %v1340_v41 = vmax.f32 %v1174_v26, 0.0 }
 0x1e8   : > { %v1177_v31 = vpop.f32.mrf.mxu0  ;;  %1939 = vmatmul.mubr.bf16.gmra.mxu1 %v7481_v18  ;;  %v5583_v34 = vpop.f32.mrf.mxu1 }
 0x1e9   : > { %v1178_v33 = vadd.f32 %v1177_v31, %v7445_v10  ;;  %5596 = vmatpush3.bf16.msra.mxu1 %v6265_v17  ;;  %v1342_v36 = vmax.f32 %v1176_v27, 0.0  ;;  %v5584_v37 = vadd.f32 %v5583_v34, %v5582_v28  ;;  %2092 = vmatmul.mubr.bf16.gmra.mxu0 %v7489_v32  ;;  %v1365_v47 = vmax.f32 %v1313_v30, 0.0  ;;  %v6277_v28 = vld [vmem:[#allocation9 + $0x20] ss:$12 sps:$4 sm:$0xff]  }
 0x1ea   : > { %v1181_v39 = vpop.f32.mrf.mxu0  ;;  %5597 = vmatprep.subr.bf16.mxu1 %v6268_v25  ;;  %v5585_v43 = vpop.f32.mrf.mxu1  ;;  %2101 = vmatprep.mubr.bf16.mxu0 %v6965_v6 }
 0x1eb   : > { %v1343_v42 = vmax.f32 %v1178_v33, 0.0  ;;  %v1316_v48 = vadd.f32 %v5584_v37, %v7419_v24  ;;  %v7497_v54 = vpack.c.bf16 %v1342_v36, %v1339_v45  ;;  %v1182_v63 = vadd.f32 %v1181_v39, %v7451_v13  ;;  %v6278_v33 = vld [vmem:[#allocation9 + $0xc8] ss:$12 sps:$4 sm:$0xff]  }
 0x1ec   : > { %v1183_v49 = vpop.f32.mrf.mxu0  ;;  %v5586_v50 = vpop.f32.mrf.mxu1 }
 0x1ed   : > { %v7495_v51 = vpack.c.bf16 %v1343_v42, %v1340_v41  ;;  %5598 = vmatpush3.bf16.msra.mxu1 %v6269_v35  ;;  %v1368_v55 = vmax.f32 %v1316_v48, 0.0  ;;  %v5587_v56 = vadd.f32 %v5586_v50, %v5585_v43  ;;  %v1184_v60 = vadd.f32 %v1183_v49, %v7445_v10 }
 0x1ee   : > { %v1185_v57 = vpop.f32.mrf.mxu0  ;;  %5599 = vmatprep.subr.bf16.mxu1 %v6272_v40  ;;  %v5588_v62 = vpop.f32.mrf.mxu1  ;;  %v1345_v20 = vmax.f32 %v1182_v63, 0.0  ;;  %v6279_v40 = vld [vmem:[#allocation9 + $0x8] ss:$12 sps:$4 sm:$0xff]  }
 0x1ef   : > { %v1186_v61 = vadd.f32 %v1185_v57, %v7451_v13  ;;  %1948 = vmatprep.mubr.bf16.mxu1 %v7495_v51  ;;  %v1321_v1 = vadd.f32 %v5587_v56, %v7419_v24  ;;  %v7505_v5 = vpack.c.bf16 %v1368_v55, %v1365_v47  ;;  %v1346_v17 = vmax.f32 %v1184_v60, 0.0 }
 0x1f0   : > { %v1187_v4 = vpop.f32.mrf.mxu0  ;;  %1949 = vmatmul.mubr.bf16.gmra.mxu1 %v7497_v54  ;;  %v5589_v8 = vpop.f32.mrf.mxu1 }
 0x1f1   : > { %v1188_v7 = vadd.f32 %v1187_v4, %v7445_v10  ;;  %5600 = vmatpush3.bf16.msra.mxu1 %v6273_v53  ;;  %v1348_v11 = vmax.f32 %v1186_v61, 0.0  ;;  %v5590_v12 = vadd.f32 %v5589_v8, %v5588_v62  ;;  %2102 = vmatmul.mubr.bf16.gmra.mxu0 %v7505_v5  ;;  %v1371_v23 = vmax.f32 %v1321_v1, 0.0 }
 0x1f2   : > { %v1191_v14 = vpop.f32.mrf.mxu0  ;;  %5601 = vmatprep.subr.bf16.mxu1 %v6274_v59  ;;  %2111 = vmatprep.mubr.bf16.mxu0 %v6965_v6 }
 0x1f3   : > { %v1349_v19 = vmax.f32 %v1188_v7, 0.0  ;;  %v1324_v25 = vadd.f32 %v5590_v12, %v7419_v24  ;;  %v7513_v29 = vpack.c.bf16 %v1348_v11, %v1345_v20  ;;  %v1192_v36 = vadd.f32 %v1191_v14, %v7451_v13 }
 0x1f4   : > { %v1193_v26 = vpop.f32.mrf.mxu0 }
 0x1f5   : > { %v7511_v27 = vpack.c.bf16 %v1349_v19, %v1346_v17  ;;  %5602 = vmatpush3.bf16.msra.mxu1 %v6275_v9  ;;  %v1374_v30 = vmax.f32 %v1324_v25, 0.0  ;;  %v1194_v34 = vadd.f32 %v1193_v26, %v7445_v10  ;;  %v1351_v47 = vmax.f32 %v1192_v36, 0.0 }
 0x1f6   : > { %v1195_v31 = vpop.f32.mrf.mxu0  ;;  %5603 = vmatprep.subr.bf16.mxu1 %v6276_v15 }
 0x1f7   : > { %v1196_v35 = vadd.f32 %v1195_v31, %v7451_v13  ;;  %1958 = vmatprep.mubr.bf16.mxu1 %v7511_v27  ;;  %v7520_v37 = vpack.c.bf16 %v1374_v30, %v1371_v23  ;;  %v1352_v43 = vmax.f32 %v1194_v34, 0.0  ;;  %v6280_v34 = vld [vmem:[#allocation11 + $0x78] sm:$0xff]  }
 0x1f8   : > { %v1197_v24 = vpop.f32.mrf.mxu0  ;;  %1959 = vmatmul.mubr.bf16.gmra.mxu1 %v7513_v29  ;;  %5671 = vmatprep.subr.bf16.mxu0 %v6280_v34 }
 0x1f9   : > { %v1198_v39 = vadd.f32 %v1197_v24, %v7445_v10  ;;  %5604 = vmatpush3.bf16.msra.mxu1 %v6277_v28  ;;  %v1354_v41 = vmax.f32 %v1196_v35, 0.0  ;;  %2112 = vmatmul.mubr.bf16.gmra.mxu0 %v7520_v37 }
 0x1fa   : > { %v1201_v42 = vpop.f32.mrf.mxu0  ;;  %5605 = vmatprep.subr.bf16.mxu1 %v6278_v33  ;;  %5863 = vmatprep.mubr.bf16.mxu0 %v7423_v38 }
 0x1fb   : > { %v1355_v45 = vmax.f32 %v1198_v39, 0.0  ;;  %v7527_v50 = vpack.c.bf16 %v1354_v41, %v1351_v47  ;;  %v1202_v57 = vadd.f32 %v1201_v42, %v7451_v13  ;;  %v6282_v41 = vld [vmem:[#allocation11 + $0x70] sm:$0xff]   ;;  %v6284_v47 = vld [vmem:[#allocation11 + $0x68] sm:$0xff]  }
 0x1fc   : > { %v1203_v48 = vpop.f32.mrf.mxu0 }
 0x1fd   : > { %v7525_v49 = vpack.c.bf16 %v1355_v45, %v1352_v43  ;;  %5606 = vmatpush3.bf16.msra.mxu1 %v6279_v40  ;;  %v1204_v55 = vadd.f32 %v1203_v48, %v7445_v10  ;;  %v1357_v1 = vmax.f32 %v1202_v57, 0.0  ;;  %v6283_v43 = vld [vmem:[#allocation11 + $0x30] sm:$0xff]   ;;  %v6288_v48 = vld [vmem:[#allocation11 + $0x58] sm:$0xff]   ;;  %v6294_v57 = vld [vmem:[#allocation11 + $0x40] sm:$0xff]  }
 0x1fe   : > { %v1205_v53 = vpop.f32.mrf.mxu0 }
 0x1ff   : > { %v1206_v56 = vadd.f32 %v1205_v53, %v7451_v13  ;;  %1968 = vmatprep.mubr.bf16.mxu1 %v7525_v49  ;;  %v1358_v62 = vmax.f32 %v1204_v55, 0.0  ;;  %v6289_v53 = vld [vmem:[#allocation11 + $0x18] sm:$0xff]   ;;  %v6290_v55 = vld [vmem:[#allocation11 + $0x50] sm:$0xff]  }
 0x200   : > { %v1207_v59 = vpop.f32.mrf.mxu0  ;;  %1969 = vmatmul.mubr.bf16.gmra.mxu1 %v7527_v50 }
 0x201   : > { %v1208_v38 = vadd.f32 %v1207_v59, %v7445_v10  ;;  %v1360_v60 = vmax.f32 %v1206_v56, 0.0  ;;  %5864 = vmatmul.mubr.bf16.vlgmr.msra.gmra.mxu0 %v7430_v52  ;;  %v6291_v56 = vld [vmem:[#allocation11 + $0x10] sm:$0xff]   ;;  %v6295_v59 = vld [vmem:[#allocation11] sm:$0xff]  }
 0x202   : > { %v1211_v61 = vpop.f32.mrf.mxu0  ;;  %5867 = vmatprep.mubr.bf16.mxu0 %v7438_v2 }
 0x203   : > { %v1361_v63 = vmax.f32 %v1208_v38, 0.0  ;;  %v7539_v8 = vpack.c.bf16 %v1360_v60, %v1357_v1  ;;  %v1212_v52 = vadd.f32 %v1211_v61, %v7451_v13 }
 0x204   : > { %v1213_v4 = vpop.f32.mrf.mxu0 }
 0x205   : > { %v7537_v7 = vpack.c.bf16 %v1361_v63, %v1358_v62  ;;  %v1214_v11 = vadd.f32 %v1213_v4, %v7445_v10  ;;  %v1363_v23 = vmax.f32 %v1212_v52, 0.0 }
 0x206   : > { %v1215_v9 = vpop.f32.mrf.mxu0 }
 0x207   : > { %v1216_v12 = vadd.f32 %v1215_v9, %v7451_v13  ;;  %1978 = vmatprep.mubr.bf16.mxu1 %v7537_v7  ;;  %v1364_v19 = vmax.f32 %v1214_v11, 0.0 }
 0x208   : > { %v1217_v14 = vpop.f32.mrf.mxu0  ;;  %1979 = vmatmul.mubr.bf16.gmra.mxu1 %v7539_v8 }
 0x209   : > { %v1218_v2 = vadd.f32 %v1217_v14, %v7445_v10  ;;  %v1366_v15 = vmax.f32 %v1216_v12, 0.0  ;;  %5868 = vmatmul.mubr.bf16.gmra.mxu0 %v7457_v22  ;;  %v7587_v14 = vld [vmem:[%s8323_s6] sm:$0x7] }
 0x20a   : > { %v1221_v17 = vpop.f32.mrf.mxu0  ;;  %5871 = vmatprep.mubr.bf16.mxu0 %v7473_v58  ;;  %v6281_v58 = vld [vmem:[#allocation11 + $0x38] sm:$0xff]  }
 0x20b   : > { %v1367_v20 = vmax.f32 %v1218_v2, 0.0  ;;  %v7551_v28 = vpack.c.bf16 %v1366_v15, %v1363_v23  ;;  %v1222_v22 = vadd.f32 %v1221_v17, %v7451_v13  ;;  %5672 = vmatpush3.bf16.msra.mxu0 %v6281_v58  ;;  %v7593_v15 = vrot.slane %v7587_v14, %v7435_v0 }
 0x20c   : > { %v1223_v25 = vpop.f32.mrf.mxu0  ;;  %5673 = vmatprep.subr.bf16.mxu0 %v6282_v41 }
 0x20d   : > { %v7549_v26 = vpack.c.bf16 %v1367_v20, %v1364_v19  ;;  %v1224_v31 = vadd.f32 %v1223_v25, %v7445_v10  ;;  %v1369_v42 = vmax.f32 %v1222_v22, 0.0  ;;  %v7599_v19 = vrot.slane %v7587_v14, %v7440_v3 }
 0x20e   : > { %v1225_v30 = vpop.f32.mrf.mxu0 }
 0x20f   : > { %v1226_v33 = vadd.f32 %v1225_v30, %v7451_v13  ;;  %1988 = vmatprep.mubr.bf16.mxu1 %v7549_v26  ;;  %v1370_v39 = vmax.f32 %v1224_v31, 0.0  ;;  %5674 = vmatpush3.bf16.msra.mxu0 %v6283_v43 }
 0x210   : > { %v1227_v35 = vpop.f32.mrf.mxu0  ;;  %1989 = vmatmul.mubr.bf16.gmra.mxu1 %v7551_v28  ;;  %5675 = vmatprep.subr.bf16.mxu0 %v6284_v47 }
 0x211   : > { %v1228_v36 = vadd.f32 %v1227_v35, %v7445_v10  ;;  %v1372_v24 = vmax.f32 %v1226_v33, 0.0  ;;  %5872 = vmatmul.mubr.bf16.gmra.mxu0 %v7489_v32  ;;  %v6285_v10 = vld [vmem:[#allocation11 + $0x28] sm:$0xff]   ;;  %v6286_v32 = vld [vmem:[#allocation11 + $0x60] sm:$0xff]  }
 0x212   : > { %5875 = vmatprep.mubr.bf16.mxu0 %v7505_v5  ;;  %v6287_v5 = vld [vmem:[#allocation11 + $0x20] sm:$0xff]  }
 0x213   : > { %v1373_v40 = vmax.f32 %v1228_v36, 0.0  ;;  %v1396_v13 = vpack.c.bf16 %v1372_v24, %v1369_v42  ;;  %5676 = vmatpush3.bf16.msra.mxu0 %v6285_v10 }
 0x214   : > { %5677 = vmatprep.subr.bf16.mxu0 %v6286_v32 }
 0x215   : > { %v1397_v45 = vpack.c.bf16 %v1373_v40, %v1370_v39 }
 0x217   : > { %1998 = vmatprep.mubr.bf16.mxu1 %v1397_v45  ;;  %5678 = vmatpush3.bf16.msra.mxu0 %v6287_v5 }
 0x218   : > { %1999 = vmatmul.mubr.bf16.gmra.mxu1 %v1396_v13  ;;  %5679 = vmatprep.subr.bf16.mxu0 %v6288_v48 }
 0x219   : > { %2154 = vmatprep.mubr.bf16.mxu1 %v7463_v44  ;;  %5876 = vmatmul.mubr.bf16.gmra.mxu0 %v7520_v37  ;;  %v6292_v44 = vld [vmem:[#allocation11 + $0x48] sm:$0xff]  }
 0x21a   : > { %v6293_v37 = vld [vmem:[#allocation11 + $0x8] sm:$0xff]  }
 0x21b   : > { %5680 = vmatpush3.bf16.msra.mxu0 %v6289_v53 }
 0x21c   : > { %5681 = vmatprep.subr.bf16.mxu0 %v6290_v55 }
 0x21f   : > { %5682 = vmatpush3.bf16.msra.mxu0 %v6291_v56 }
 0x220   : > { %2155 = vmatmul.mubr.bf16.vlgmr.msra.gmra.mxu1 %v7465_v46  ;;  %5683 = vmatprep.subr.bf16.mxu0 %v6292_v44  ;;  %v6296_v46 = vld [vmem:[#allocation11 + $0xb8] sm:$0xff]  }
 0x221   : > { %2162 = vmatprep.mubr.bf16.mxu1 %v7479_v16  ;;  %5879 = vmatprep.subr.bf16.mxu1 %v6296_v46  ;;  %v6297_v16 = vld [vmem:[#allocation11 + $0xb0] sm:$0xff]  }
 0x222   : > { %5880 = vmatpush3.bf16.msra.mxu1 %v6296_v46 }
 0x223   : > { %5684 = vmatpush3.bf16.msra.mxu0 %v6293_v37  ;;  %5881 = vmatprep.subr.bf16.mxu1 %v6297_v16 }
 0x224   : > { %5685 = vmatprep.subr.bf16.mxu0 %v6294_v57 }
 0x226   : > { %5882 = vmatpush3.bf16.msra.mxu1 %v6297_v16 }
 0x227   : > { %5686 = vmatpush3.bf16.msra.mxu0 %v6295_v59 }
 0x228   : > { %2163 = vmatmul.mubr.bf16.gmra.mxu1 %v7481_v18  ;;  %v6298_v18 = vld [vmem:[#allocation11 + $0xa8] sm:$0xff]  }
 0x229   : > { %2170 = vmatprep.mubr.bf16.mxu1 %v7495_v51  ;;  %5883 = vmatprep.subr.bf16.mxu1 %v6298_v18  ;;  %v6299_v51 = vld [vmem:[#allocation11 + $0xa0] sm:$0xff]  }
 0x22a   : > { %5884 = vmatpush3.bf16.msra.mxu1 %v6298_v18 }
 0x22b   : > { %5885 = vmatprep.subr.bf16.mxu1 %v6299_v51 }
 0x22e   : > { %5886 = vmatpush3.bf16.msra.mxu1 %v6299_v51 }
 0x230   : > { %2171 = vmatmul.mubr.bf16.gmra.mxu1 %v7497_v54  ;;  %v6300_v54 = vld [vmem:[#allocation11 + $0x98] sm:$0xff]  }
 0x231   : > { %2178 = vmatprep.mubr.bf16.mxu1 %v7511_v27  ;;  %5887 = vmatprep.subr.bf16.mxu1 %v6300_v54  ;;  %v6301_v27 = vld [vmem:[#allocation11 + $0x90] sm:$0xff]  }
 0x232   : > { %5888 = vmatpush3.bf16.msra.mxu1 %v6300_v54 }
 0x233   : > { %5889 = vmatprep.subr.bf16.mxu1 %v6301_v27 }
 0x236   : > { %5890 = vmatpush3.bf16.msra.mxu1 %v6301_v27 }
 0x238   : > { %2179 = vmatmul.mubr.bf16.gmra.mxu1 %v7513_v29  ;;  %v6302_v29 = vld [vmem:[#allocation11 + $0x88] sm:$0xff]  }
 0x239   : > { %2186 = vmatprep.mubr.bf16.mxu1 %v7525_v49  ;;  %5891 = vmatprep.subr.bf16.mxu1 %v6302_v29  ;;  %v6303_v49 = vld [vmem:[#allocation11 + $0x80] sm:$0xff]  }
 0x23a   : > { %5892 = vmatpush3.bf16.msra.mxu1 %v6302_v29 }
 0x23b   : > { %5893 = vmatprep.subr.bf16.mxu1 %v6303_v49 }
 0x23e   : > { %5894 = vmatpush3.bf16.msra.mxu1 %v6303_v49 }
 0x240   : > { %2187 = vmatmul.mubr.bf16.gmra.mxu1 %v7527_v50 }
 0x241   : > { %2194 = vmatprep.mubr.bf16.mxu1 %v7537_v7 }
 0x248   : > { %2195 = vmatmul.mubr.bf16.gmra.mxu1 %v7539_v8 }
 0x249   : > { %2202 = vmatprep.mubr.bf16.mxu1 %v7549_v26 }
 0x250   : > { %2203 = vmatmul.mubr.bf16.gmra.mxu1 %v7551_v28 }
 0x251   : > { %2210 = vmatprep.mubr.bf16.mxu1 %v1397_v45 }
 0x258   : > { %2211 = vmatmul.mubr.bf16.gmra.mxu1 %v1396_v13 }
 0x281   : > { %v2043_v50 = vpop.f32.mrf.mxu0 }
 0x283   : > { %v2045_v38 = vpop.f32.mrf.mxu0 }
 0x285   : > { %v2047_v60 = vpop.f32.mrf.mxu0 }
 0x287   : > { %v2049_v61 = vpop.f32.mrf.mxu0 }
 0x289   : > { %v2053_v62 = vpop.f32.mrf.mxu0 }
 0x28b   : > { %v2055_v63 = vpop.f32.mrf.mxu0 }
 0x28d   : > { %v2057_v1 = vpop.f32.mrf.mxu0 }
 0x28f   : > { %v2059_v4 = vpop.f32.mrf.mxu0 }
 0x291   : > { %v7576_v7 = vpop.f32.mrf.mxu0 }
 0x293   : > { %v2065_v8 = vpop.f32.mrf.mxu0 }
 0x295   : > { %v2067_v9 = vpop.f32.mrf.mxu0 }
 0x297   : > { %v7578_v11 = vpop.f32.mrf.mxu0 }
 0x299   : > { %v7580_v12 = vpop.f32.mrf.mxu0 }
 0x29b   : > { %v7582_v52 = vpop.f32.mrf.mxu0 }
 0x29d   : > { %v7589_v2 = vpop.f32.mrf.mxu0 }
 0x29f   : > { %v7595_v17 = vpop.f32.mrf.mxu0 }
 0x2a0   : > { %v1930_v20 = vpop.f32.mrf.mxu1 }
 0x2a1   : > { %v7601_v23 = vpop.f32.mrf.mxu0  ;;  %v1931_v28 = vadd.f32 %v1930_v20, %v7599_v19 }
 0x2a2   : > { %v1932_v25 = vpop.f32.mrf.mxu1 }
 0x2a3   : > { %v1933_v26 = vadd.f32 %v1932_v25, %v7593_v15  ;;  %v7605_v30 = vpop.f32.mrf.mxu0  ;;  %v2044_v24 = vadd.f32 %v2043_v50, %v1931_v28 }
 0x2a4   : > { %v1934_v31 = vpop.f32.mrf.mxu1 }
 0x2a5   : > { %v1935_v33 = vadd.f32 %v1934_v31, %v7599_v19  ;;  %v7608_v34 = vpop.f32.mrf.mxu0  ;;  %v2046_v35 = vadd.f32 %v2045_v38, %v1933_v26  ;;  %v2316_v10 = vmax.f32 %v2044_v24, 0.0 }
 0x2a6   : > { %v1936_v22 = vpop.f32.mrf.mxu1 }
 0x2a7   : > { %v2048_v58 = vadd.f32 %v2047_v60, %v1935_v33  ;;  %v1937_v36 = vadd.f32 %v1936_v22, %v7593_v15  ;;  %v7611_v42 = vpop.f32.mrf.mxu0  ;;  %v2317_v45 = vmax.f32 %v2046_v35, 0.0 }
 0x2a8   : > { %v1940_v39 = vpop.f32.mrf.mxu1 }
 0x2a9   : > { %v2050_v40 = vadd.f32 %v2049_v61, %v1937_v36  ;;  %v2319_v41 = vmax.f32 %v2048_v58, 0.0  ;;  %v1941_v32 = vadd.f32 %v1940_v39, %v7599_v19  ;;  %v7616_v56 = vpop.f32.mrf.mxu0 }
 0x2aa   : > { %v1942_v43 = vpop.f32.mrf.mxu1 }
 0x2ab   : > { %v2320_v13 = vmax.f32 %v2050_v40, 0.0  ;;  %v1943_v47 = vadd.f32 %v1942_v43, %v7593_v15  ;;  %v2364_v55 = vpack.c.bf16 %v2319_v41, %v2316_v10  ;;  %v2054_v46 = vadd.f32 %v2053_v62, %v1941_v32  ;;  %v7619_v51 = vpop.f32.mrf.mxu0 }
 0x2ac   : > { %v1944_v5 = vpop.f32.mrf.mxu1 }
 0x2ad   : > { %v1945_v48 = vadd.f32 %v1944_v5, %v7599_v19  ;;  %v2365_v53 = vpack.c.bf16 %v2320_v13, %v2317_v45  ;;  %v2056_v37 = vadd.f32 %v2055_v63, %v1943_v47  ;;  %v2322_v38 = vmax.f32 %v2054_v46, 0.0  ;;  %v7624_v20 = vpop.f32.mrf.mxu0 }
 0x2ae   : > { %v1946_v44 = vpop.f32.mrf.mxu1 }
 0x2af   : > { %v2058_v57 = vadd.f32 %v2057_v1, %v1945_v48  ;;  %v1947_v59 = vadd.f32 %v1946_v44, %v7593_v15  ;;  %2619 = vmatprep.mubr.bf16.mxu0 %v2365_v53  ;;  %v2323_v29 = vmax.f32 %v2056_v37, 0.0  ;;  %v7629_v35 = vpop.f32.mrf.mxu0 }
 0x2b0   : > { %v1950_v16 = vpop.f32.mrf.mxu1  ;;  %2620 = vmatmul.mubr.bf16.vlgmr.msra.gmra.mxu0 %v2364_v55 }
 0x2b1   : > { %v2060_v18 = vadd.f32 %v2059_v4, %v1947_v59  ;;  %v2325_v54 = vmax.f32 %v2058_v57, 0.0  ;;  %v1951_v60 = vadd.f32 %v1950_v16, %v7599_v19 }
 0x2b2   : > { %v1952_v27 = vpop.f32.mrf.mxu1 }
 0x2b3   : > { %v2326_v49 = vmax.f32 %v2060_v18, 0.0  ;;  %v1953_v50 = vadd.f32 %v1952_v27, %v7593_v15  ;;  %v2367_v25 = vpack.c.bf16 %v2325_v54, %v2322_v38  ;;  %v2064_v31 = vadd.f32 %v7576_v7, %v1951_v60  ;;  %v7634_v7 = vpop.f32.mrf.mxu0 }
 0x2b4   : > { %v1954_v61 = vpop.f32.mrf.mxu1 }
 0x2b5   : > { %v1955_v63 = vadd.f32 %v1954_v61, %v7599_v19  ;;  %v2368_v1 = vpack.c.bf16 %v2326_v49, %v2323_v29  ;;  %v2066_v4 = vadd.f32 %v2065_v8, %v1953_v50  ;;  %v2328_v41 = vmax.f32 %v2064_v31, 0.0  ;;  %v2105_v55 = vpop.f32.mrf.mxu0 }
 0x2b6   : > { %v1956_v62 = vpop.f32.mrf.mxu1 }
 0x2b7   : > { %v2068_v26 = vadd.f32 %v2067_v9, %v1955_v63  ;;  %v1957_v28 = vadd.f32 %v1956_v62, %v7593_v15  ;;  %2627 = vmatprep.mubr.bf16.mxu0 %v2368_v1  ;;  %v2329_v24 = vmax.f32 %v2066_v4, 0.0  ;;  %v2107_v27 = vpop.f32.mrf.mxu0 }
 0x2b8   : > { %v1960_v33 = vpop.f32.mrf.mxu1  ;;  %2628 = vmatmul.mubr.bf16.gmra.mxu0 %v2367_v25 }
 0x2b9   : > { %v2070_v22 = vadd.f32 %v7578_v11, %v1957_v28  ;;  %v2331_v58 = vmax.f32 %v2068_v26, 0.0  ;;  %v1961_v8 = vadd.f32 %v1960_v33, %v7599_v19  ;;  %v2109_v63 = vpop.f32.mrf.mxu0 }
 0x2ba   : > { %v1962_v36 = vpop.f32.mrf.mxu1 }
 0x2bb   : > { %v2332_v39 = vmax.f32 %v2070_v22, 0.0  ;;  %v1963_v40 = vadd.f32 %v1962_v36, %v7593_v15  ;;  %v2370_v47 = vpack.c.bf16 %v2331_v58, %v2328_v41  ;;  %v2074_v5 = vadd.f32 %v7580_v12, %v1961_v8  ;;  %v2113_v22 = vpop.f32.mrf.mxu0 }
 0x2bc   : > { %v1964_v9 = vpop.f32.mrf.mxu1 }
 0x2bd   : > { %v1965_v43 = vadd.f32 %v1964_v9, %v7599_v19  ;;  %v2371_v45 = vpack.c.bf16 %v2332_v39, %v2329_v24  ;;  %v2076_v11 = vadd.f32 %v7582_v52, %v1963_v40  ;;  %v2334_v16 = vmax.f32 %v2074_v5, 0.0  ;;  %v2115_v8 = vpop.f32.mrf.mxu0 }
 0x2be   : > { %v1966_v13 = vpop.f32.mrf.mxu1 }
 0x2bf   : > { %v2078_v10 = vadd.f32 %v7589_v2, %v1965_v43  ;;  %v1967_v32 = vadd.f32 %v1966_v13, %v7593_v15  ;;  %2635 = vmatprep.mubr.bf16.mxu0 %v2371_v45  ;;  %v2335_v57 = vmax.f32 %v2076_v11, 0.0  ;;  %v2117_v5 = vpop.f32.mrf.mxu0 }
 0x2c0   : > { %v1970_v48 = vpop.f32.mrf.mxu1  ;;  %2636 = vmatmul.mubr.bf16.gmra.mxu0 %v2370_v47 }
 0x2c1   : > { %v2080_v53 = vadd.f32 %v7595_v17, %v1967_v32  ;;  %v2337_v44 = vmax.f32 %v2078_v10, 0.0  ;;  %v1971_v52 = vadd.f32 %v1970_v48, %v7599_v19 }
 0x2c2   : > { %v1972_v37 = vpop.f32.mrf.mxu1 }
 0x2c3   : > { %v2338_v59 = vmax.f32 %v2080_v53, 0.0  ;;  %v1973_v46 = vadd.f32 %v1972_v37, %v7593_v15  ;;  %v2373_v29 = vpack.c.bf16 %v2337_v44, %v2334_v16  ;;  %v2084_v38 = vadd.f32 %v7601_v23, %v1971_v52 }
 0x2c4   : > { %v1974_v2 = vpop.f32.mrf.mxu1 }
 0x2c5   : > { %v1975_v18 = vadd.f32 %v1974_v2, %v7599_v19  ;;  %v2374_v54 = vpack.c.bf16 %v2338_v59, %v2335_v57  ;;  %v2086_v49 = vadd.f32 %v7605_v30, %v1973_v46  ;;  %v2340_v28 = vmax.f32 %v2084_v38, 0.0  ;;  %v2119_v46 = vpop.f32.mrf.mxu0 }
 0x2c6   : > { %v1976_v12 = vpop.f32.mrf.mxu1 }
 0x2c7   : > { %v2088_v17 = vadd.f32 %v7608_v34, %v1975_v18  ;;  %v1977_v50 = vadd.f32 %v1976_v12, %v7593_v15  ;;  %2643 = vmatprep.mubr.bf16.mxu0 %v2374_v54  ;;  %v2341_v25 = vmax.f32 %v2086_v49, 0.0 }
 0x2c8   : > { %v1980_v60 = vpop.f32.mrf.mxu1  ;;  %2644 = vmatmul.mubr.bf16.gmra.mxu0 %v2373_v29 }
 0x2c9   : > { %v2090_v61 = vadd.f32 %v7611_v42, %v1977_v50  ;;  %v2343_v1 = vmax.f32 %v2088_v17, 0.0  ;;  %v1981_v30 = vadd.f32 %v1980_v60, %v7599_v19  ;;  %v5865_v17 = vpop.f32.mrf.mxu0 }
 0x2ca   : > { %v1982_v62 = vpop.f32.mrf.mxu1 }
 0x2cb   : > { %v2344_v4 = vmax.f32 %v2090_v61, 0.0  ;;  %v1983_v26 = vadd.f32 %v1982_v62, %v7593_v15  ;;  %v2376_v58 = vpack.c.bf16 %v2343_v1, %v2340_v28  ;;  %v2094_v39 = vadd.f32 %v7616_v56, %v1981_v30 }
 0x2cc   : > { %v1984_v34 = vpop.f32.mrf.mxu1 }
 0x2cd   : > { %v1985_v31 = vadd.f32 %v1984_v34, %v7599_v19  ;;  %v2377_v33 = vpack.c.bf16 %v2344_v4, %v2341_v25  ;;  %v2096_v36 = vadd.f32 %v7619_v51, %v1983_v26  ;;  %v2346_v11 = vmax.f32 %v2094_v39, 0.0  ;;  %v2253_v4 = vpop.f32.mrf.mxu0 }
 0x2ce   : > { %v1986_v23 = vpop.f32.mrf.mxu1  ;;  %v7668_v25 = vrot.slane %v7587_v14, %v7410_v21 }
 0x2cf   : > { %v2098_v42 = vadd.f32 %v7624_v20, %v1985_v31  ;;  %v1987_v24 = vadd.f32 %v1986_v23, %v7593_v15  ;;  %2651 = vmatprep.mubr.bf16.mxu0 %v2377_v33  ;;  %v2347_v45 = vmax.f32 %v2096_v36, 0.0 }
 0x2d0   : > { %v1990_v40 = vpop.f32.mrf.mxu1  ;;  %2652 = vmatmul.mubr.bf16.gmra.mxu0 %v2376_v58  ;;  %v5866_v58 = vpop.f32.mrf.mxu0 }
 0x2d1   : > { %v2100_v41 = vadd.f32 %v7629_v35, %v1987_v24  ;;  %v2349_v9 = vmax.f32 %v2098_v42, 0.0  ;;  %v1991_v51 = vadd.f32 %v1990_v40, %v7599_v19 }
 0x2d2   : > { %v1992_v43 = vpop.f32.mrf.mxu1  ;;  %v2256_v40 = vpop.f32.mrf.mxu0 }
 0x2d3   : > { %v2350_v13 = vmax.f32 %v2100_v41, 0.0  ;;  %v1993_v47 = vadd.f32 %v1992_v43, %v7593_v15  ;;  %v2379_v48 = vpack.c.bf16 %v2349_v9, %v2346_v11  ;;  %v2104_v37 = vadd.f32 %v7634_v7, %v1991_v51 }
 0x2d4   : > { %v1994_v20 = vpop.f32.mrf.mxu1  ;;  %v5869_v11 = vpop.f32.mrf.mxu0 }
 0x2d5   : > { %v1995_v10 = vadd.f32 %v1994_v20, %v7599_v19  ;;  %v2380_v32 = vpack.c.bf16 %v2350_v13, %v2347_v45  ;;  %v2106_v53 = vadd.f32 %v2105_v55, %v1993_v47  ;;  %v2352_v12 = vmax.f32 %v2104_v37, 0.0 }
 0x2d6   : > { %v1996_v56 = vpop.f32.mrf.mxu1 }
 0x2d7   : > { %v2108_v44 = vadd.f32 %v2107_v27, %v1995_v10  ;;  %v1997_v35 = vadd.f32 %v1996_v56, %v7593_v15  ;;  %2659 = vmatprep.mubr.bf16.mxu0 %v2380_v32  ;;  %v2353_v2 = vmax.f32 %v2106_v53, 0.0 }
 0x2d8   : > { %v2000_v57 = vpop.f32.mrf.mxu1  ;;  %2660 = vmatmul.mubr.bf16.gmra.mxu0 %v2379_v48  ;;  %v2269_v48 = vpop.f32.mrf.mxu0 }
 0x2d9   : > { %v2110_v59 = vadd.f32 %v2109_v63, %v1997_v35  ;;  %v2355_v16 = vmax.f32 %v2108_v44, 0.0  ;;  %v2001_v29 = vadd.f32 %v2000_v57, %v7599_v19 }
 0x2da   : > { %v2002_v52 = vpop.f32.mrf.mxu1 }
 0x2db   : > { %v2356_v18 = vmax.f32 %v2110_v59, 0.0  ;;  %v2003_v54 = vadd.f32 %v2002_v52, %v7593_v15  ;;  %v2382_v7 = vpack.c.bf16 %v2355_v16, %v2352_v12  ;;  %v2114_v63 = vadd.f32 %v2113_v22, %v2001_v29  ;;  %v5870_v16 = vpop.f32.mrf.mxu0 }
 0x2dc   : > { %v2004_v55 = vpop.f32.mrf.mxu1 }
 0x2dd   : > { %v2005_v27 = vadd.f32 %v2004_v55, %v7599_v19  ;;  %v2383_v49 = vpack.c.bf16 %v2356_v18, %v2353_v2  ;;  %v2116_v38 = vadd.f32 %v2115_v8, %v2003_v54  ;;  %v2358_v31 = vmax.f32 %v2114_v63, 0.0  ;;  %v2272_v55 = vpop.f32.mrf.mxu0 }
 0x2de   : > { %v2006_v50 = vpop.f32.mrf.mxu1 }
 0x2df   : > { %v2118_v60 = vadd.f32 %v2117_v5, %v2005_v27  ;;  %v2007_v61 = vadd.f32 %v2006_v50, %v7593_v15  ;;  %2667 = vmatprep.mubr.bf16.mxu0 %v2383_v49  ;;  %v2359_v28 = vmax.f32 %v2116_v38, 0.0 }
 0x2e0   : > { %v5607_v1 = vpop.f32.mrf.mxu1  ;;  %2668 = vmatmul.mubr.bf16.gmra.mxu0 %v2382_v7 }
 0x2e1   : > { %v2120_v62 = vadd.f32 %v2119_v46, %v2007_v61  ;;  %v2361_v26 = vmax.f32 %v2118_v60, 0.0  ;;  %v5873_v61 = vpop.f32.mrf.mxu0 }
 0x2e2   : > { %v5608_v19 = vpop.f32.mrf.mxu1 }
 0x2e3   : > { %v2362_v30 = vmax.f32 %v2120_v62, 0.0  ;;  %v5609_v34 = vadd.f32 %v5608_v19, %v5607_v1  ;;  %v2385_v36 = vpack.c.bf16 %v2361_v26, %v2358_v31 }
 0x2e4   : > { %v5610_v33 = vpop.f32.mrf.mxu1 }
 0x2e5   : > { %v2157_v23 = vadd.f32 %v5609_v34, %v7668_v25  ;;  %v2386_v15 = vpack.c.bf16 %v2362_v30, %v2359_v28  ;;  %v2285_v28 = vpop.f32.mrf.mxu0 }
 0x2e6   : > { %v5611_v22 = vpop.f32.mrf.mxu1 }
 0x2e7   : > { %v5612_v42 = vadd.f32 %v5611_v22, %v5610_v33  ;;  %2675 = vmatprep.mubr.bf16.mxu0 %v2386_v15  ;;  %v2254_v14 = vadd.f32 %v2253_v4, %v2157_v23  ;;  %v5874_v22 = vpop.f32.mrf.mxu0 }
 0x2e8   : > { %v5613_v24 = vpop.f32.mrf.mxu1  ;;  %2676 = vmatmul.mubr.bf16.gmra.mxu0 %v2385_v36 }
 0x2e9   : > { %v2160_v39 = vadd.f32 %v5612_v42, %v7668_v25  ;;  %v2318_v45 = vmax.f32 %v2254_v14, 0.0  ;;  %v6304_v14 = vld [vmem:[#allocation14 + $0xb0] ss:$12 sps:$4 sm:$0xff]  }
 0x2ea   : > { %v5614_v41 = vpop.f32.mrf.mxu1  ;;  %5911 = vmatprep.subr.bf16.mxu0 %v6304_v14 }
 0x2eb   : > { %v2257_v8 = vadd.f32 %v2256_v40, %v2160_v39  ;;  %v5615_v9 = vadd.f32 %v5614_v41, %v5613_v24  ;;  %5912 = vmatpush3.bf16.msra.mxu0 %v6304_v14  ;;  %v6315_v14 = vld [vmem:[#allocation14 + $0x78] ss:$12 sps:$4 sm:$0xff]  }
 0x2ec   : > { %v5616_v43 = vpop.f32.mrf.mxu1 }
 0x2ed   : > { %v2165_v13 = vadd.f32 %v5615_v9, %v7668_v25  ;;  %v2321_v47 = vmax.f32 %v2257_v8, 0.0  ;;  %v2288_v8 = vpop.f32.mrf.mxu0 }
 0x2ee   : > { %v5617_v51 = vpop.f32.mrf.mxu1 }
 0x2ef   : > { %v5618_v20 = vadd.f32 %v5617_v51, %v5616_v43  ;;  %v2366_v10 = vpack.c.bf16 %v2321_v47, %v2318_v45  ;;  %v2262_v5 = vadd.f32 %v5865_v17, %v2165_v13 }
 0x2f0   : > { %v5619_v32 = vpop.f32.mrf.mxu1 }
 0x2f1   : > { %v2168_v56 = vadd.f32 %v5618_v20, %v7668_v25  ;;  %5895 = vmatprep.mubr.bf16.mxu1 %v2366_v10  ;;  %v2324_v57 = vmax.f32 %v2262_v5, 0.0  ;;  %v5877_v20 = vpop.f32.mrf.mxu0 }
 0x2f2   : > { %v5620_v53 = vpop.f32.mrf.mxu1 }
 0x2f3   : > { %v2265_v44 = vadd.f32 %v5866_v58, %v2168_v56  ;;  %v5621_v35 = vadd.f32 %v5620_v53, %v5619_v32  ;;  %v6305_v56 = vld [vmem:[#allocation14 + $0x98] ss:$12 sps:$4 sm:$0xff]  }
 0x2f4   : > { %v5622_v37 = vpop.f32.mrf.mxu1  ;;  %5913 = vmatprep.subr.bf16.mxu0 %v6305_v56 }
 0x2f5   : > { %v2327_v59 = vmax.f32 %v2265_v44, 0.0  ;;  %v2173_v46 = vadd.f32 %v5621_v35, %v7668_v25  ;;  %v2301_v35 = vpop.f32.mrf.mxu0  ;;  %5914 = vmatpush3.bf16.msra.mxu0 %v6305_v56 }
 0x2f6   : > { %v5623_v52 = vpop.f32.mrf.mxu1 }
 0x2f7   : > { %v2369_v2 = vpack.c.bf16 %v2327_v59, %v2324_v57  ;;  %v5624_v18 = vadd.f32 %v5623_v52, %v5622_v37  ;;  %v2270_v12 = vadd.f32 %v2269_v48, %v2173_v46 }
 0x2f8   : > { %v5625_v54 = vpop.f32.mrf.mxu1 }
 0x2f9   : > { %v2176_v29 = vadd.f32 %v5624_v18, %v7668_v25  ;;  %5896 = vmatmul.mubr.bf16.vlgmr.msra.gmra.mxu1 %v2369_v2  ;;  %v2330_v7 = vmax.f32 %v2270_v12, 0.0  ;;  %v5878_v18 = vpop.f32.mrf.mxu0 }
 0x2fa   : > { %v5626_v27 = vpop.f32.mrf.mxu1 }
 0x2fb   : > { %v2273_v49 = vadd.f32 %v2272_v55, %v2176_v29  ;;  %v5627_v17 = vadd.f32 %v5626_v27, %v5625_v54  ;;  %v6306_v55 = vld [vmem:[#allocation14 + $0x80] ss:$12 sps:$4 sm:$0xff]  }
 0x2fc   : > { %v5628_v50 = vpop.f32.mrf.mxu1  ;;  %5915 = vmatprep.subr.bf16.mxu0 %v6306_v55 }
 0x2fd   : > { %v2181_v38 = vadd.f32 %v5627_v17, %v7668_v25  ;;  %v2333_v60 = vmax.f32 %v2273_v49, 0.0  ;;  %5916 = vmatpush3.bf16.msra.mxu0 %v6306_v55 }
 0x2fe   : > { %v5629_v63 = vpop.f32.mrf.mxu1 }
 0x2ff   : > { %v5630_v1 = vadd.f32 %v5629_v63, %v5628_v50  ;;  %v2372_v62 = vpack.c.bf16 %v2333_v60, %v2330_v7  ;;  %v2278_v26 = vadd.f32 %v5869_v11, %v2181_v38  ;;  %v2304_v50 = vpop.f32.mrf.mxu0 }
 0x300   : > { %v5631_v4 = vpop.f32.mrf.mxu1 }
 0x301   : > { %v2184_v19 = vadd.f32 %v5630_v1, %v7668_v25  ;;  %5899 = vmatprep.mubr.bf16.mxu1 %v2372_v62  ;;  %v2336_v23 = vmax.f32 %v2278_v26, 0.0 }
 0x302   : > { %v5632_v30 = vpop.f32.mrf.mxu1 }
 0x303   : > { %v2281_v34 = vadd.f32 %v5870_v16, %v2184_v19  ;;  %v5633_v31 = vadd.f32 %v5632_v30, %v5631_v4 }
 0x304   : > { %v5634_v33 = vpop.f32.mrf.mxu1 }
 0x305   : > { %v2189_v15 = vadd.f32 %v5633_v31, %v7668_v25  ;;  %v2339_v58 = vmax.f32 %v2281_v34, 0.0 }
 0x306   : > { %v5635_v36 = vpop.f32.mrf.mxu1 }
 0x307   : > { %v5636_v42 = vadd.f32 %v5635_v36, %v5634_v33  ;;  %v2375_v24 = vpack.c.bf16 %v2339_v58, %v2336_v23  ;;  %v2286_v40 = vadd.f32 %v2285_v28, %v2189_v15  ;;  %v6307_v28 = vld [vmem:[#allocation14 + $0x68] ss:$12 sps:$4 sm:$0xff]   ;;  %v6310_v15 = vld [vmem:[#allocation14 + $0xac] ss:$12 sps:$4 sm:$0xff]   ;;  %v6311_v36 = vld [vmem:[#allocation14 + $0x50] ss:$12 sps:$4 sm:$0xff]  }
 0x308   : > { %v5637_v39 = vpop.f32.mrf.mxu1  ;;  %5917 = vmatprep.subr.bf16.mxu0 %v6307_v28  ;;  %v6308_v58 = vld [vmem:[#allocation14 + $0xa8] ss:$12 sps:$4 sm:$0xff]   ;;  %3016 = vmatprep.subr.bf16.mxu1 %v6310_v15 }
 0x309   : > { %v2192_v41 = vadd.f32 %v5636_v42, %v7668_v25  ;;  %5900 = vmatmul.mubr.bf16.gmra.mxu1 %v2375_v24  ;;  %v2342_v47 = vmax.f32 %v2286_v40, 0.0  ;;  %5918 = vmatpush3.bf16.msra.mxu0 %v6307_v28  ;;  %v6314_v42 = vld [vmem:[#allocation14 + $0x94] ss:$12 sps:$4 sm:$0xff]   ;;  %v6312_v24 = vld [vmem:[#allocation14 + $0x90] ss:$12 sps:$4 sm:$0xff]   ;;  %v2782_v15 = vld [vmem:[%s7323_s13 + $0x8] sm:$0xff] }
 0x30a   : > { %v5638_v9 = vpop.f32.mrf.mxu1  ;;  %3017 = vmatpush1.bf16.msra.mxu1 %v6308_v58  ;;  %5919 = vmatprep.subr.bf16.mxu0 %v6311_v36  ;;  %v6321_v40 = vld [vmem:[#allocation14 + $0x64] ss:$12 sps:$4 sm:$0xff]   ;;  %v2784_v28 = vld [vmem:[%s7323_s13 + $0x18] sm:$0xff] }
 0x30b   : > { %v2289_v43 = vadd.f32 %v2288_v8, %v2192_v41  ;;  %v5639_v45 = vadd.f32 %v5638_v9, %v5637_v39  ;;  %3018 = vmatprep.subr.bf16.mxu1 %v6314_v42  ;;  %v6318_v39 = vld [vmem:[#allocation14 + $0x38] ss:$12 sps:$4 sm:$0xff]   ;;  %v6319_v41 = vld [vmem:[#allocation14 + $0x60] ss:$12 sps:$4 sm:$0xff]  }
 0x30c   : > { %v5640_v13 = vpop.f32.mrf.mxu1  ;;  %v6325_v8 = vld [vmem:[#allocation14 + $0x20] ss:$12 sps:$4 sm:$0xff]  }
 0x30d   : > { %v2197_v11 = vadd.f32 %v5639_v45, %v7668_v25  ;;  %v2345_v51 = vmax.f32 %v2289_v43, 0.0  ;;  %5920 = vmatpush3.bf16.msra.mxu0 %v6311_v36  ;;  %v6324_v9 = vld [vmem:[#allocation14 + $0x4c] ss:$12 sps:$4 sm:$0xff]   ;;  %v6322_v43 = vld [vmem:[#allocation14 + $0x48] ss:$12 sps:$4 sm:$0xff]  }
 0x30e   : > { %v5641_v10 = vpop.f32.mrf.mxu1  ;;  %3019 = vmatpush1.bf16.msra.mxu1 %v6312_v24  ;;  %5921 = vmatprep.subr.bf16.mxu0 %v6318_v39  ;;  %v6328_v45 = vld [vmem:[#allocation14 + $0x34] ss:$12 sps:$4 sm:$0xff]  }
 0x30f   : > { %v5642_v32 = vadd.f32 %v5641_v10, %v5640_v13  ;;  %v2378_v5 = vpack.c.bf16 %v2345_v51, %v2342_v47  ;;  %v2294_v53 = vadd.f32 %v5873_v61, %v2197_v11  ;;  %v6326_v13 = vld [vmem:[#allocation14 + $0x30] ss:$12 sps:$4 sm:$0xff]   ;;  %v6329_v11 = vld [vmem:[#allocation14 + $0x18] ss:$12 sps:$4 sm:$0xff]   ;;  %v6333_v10 = vld [vmem:[#allocation14] ss:$12 sps:$4 sm:$0xff]  }
 0x310   : > { %v5643_v48 = vpop.f32.mrf.mxu1  ;;  %v6331_v47 = vld [vmem:[#allocation14 + $0x1c] ss:$12 sps:$4 sm:$0xff]   ;;  %v6335_v51 = vld [vmem:[#allocation14 + $0x4] ss:$12 sps:$4 sm:$0xff]  }
 0x311   : > { %v2200_v44 = vadd.f32 %v5642_v32, %v7668_v25  ;;  %5903 = vmatprep.mubr.bf16.mxu1 %v2378_v5  ;;  %v2348_v16 = vmax.f32 %v2294_v53, 0.0  ;;  %5922 = vmatpush3.bf16.msra.mxu0 %v6318_v39 }
 0x312   : > { %v5644_v37 = vpop.f32.mrf.mxu1  ;;  %5923 = vmatprep.subr.bf16.mxu0 %v6325_v8 }
 0x313   : > { %v2297_v57 = vadd.f32 %v5874_v22, %v2200_v44  ;;  %v5645_v59 = vadd.f32 %v5644_v37, %v5643_v48 }
 0x314   : > { %v5646_v46 = vpop.f32.mrf.mxu1 }
 0x315   : > { %v2205_v52 = vadd.f32 %v5645_v59, %v7668_v25  ;;  %v2351_v2 = vmax.f32 %v2297_v57, 0.0  ;;  %5924 = vmatpush3.bf16.msra.mxu0 %v6325_v8  ;;  %v6362_v57 = vld [vmem:[#allocation15 + $0x22c] ss:$12 sps:$4 sm:$0xff]  }
 0x316   : > { %v5647_v54 = vpop.f32.mrf.mxu1 }
 0x317   : > { %v5648_v12 = vadd.f32 %v5647_v54, %v5646_v46  ;;  %v2381_v29 = vpack.c.bf16 %v2351_v2, %v2348_v16  ;;  %v2302_v49 = vadd.f32 %v2301_v35, %v2205_v52  ;;  %v6338_v35 = vld [vmem:[#allocation15 + $0xac] ss:$12 sps:$4 sm:$0xff]  }
 0x318   : > { %v5649_v27 = vpop.f32.mrf.mxu1 }
 0x319   : > { %v2208_v17 = vadd.f32 %v5648_v12, %v7668_v25  ;;  %5904 = vmatmul.mubr.bf16.gmra.mxu1 %v2381_v29  ;;  %v2354_v63 = vmax.f32 %v2302_v49, 0.0 }
 0x31a   : > { %v5650_v7 = vpop.f32.mrf.mxu1 }
 0x31b   : > { %v2305_v38 = vadd.f32 %v2304_v50, %v2208_v17  ;;  %v5651_v60 = vadd.f32 %v5650_v7, %v5649_v27  ;;  %v2783_v7 = vld [vmem:[%s7323_s13 + $0x10] sm:$0xff] }
 0x31c   : > { %v5652_v61 = vpop.f32.mrf.mxu1 }
 0x31d   : > { %v2213_v1 = vadd.f32 %v5651_v60, %v7668_v25  ;;  %v2357_v62 = vmax.f32 %v2305_v38, 0.0  ;;  %v7708_v38 = vstv %s2797_s22  ;;  %s6812_s22 = scalar_lea.vmem %s6811_s9, 4096 }
 0x31e   : > { %v5653_v4 = vpop.f32.mrf.mxu1  ;;  %v2802_v42 = vmul.f32 %v7708_v38, %v2784_v28  ;;  %p6814_p0 = scmp.lt.s32.totalorder %s6812_s22, %s6806_s23 }
 0x31f   : > { %v5654_v26 = vadd.f32 %v5653_v4, %v5652_v61  ;;  %v2384_v19 = vpack.c.bf16 %v2357_v62, %v2354_v63  ;;  %v2310_v30 = vadd.f32 %v5877_v20, %v2213_v1  ;;  %v6332_v20 = vld [vmem:[#allocation14 + $0x8] ss:$12 sps:$4 sm:$0xff]   ;;  %v7710_v61 = vld [vmem:[#allocation12] ss:$0 sm:$0xff]  ;;  %v2801_v4 = vmul.f32 %v7708_v38, %v2783_v7 }
 0x320   : > { %5925 = vmatprep.subr.bf16.mxu0 %v6332_v20  ;;  %v2781_v63 = vld [vmem:[%s7323_s13] sm:$0xff]  ;;  %p6815_p3 = por %p6814_p0, %p6813_p6 }
 0x321   : > { %v2216_v34 = vadd.f32 %v5654_v26, %v7668_v25  ;;  %5907 = vmatprep.mubr.bf16.mxu1 %v2384_v19  ;;  %v2360_v33 = vmax.f32 %v2310_v30, 0.0  ;;  %v6317_v25 = vld [vmem:[#allocation14 + $0x7c] ss:$12 sps:$4 sm:$0xff]   ;;  %5926 = vmatpush3.bf16.msra.mxu0 %v6332_v20 }
 0x322   : > { %3020 = vmatprep.subr.bf16.mxu1 %v6317_v25  ;;  %3908 = vmatprep.subr.bf16.mxu0 %v6362_v57  ;;  %v6360_v20 = vld [vmem:[#allocation15 + $0x228] ss:$12 sps:$4 sm:$0xff]   ;;  %p6816_p7 = pnand %p6815_p3, %p6809_p4 }
 0x323   : > { %v2313_v31 = vadd.f32 %v5878_v18, %v2216_v34  ;;  %3021 = vmatpush1.bf16.msra.mxu1 %v6315_v14  ;;  %v6374_v7 = vld [vmem:[#allocation15 + $0x1fc] ss:$12 sps:$4 sm:$0xff]  }
 0x324   : > { %3022 = vmatprep.subr.bf16.mxu1 %v6321_v40 }
 0x325   : > { %v2363_v23 = vmax.f32 %v2313_v31, 0.0 }
 0x327   : > { %v2387_v22 = vpack.c.bf16 %v2363_v23, %v2360_v33  ;;  %3023 = vmatpush1.bf16.msra.mxu1 %v6319_v41  ;;  %v2799_v33 = vmul.f32 %v7708_v38, %v2781_v63  ;;  %v2800_v41 = vmul.f32 %v7708_v38, %v2782_v15 }
 0x328   : > { %3024 = vmatprep.subr.bf16.mxu1 %v6324_v9 }
 0x329   : > { %5908 = vmatmul.mubr.bf16.gmra.mxu1 %v2387_v22 }
 0x32a   : > { %3048 = vmatprep.mubr.bf16.mxu1 %v6965_v6 }
 0x32b   : > { %3025 = vmatpush1.bf16.msra.mxu1 %v6322_v43 }
 0x32c   : > { %3026 = vmatprep.subr.bf16.mxu1 %v6328_v45 }
 0x32f   : > { %3027 = vmatpush1.bf16.msra.mxu1 %v6326_v13 }
 0x330   : > { %3028 = vmatprep.subr.bf16.mxu1 %v6331_v47 }
 0x333   : > { %3029 = vmatpush1.bf16.msra.mxu1 %v6329_v11 }
 0x334   : > { %3030 = vmatprep.subr.bf16.mxu1 %v6335_v51  ;;  %v6336_v51 = vld [vmem:[#allocation15 + $0xa8] ss:$12 sps:$4 sm:$0xff]  }
 0x337   : > { %3031 = vmatpush1.bf16.msra.mxu1 %v6333_v10 }
 0x338   : > { %3795 = vmatprep.subr.bf16.mxu1 %v6338_v35 }
 0x370   : > { %v5687_v32 = vpop.f32.mrf.mxu0 }
 0x372   : > { %v5688_v5 = vpop.f32.mrf.mxu0 }
 0x373   : > { %v5689_v60 = vadd.f32 %v5688_v5, %v5687_v32  ;;  %v2787_v5 = vld [vmem:[%s7323_s13 + $0x30] sm:$0xff] }
 0x374   : > { %v5690_v56 = vpop.f32.mrf.mxu0  ;;  %v2805_v57 = vmul.f32 %v7708_v38, %v2787_v5  ;;  %v2791_v5 = vld [vmem:[%s7323_s13 + $0x50] sm:$0xff] }
 0x375   : > { %v2622_v31 = vadd.f32 %v5689_v60, %v7710_v61 }
 0x376   : > { %v5691_v48 = vpop.f32.mrf.mxu0 }
 0x377   : > { %v5692_v30 = vadd.f32 %v5691_v48, %v5690_v56  ;;  %v6341_v56 = vld [vmem:[#allocation15 + $0x94] ss:$12 sps:$4 sm:$0xff]  }
 0x378   : > { %v5693_v53 = vpop.f32.mrf.mxu0  ;;  %v6368_v48 = vld [vmem:[#allocation15 + $0x214] ss:$12 sps:$4 sm:$0xff]  }
 0x379   : > { %v2625_v40 = vadd.f32 %v5692_v30, %v7710_v61 }
 0x37a   : > { %v5694_v44 = vpop.f32.mrf.mxu0 }
 0x37b   : > { %v5695_v17 = vadd.f32 %v5694_v44, %v5693_v53  ;;  %v2785_v44 = vld [vmem:[%s7323_s13 + $0x20] sm:$0xff] }
 0x37c   : > { %v5696_v37 = vpop.f32.mrf.mxu0  ;;  %v2803_v63 = vmul.f32 %v7708_v38, %v2785_v44  ;;  %v2809_v44 = vmul.f32 %v7708_v38, %v2791_v5 }
 0x37d   : > { %v2630_v62 = vadd.f32 %v5695_v17, %v7710_v61  ;;  %v6344_v17 = vld [vmem:[#allocation15 + $0x7c] ss:$12 sps:$4 sm:$0xff]  }
 0x37e   : > { %v5697_v59 = vpop.f32.mrf.mxu0 }
 0x37f   : > { %v5698_v1 = vadd.f32 %v5697_v59, %v5696_v37  ;;  %v2788_v59 = vld [vmem:[%s7323_s13 + $0x38] sm:$0xff] }
 0x380   : > { %v7687_v46 = vpop.f32.mrf.mxu0 }
 0x381   : > { %v2633_v36 = vadd.f32 %v5698_v1, %v7710_v61 }
 0x382   : > { %v7689_v16 = vpop.f32.mrf.mxu0 }
 0x383   : > { %v5701_v53 = vadd.f32 %v7689_v16, %v7687_v46  ;;  %v6366_v46 = vld [vmem:[#allocation15 + $0x210] ss:$12 sps:$4 sm:$0xff]  }
 0x384   : > { %v7691_v52 = vpop.f32.mrf.mxu0 }
 0x385   : > { %v2638_v60 = vadd.f32 %v5701_v53, %v7710_v61 }
 0x386   : > { %v7693_v2 = vpop.f32.mrf.mxu0 }
 0x388   : > { %v5705_v18 = vpop.f32.mrf.mxu0 }
 0x38a   : > { %v5706_v54 = vpop.f32.mrf.mxu0 }
 0x38b   : > { %v5707_v47 = vadd.f32 %v5706_v54, %v5705_v18  ;;  %v6339_v18 = vld [vmem:[#allocation15 + $0x90] ss:$12 sps:$4 sm:$0xff]  }
 0x38c   : > { %v7695_v12 = vpop.f32.mrf.mxu0 }
 0x38d   : > { %v2646_v37 = vadd.f32 %v5707_v47, %v7710_v61 }
 0x38e   : > { %v7697_v29 = vpop.f32.mrf.mxu0 }
 0x38f   : > { %v5710_v35 = vadd.f32 %v7697_v29, %v7695_v12  ;;  %v5704_v12 = vadd.f32 %v7693_v2, %v7691_v52  ;;  %v6372_v52 = vld [vmem:[#allocation15 + $0x1f8] ss:$12 sps:$4 sm:$0xff]  }
 0x390   : > { %v7699_v55 = vpop.f32.mrf.mxu0 }
 0x391   : > { %v2649_v30 = vadd.f32 %v5710_v35, %v7710_v61  ;;  %v6351_v35 = vld [vmem:[#allocation15 + $0x30] ss:$12 sps:$4 sm:$0xff]  }
 0x392   : > { %v7701_v27 = vpop.f32.mrf.mxu0 }
 0x394   : > { %v7703_v49 = vpop.f32.mrf.mxu0 }
 0x396   : > { %v7705_v50 = vpop.f32.mrf.mxu0 }
 0x398   : > { %v7715_v26 = vpop.f32.mrf.mxu0 }
 0x39a   : > { %v7727_v24 = vpop.f32.mrf.mxu0 }
 0x39c   : > { %v7738_v45 = vpop.f32.mrf.mxu0 }
 0x39e   : > { %v7743_v10 = vpop.f32.mrf.mxu0 }
 0x3a0   : > { %v7755_v16 = vpop.f32.mrf.mxu0 }
 0x3a2   : > { %v7765_v2 = vpop.f32.mrf.mxu0 }
 0x3b9   : > { %v5897_v19 = vpop.f32.mrf.mxu1 }
 0x3ba   : > { %v2727_v34 = vadd.f32 %v5897_v19, %v2630_v62  ;;  %v2806_v62 = vmul.f32 %v7708_v38, %v2788_v59  ;;  %v5716_v59 = vadd.f32 %v7705_v50, %v7703_v49 }
 0x3bb   : > { %v2718_v23 = vpop.f32.mrf.mxu1 }
 0x3bc   : > { %v2817_v58 = vadd.f32 %v2801_v4, %v2727_v34  ;;  %4895 = vst [vmem:[%s7722_s21 + $0x10] sm:$0xff] %v2727_v34  ;;  %v2719_v22 = vadd.f32 %v2718_v23, %v2622_v31  ;;  %v2786_v4 = vld [vmem:[%s7323_s13 + $0x28] sm:$0xff] }
 0x3bd   : > { %v5898_v25 = vpop.f32.mrf.mxu1  ;;  %v6342_v34 = vld [vmem:[#allocation15 + $0x78] ss:$12 sps:$4 sm:$0xff]  }
 0x3be   : > { %4879 = vst [vmem:[%s7730_s3 + $0x10] sm:$0xff] %v2817_v58  ;;  %v2815_v14 = vadd.f32 %v2799_v33, %v2719_v22  ;;  %4893 = vst [vmem:[%s7722_s21] sm:$0xff] %v2719_v22  ;;  %v2730_v39 = vadd.f32 %v5898_v25, %v2633_v36  ;;  %v6347_v33 = vld [vmem:[#allocation15 + $0x64] ss:$12 sps:$4 sm:$0xff]   ;;  %v2641_v22 = vadd.f32 %v5704_v12, %v7710_v61 }
 0x3bf   : > { %v2721_v8 = vpop.f32.mrf.mxu1  ;;  %v6380_v23 = vld [vmem:[#allocation15 + $0x1e4] ss:$12 sps:$4 sm:$0xff]   ;;  %v2804_v36 = vmul.f32 %v7708_v38, %v2786_v4  ;;  %v2657_v4 = vadd.f32 %v5716_v59, %v7710_v61 }
 0x3c0   : > { %4877 = vst [vmem:[%s7730_s3] sm:$0xff] %v2815_v14  ;;  %v2818_v9 = vadd.f32 %v2802_v42, %v2730_v39  ;;  %4896 = vst [vmem:[%s7722_s21 + $0x18] sm:$0xff] %v2730_v39  ;;  %v2722_v43 = vadd.f32 %v2721_v8, %v2625_v40  ;;  %v6345_v39 = vld [vmem:[#allocation15 + $0x60] ss:$12 sps:$4 sm:$0xff]  }
 0x3c1   : > { %v6378_v40 = vld [vmem:[#allocation15 + $0x1e0] ss:$12 sps:$4 sm:$0xff]  }
 0x3c2   : > { %4880 = vst [vmem:[%s7730_s3 + $0x18] sm:$0xff] %v2818_v9  ;;  %v2816_v13 = vadd.f32 %v2800_v41, %v2722_v43  ;;  %4894 = vst [vmem:[%s7722_s21 + $0x8] sm:$0xff] %v2722_v43  ;;  %v2832_v32 = vpack.c.bf16 %v2818_v9, %v2817_v58  ;;  %v7774_v41 = vpop.f32.mrf.mxu0  ;;  %v6350_v8 = vld [vmem:[#allocation15 + $0x4c] ss:$12 sps:$4 sm:$0xff]  }
 0x3c3   : > { %v6386_v9 = vld [vmem:[#allocation15 + $0x1cc] ss:$12 sps:$4 sm:$0xff]  }
 0x3c4   : > { %v2831_v11 = vpack.c.bf16 %v2816_v13, %v2815_v14  ;;  %4878 = vst [vmem:[%s7730_s3 + $0x8] sm:$0xff] %v2816_v13  ;;  %v5719_v13 = vadd.f32 %v7727_v24, %v7715_v26  ;;  %v2789_v26 = vld [vmem:[%s7323_s13 + $0x40] sm:$0xff]  ;;  %v5722_v24 = vadd.f32 %v7743_v10, %v7738_v45 }
 0x3c5   : > { %v2807_v10 = vmul.f32 %v7708_v38, %v2789_v26 }
 0x3c6   : > { %3049 = vmatmul.mubr.bf16.vlgmr.msra.gmra.mxu1 %v2831_v11  ;;  %5927 = vmatprep.mubr.bf16.mxu0 %v2831_v11  ;;  %v6348_v11 = vld [vmem:[#allocation15 + $0x48] ss:$12 sps:$4 sm:$0xff]   ;;  %v2662_v53 = vadd.f32 %v5719_v13, %v7710_v61  ;;  %v2665_v12 = vadd.f32 %v5722_v24, %v7710_v61  ;;  %v6369_v13 = vld [vmem:[#allocation15 + $0x150] ss:$12 sps:$4 sm:$0xff]  }
 0x3c7   : > { %5928 = vmatmul.mubr.bf16.vlgmr.msra.gmra.mxu0 %v2832_v32  ;;  %3058 = vmatprep.mubr.bf16.mxu1 %v6965_v6 }
 0x3c8   : > { %3796 = vmatpush1.bf16.msra.mxu1 %v6336_v51  ;;  %3909 = vmatpush1.bf16.msra.mxu0 %v6360_v20  ;;  %v6384_v51 = vld [vmem:[#allocation15 + $0x1c8] ss:$12 sps:$4 sm:$0xff]   ;;  %v7781_v20 = vpop.f32.mrf.mxu0 }
 0x3c9   : > { %v5901_v54 = vpop.f32.mrf.mxu1  ;;  %3797 = vmatprep.subr.bf16.mxu1 %v6341_v56  ;;  %3910 = vmatprep.subr.bf16.mxu0 %v6368_v48  ;;  %v6353_v56 = vld [vmem:[#allocation15 + $0x34] ss:$12 sps:$4 sm:$0xff]   ;;  %v5713_v48 = vadd.f32 %v7701_v27, %v7699_v55 }
 0x3ca   : > { %v2743_v29 = vadd.f32 %v5901_v54, %v2646_v37  ;;  %v5729_v37 = vpop.f32.mrf.mxu0  ;;  %v2792_v27 = vld [vmem:[%s7323_s13 + $0x58] sm:$0xff]  ;;  %v2790_v54 = vld [vmem:[%s7323_s13 + $0x48] sm:$0xff] }
 0x3cb   : > { %v2734_v1 = vpop.f32.mrf.mxu1  ;;  %v2654_v45 = vadd.f32 %v5713_v48, %v7710_v61  ;;  %v2794_v48 = vld [vmem:[%s7323_s13 + $0x68] sm:$0xff] }
 0x3cc   : > { %v2821_v19 = vadd.f32 %v2805_v57, %v2743_v29  ;;  %4899 = vst [vmem:[%s7722_s21 + $0x30] sm:$0xff] %v2743_v29  ;;  %v2735_v28 = vadd.f32 %v2734_v1, %v2638_v60  ;;  %3798 = vmatpush1.bf16.msra.mxu1 %v6339_v18  ;;  %3911 = vmatpush1.bf16.msra.mxu0 %v6366_v46  ;;  %v6356_v57 = vld [vmem:[#allocation15 + $0x1c] ss:$12 sps:$4 sm:$0xff]   ;;  %v6354_v60 = vld [vmem:[#allocation15 + $0x18] ss:$12 sps:$4 sm:$0xff]   ;;  %v5730_v49 = vpop.f32.mrf.mxu0 }
 0x3cd   : > { %v5902_v31 = vpop.f32.mrf.mxu1  ;;  %3799 = vmatprep.subr.bf16.mxu1 %v6344_v17  ;;  %3912 = vmatprep.subr.bf16.mxu0 %v6374_v7  ;;  %v2810_v29 = vmul.f32 %v7708_v38, %v2792_v27 }
 0x3ce   : > { %4883 = vst [vmem:[%s7730_s3 + $0x30] sm:$0xff] %v2821_v19  ;;  %v2819_v15 = vadd.f32 %v2803_v63, %v2735_v28  ;;  %4897 = vst [vmem:[%s7722_s21 + $0x20] sm:$0xff] %v2735_v28  ;;  %v2746_v58 = vadd.f32 %v5902_v31, %v2649_v30  ;;  %3059 = vmatmul.mubr.bf16.gmra.mxu1 %v2832_v32  ;;  %v6359_v63 = vld [vmem:[#allocation15 + $0x4] ss:$12 sps:$4 sm:$0xff]   ;;  %v5732_v31 = vpop.f32.mrf.mxu0 }
 0x3cf   : > { %v2737_v42 = vpop.f32.mrf.mxu1  ;;  %3068 = vmatprep.mubr.bf16.mxu1 %v6965_v6 }
 0x3d0   : > { %4881 = vst [vmem:[%s7730_s3 + $0x20] sm:$0xff] %v2819_v15  ;;  %v2822_v25 = vadd.f32 %v2806_v62, %v2746_v58  ;;  %4900 = vst [vmem:[%s7722_s21 + $0x38] sm:$0xff] %v2746_v58  ;;  %v2738_v14 = vadd.f32 %v2737_v42, %v2641_v22  ;;  %3800 = vmatpush1.bf16.msra.mxu1 %v6342_v34  ;;  %3913 = vmatpush1.bf16.msra.mxu0 %v6372_v52  ;;  %v6357_v52 = vld [vmem:[#allocation15] ss:$12 sps:$4 sm:$0xff]   ;;  %v6363_v22 = vld [vmem:[#allocation15 + $0x168] ss:$12 sps:$4 sm:$0xff]  }
 0x3d1   : > { %3801 = vmatprep.subr.bf16.mxu1 %v6347_v33  ;;  %3914 = vmatprep.subr.bf16.mxu0 %v6380_v23  ;;  %v6365_v33 = vld [vmem:[#allocation15 + $0x16c] ss:$12 sps:$4 sm:$0xff]  }
 0x3d2   : > { %4884 = vst [vmem:[%s7730_s3 + $0x38] sm:$0xff] %v2822_v25  ;;  %v2820_v43 = vadd.f32 %v2804_v36, %v2738_v14  ;;  %4898 = vst [vmem:[%s7722_s21 + $0x28] sm:$0xff] %v2738_v14  ;;  %v2834_v32 = vpack.c.bf16 %v2822_v25, %v2821_v19  ;;  %v2808_v19 = vmul.f32 %v7708_v38, %v2790_v54  ;;  %v5733_v36 = vpop.f32.mrf.mxu0  ;;  %v2795_v25 = vld [vmem:[%s7323_s13 + $0x70] sm:$0xff] }
 0x3d3   : > { %v6371_v14 = vld [vmem:[#allocation15 + $0x154] ss:$12 sps:$4 sm:$0xff]  }
 0x3d4   : > { %v2833_v47 = vpack.c.bf16 %v2820_v43, %v2819_v15  ;;  %4882 = vst [vmem:[%s7730_s3 + $0x28] sm:$0xff] %v2820_v43  ;;  %3802 = vmatpush1.bf16.msra.mxu1 %v6345_v39  ;;  %3915 = vmatpush1.bf16.msra.mxu0 %v6378_v40  ;;  %v5731_v15 = vadd.f32 %v5730_v49, %v5729_v37  ;;  %v2793_v40 = vld [vmem:[%s7323_s13 + $0x60] sm:$0xff] }
 0x3d5   : > { %3803 = vmatprep.subr.bf16.mxu1 %v6350_v8  ;;  %3916 = vmatprep.subr.bf16.mxu0 %v6386_v9  ;;  %v5725_v39 = vadd.f32 %v7765_v2, %v7755_v16  ;;  %v5734_v8 = vadd.f32 %v5733_v36, %v5732_v31  ;;  %v2813_v43 = vmul.f32 %v7708_v38, %v2795_v25  ;;  %v6398_v49 = vld [vmem:[#allocation15 + $0x19c] ss:$12 sps:$4 sm:$0xff]  }
 0x3d6   : > { %3069 = vmatmul.mubr.bf16.gmra.mxu1 %v2833_v47  ;;  %5931 = vmatprep.mubr.bf16.mxu0 %v2833_v47  ;;  %v2678_v9 = vadd.f32 %v5731_v15, %v7710_v61  ;;  %v5728_v16 = vadd.f32 %v7781_v20, %v7774_v41  ;;  %v2811_v5 = vmul.f32 %v7708_v38, %v2793_v40  ;;  %v6375_v41 = vld [vmem:[#allocation15 + $0x138] ss:$12 sps:$4 sm:$0xff]  }
 0x3d7   : > { %5932 = vmatmul.mubr.bf16.gmra.mxu0 %v2834_v32  ;;  %3078 = vmatprep.mubr.bf16.mxu1 %v6965_v6 }
 0x3d8   : > { %3804 = vmatpush1.bf16.msra.mxu1 %v6348_v11  ;;  %3917 = vmatpush1.bf16.msra.mxu0 %v6384_v51  ;;  %v2796_v11 = vld [vmem:[%s7323_s13 + $0x78] sm:$0xff]  ;;  %v2673_v27 = vadd.f32 %v5728_v16, %v7710_v61  ;;  %s8084_s13 = scalar_lea.hbm %s8333_s16, %s5525_s11 }
 0x3d9   : > { %v5905_v55 = vpop.f32.mrf.mxu1  ;;  %3805 = vmatprep.subr.bf16.mxu1 %v6353_v56  ;;  %v6377_v51 = vld [vmem:[#allocation15 + $0x13c] ss:$12 sps:$4 sm:$0xff]  }
 0x3da   : > { %v2759_v18 = vadd.f32 %v5905_v55, %v2662_v53  ;;  %v2681_v53 = vadd.f32 %v5734_v8, %v7710_v61 }
 0x3db   : > { %v2750_v46 = vpop.f32.mrf.mxu1 }
 0x3dc   : > { %v2825_v17 = vadd.f32 %v2809_v44, %v2759_v18  ;;  %4903 = vst [vmem:[%s7722_s21 + $0x50] sm:$0xff] %v2759_v18  ;;  %v2751_v7 = vadd.f32 %v2750_v46, %v2654_v45  ;;  %3806 = vmatpush1.bf16.msra.mxu1 %v6351_v35  ;;  %v2814_v44 = vmul.f32 %v7708_v38, %v2796_v11  ;;  %v6383_v35 = vld [vmem:[#allocation15 + $0x124] ss:$12 sps:$4 sm:$0xff]   ;;  %v6389_v46 = vld [vmem:[#allocation15 + $0x10c] ss:$12 sps:$4 sm:$0xff]  }
 0x3dd   : > { %v5906_v50 = vpop.f32.mrf.mxu1  ;;  %3807 = vmatprep.subr.bf16.mxu1 %v6356_v57  ;;  %v2812_v57 = vmul.f32 %v7708_v38, %v2794_v48  ;;  %v6392_v38 = vld [vmem:[#allocation15 + $0x1b4] ss:$12 sps:$4 sm:$0xff]  }
 0x3de   : > { %4887 = vst [vmem:[%s7730_s3 + $0x50] sm:$0xff] %v2825_v17  ;;  %v2823_v1 = vadd.f32 %v2807_v10, %v2751_v7  ;;  %4901 = vst [vmem:[%s7722_s21 + $0x40] sm:$0xff] %v2751_v7  ;;  %v2762_v62 = vadd.f32 %v5906_v50, %v2665_v12  ;;  %3079 = vmatmul.mubr.bf16.gmra.mxu1 %v2834_v32  ;;  %v2670_v32 = vadd.f32 %v5725_v39, %v7710_v61  ;;  %v6381_v10 = vld [vmem:[#allocation15 + $0x120] ss:$12 sps:$4 sm:$0xff]   ;;  %v6387_v61 = vld [vmem:[#allocation15 + $0x108] ss:$12 sps:$4 sm:$0xff]  }
 0x3df   : > { %v2753_v28 = vpop.f32.mrf.mxu1  ;;  %3088 = vmatprep.mubr.bf16.mxu1 %v6965_v6  ;;  %v6395_v12 = vld [vmem:[#allocation15 + $0xf4] ss:$12 sps:$4 sm:$0xff]   ;;  %3918 = vmatprep.subr.bf16.mxu0 %v6392_v38  ;;  %v6401_v50 = vld [vmem:[#allocation15 + $0xdc] ss:$12 sps:$4 sm:$0xff]  }
 0x3e0   : > { %4885 = vst [vmem:[%s7730_s3 + $0x40] sm:$0xff] %v2823_v1  ;;  %v2826_v30 = vadd.f32 %v2810_v29, %v2762_v62  ;;  %4904 = vst [vmem:[%s7722_s21 + $0x58] sm:$0xff] %v2762_v62  ;;  %v2754_v34 = vadd.f32 %v2753_v28, %v2657_v4  ;;  %3808 = vmatpush1.bf16.msra.mxu1 %v6354_v60  ;;  %v6390_v29 = vld [vmem:[#allocation15 + $0x1b0] ss:$12 sps:$4 sm:$0xff]   ;;  %v6405_v28 = vld [vmem:[#allocation15 + $0xc0] ss:$12 sps:$4 sm:$0xff]  }
 0x3e1   : > { %3809 = vmatprep.subr.bf16.mxu1 %v6359_v63  ;;  %v6393_v60 = vld [vmem:[#allocation15 + $0xf0] ss:$12 sps:$4 sm:$0xff]   ;;  %3919 = vmatpush1.bf16.msra.mxu0 %v6390_v29  ;;  %v6396_v63 = vld [vmem:[#allocation15 + $0x198] ss:$12 sps:$4 sm:$0xff]  }
 0x3e2   : > { %4888 = vst [vmem:[%s7730_s3 + $0x58] sm:$0xff] %v2826_v30  ;;  %v2824_v23 = vadd.f32 %v2808_v19, %v2754_v34  ;;  %4902 = vst [vmem:[%s7722_s21 + $0x48] sm:$0xff] %v2754_v34  ;;  %v2836_v42 = vpack.c.bf16 %v2826_v30, %v2825_v17  ;;  %3920 = vmatprep.subr.bf16.mxu0 %v6398_v49  ;;  %v6404_v62 = vld [vmem:[#allocation15 + $0x184] ss:$12 sps:$4 sm:$0xff]   ;;  %v6402_v19 = vld [vmem:[#allocation15 + $0x180] ss:$12 sps:$4 sm:$0xff]  }
 0x3e3   : > { %v6407_v4 = vld [vmem:[#allocation15 + $0xc4] ss:$12 sps:$4 sm:$0xff]  }
 0x3e4   : > { %v2835_v58 = vpack.c.bf16 %v2824_v23, %v2823_v1  ;;  %4886 = vst [vmem:[%s7730_s3 + $0x48] sm:$0xff] %v2824_v23  ;;  %3810 = vmatpush1.bf16.msra.mxu1 %v6357_v52  ;;  %v6399_v1 = vld [vmem:[#allocation15 + $0xd8] ss:$12 sps:$4 sm:$0xff]   ;;  %v6408_v30 = vld [vmem:[#allocation15 + $0x170] ss:$12 sps:$4 sm:$0xff]  }
 0x3e5   : > { %3811 = vmatprep.subr.bf16.mxu1 %v6365_v33  ;;  %3921 = vmatpush1.bf16.msra.mxu0 %v6396_v63  ;;  %v6410_v34 = vld [vmem:[#allocation15 + $0x230] ss:$12 sps:$4 sm:$0xff]  }
 0x3e6   : > { %3089 = vmatmul.mubr.bf16.gmra.mxu1 %v2835_v58  ;;  %5935 = vmatprep.mubr.bf16.mxu0 %v2835_v58  ;;  %v2871_v52 = vld [vmem:[%s8327_s10] sm:$0x7] }
 0x3e7   : > { %5936 = vmatmul.mubr.bf16.gmra.mxu0 %v2836_v42  ;;  %3098 = vmatprep.mubr.bf16.mxu1 %v6965_v6  ;;  %v7843_v23 = vrot.slane %v2871_v52, %v7435_v0  ;;  %v7846_v15 = vrot.slane %v2871_v52, %v7440_v3  ;;  %v7849_v36 = vrot.slane %v2871_v52, %v7410_v21 }
 0x3e8   : > { %3812 = vmatpush2.bf16.msra.mxu1 %v6363_v22  ;;  %3922 = vmatprep.subr.bf16.mxu0 %v6404_v62  ;;  %v6415_v62 = vld [vmem:[#allocation15 + $0x80] ss:$12 sps:$4 sm:$0xff]  }
 0x3e9   : > { %v5909_v47 = vpop.f32.mrf.mxu1  ;;  %3813 = vmatprep.subr.bf16.mxu1 %v6371_v14  ;;  %3923 = vmatpush1.bf16.msra.mxu0 %v6402_v19 }
 0x3ea   : > { %v2775_v2 = vadd.f32 %v5909_v47, %v2678_v9  ;;  %5767 = vmatprep.subr.bf16.mxu0 %v6408_v30  ;;  %v6417_v30 = vld [vmem:[#allocation15 + $0x128] ss:$12 sps:$4 sm:$0xff]  }
 0x3eb   : > { %v2766_v56 = vpop.f32.mrf.mxu1 }
 0x3ec   : > { %v2829_v26 = vadd.f32 %v2813_v43, %v2775_v2  ;;  %4907 = vst [vmem:[%s7722_s21 + $0x70] sm:$0xff] %v2775_v2  ;;  %v2767_v24 = vadd.f32 %v2766_v56, %v2670_v32  ;;  %3814 = vmatpush2.bf16.msra.mxu1 %v6369_v13 }
 0x3ed   : > { %v5910_v20 = vpop.f32.mrf.mxu1  ;;  %3815 = vmatprep.subr.bf16.mxu1 %v6377_v51 }
 0x3ee   : > { %4891 = vst [vmem:[%s7730_s3 + $0x70] sm:$0xff] %v2829_v26  ;;  %v2827_v37 = vadd.f32 %v2811_v5, %v2767_v24  ;;  %4905 = vst [vmem:[%s7722_s21 + $0x60] sm:$0xff] %v2767_v24  ;;  %v2778_v55 = vadd.f32 %v5910_v20, %v2681_v53  ;;  %3099 = vmatmul.mubr.bf16.gmra.mxu1 %v2836_v42  ;;  %v6409_v24 = vld [vmem:[#allocation15 + $0xb0] ss:$12 sps:$4 sm:$0xff]  }
 0x3ef   : > { %v2769_v59 = vpop.f32.mrf.mxu1  ;;  %3108 = vmatprep.mubr.bf16.mxu1 %v6965_v6 }
 0x3f0   : > { %4889 = vst [vmem:[%s7730_s3 + $0x60] sm:$0xff] %v2827_v37  ;;  %v2830_v18 = vadd.f32 %v2814_v44, %v2778_v55  ;;  %4908 = vst [vmem:[%s7722_s21 + $0x78] sm:$0xff] %v2778_v55  ;;  %v2770_v45 = vadd.f32 %v2769_v59, %v2673_v27  ;;  %3816 = vmatpush2.bf16.msra.mxu1 %v6375_v41  ;;  %v6413_v27 = vld [vmem:[#allocation15 + $0x218] ss:$12 sps:$4 sm:$0xff]  }
 0x3f1   : > { %3817 = vmatprep.subr.bf16.mxu1 %v6383_v35  ;;  %v6411_v35 = vld [vmem:[#allocation15 + $0x158] ss:$12 sps:$4 sm:$0xff]  }
 0x3f2   : > { %4892 = vst [vmem:[%s7730_s3 + $0x78] sm:$0xff] %v2830_v18  ;;  %v2828_v54 = vadd.f32 %v2812_v57, %v2770_v45  ;;  %4906 = vst [vmem:[%s7722_s21 + $0x68] sm:$0xff] %v2770_v45  ;;  %v2838_v7 = vpack.c.bf16 %v2830_v18, %v2829_v26 }
 0x3f4   : > { %v2837_v17 = vpack.c.bf16 %v2828_v54, %v2827_v37  ;;  %4890 = vst [vmem:[%s7730_s3 + $0x68] sm:$0xff] %v2828_v54  ;;  %3818 = vmatpush2.bf16.msra.mxu1 %v6381_v10  ;;  %v6412_v10 = vld [vmem:[#allocation15 + $0x98] ss:$12 sps:$4 sm:$0xff]  }
 0x3f5   : > { %3819 = vmatprep.subr.bf16.mxu1 %v6389_v46 }
 0x3f6   : > { %3109 = vmatmul.mubr.bf16.gmra.mxu1 %v2837_v17  ;;  %5939 = vmatprep.mubr.bf16.mxu0 %v2837_v17 }
 0x3f7   : > { %5940 = vmatmul.mubr.bf16.gmra.mxu0 %v2838_v7  ;;  %3118 = vmatprep.mubr.bf16.mxu1 %v6965_v6 }
 0x3f8   : > { %3820 = vmatpush2.bf16.msra.mxu1 %v6387_v61  ;;  %3940 = vmatprep.mubr.bf16.mxu0 %v6965_v6  ;;  %v6414_v61 = vld [vmem:[#allocation15 + $0x140] ss:$12 sps:$4 sm:$0xff]  }
 0x3f9   : > { %3821 = vmatprep.subr.bf16.mxu1 %v6395_v12 }
 0x3fc   : > { %3822 = vmatpush2.bf16.msra.mxu1 %v6393_v60 }
 0x3fd   : > { %3823 = vmatprep.subr.bf16.mxu1 %v6401_v50 }
 0x3fe   : > { %3119 = vmatmul.mubr.bf16.gmra.mxu1 %v2838_v7  ;;  %v6416_v7 = vld [vmem:[#allocation15 + $0x200] ss:$12 sps:$4 sm:$0xff]  }
 0x400   : > { %3824 = vmatpush2.bf16.msra.mxu1 %v6399_v1 }
 0x401   : > { %3825 = vmatprep.subr.bf16.mxu1 %v6407_v4 }
 0x404   : > { %3826 = vmatpush2.bf16.msra.mxu1 %v6405_v28 }
 0x405   : > { %5943 = vmatprep.subr.bf16.mxu1 %v6410_v34 }
 0x486   : > { %v3050_v31 = vpop.f32.mrf.mxu1 }
 0x487   : > { %v5929_v33 = vpop.f32.mrf.mxu0  ;;  %v3051_v40 = vadd.f32 %v3050_v31, %v7846_v15 }
 0x488   : > { %v3052_v58 = vpop.f32.mrf.mxu1  ;;  %v3172_v57 = vadd.f32 %v5929_v33, %v7849_v36  ;;  %v6419_v33 = vld [vmem:[#allocation15 + $0x1e8] ss:$12 sps:$4 sm:$0xff]  }
 0x489   : > { %v3163_v22 = vpop.f32.mrf.mxu0  ;;  %v3053_v25 = vadd.f32 %v3052_v58, %v7843_v23  ;;  %v3226_v32 = vmax.f32 %v3051_v40, 0.0 }
 0x48a   : > { %v3054_v42 = vpop.f32.mrf.mxu1  ;;  %v3164_v8 = vadd.f32 %v3163_v22, %v7849_v36  ;;  %v3234_v60 = vmax.f32 %v3172_v57, 0.0 }
 0x48b   : > { %v3055_v14 = vadd.f32 %v3054_v42, %v7846_v15  ;;  %v5930_v39 = vpop.f32.mrf.mxu0  ;;  %v3227_v16 = vmax.f32 %v3053_v25, 0.0 }
 0x48c   : > { %v3056_v9 = vpop.f32.mrf.mxu1  ;;  %v3228_v5 = vmax.f32 %v3164_v8, 0.0  ;;  %v3175_v44 = vadd.f32 %v5930_v39, %v7849_v36  ;;  %v6418_v39 = vld [vmem:[#allocation15 + $0x68] ss:$12 sps:$4 sm:$0xff]  }
 0x48d   : > { %v3057_v43 = vadd.f32 %v3056_v9, %v7843_v23  ;;  %v3166_v13 = vpop.f32.mrf.mxu0  ;;  %v3229_v47 = vmax.f32 %v3055_v14, 0.0 }
 0x48e   : > { %v3167_v11 = vadd.f32 %v3166_v13, %v7849_v36  ;;  %v3060_v51 = vpop.f32.mrf.mxu1  ;;  %v3237_v46 = vmax.f32 %v3175_v44, 0.0 }
 0x48f   : > { %v3230_v2 = vmax.f32 %v3057_v43, 0.0  ;;  %v7859_v53 = vpack.c.bf16 %v3229_v47, %v3226_v32  ;;  %v3061_v59 = vadd.f32 %v3060_v51, %v7846_v15  ;;  %v6420_v43 = vld [vmem:[#allocation15 + $0x110] ss:$12 sps:$4 sm:$0xff]  }
 0x490   : > { %v3231_v56 = vmax.f32 %v3167_v11, 0.0  ;;  %v3062_v48 = vpop.f32.mrf.mxu1  ;;  %v7875_v4 = vpack.c.bf16 %v3237_v46, %v3234_v60  ;;  %v6422_v11 = vld [vmem:[#allocation15 + $0x1d0] ss:$12 sps:$4 sm:$0xff]  }
 0x491   : > { %v7857_v26 = vpack.c.bf16 %v3230_v2, %v3227_v16  ;;  %v3063_v37 = vadd.f32 %v3062_v48, %v7843_v23  ;;  %v3232_v49 = vmax.f32 %v3061_v59, 0.0 }
 0x492   : > { %v7862_v41 = vpack.c.bf16 %v3231_v56, %v3228_v5  ;;  %v3064_v20 = vpop.f32.mrf.mxu1  ;;  %v6421_v56 = vld [vmem:[#allocation15 + $0x50] ss:$12 sps:$4 sm:$0xff]  }
 0x493   : > { %v3065_v55 = vadd.f32 %v3064_v20, %v7846_v15  ;;  %3827 = vmatprep.mubr.bf16.mxu1 %v7857_v26  ;;  %v3233_v38 = vmax.f32 %v3063_v37, 0.0 }
 0x494   : > { %v3066_v18 = vpop.f32.mrf.mxu1  ;;  %3828 = vmatmul.mubr.bf16.vlgmr.msra.gmra.mxu1 %v7859_v53  ;;  %3941 = vmatmul.mubr.bf16.vlgmr.msra.gmra.mxu0 %v7862_v41 }
 0x495   : > { %v3067_v45 = vadd.f32 %v3066_v18, %v7843_v23  ;;  %5768 = vmatpush3.bf16.msra.mxu0 %v6409_v24  ;;  %5944 = vmatpush3.bf16.msra.mxu1 %v6410_v34  ;;  %v3235_v54 = vmax.f32 %v3065_v55, 0.0 }
 0x496   : > { %v3070_v17 = vpop.f32.mrf.mxu1  ;;  %3950 = vmatprep.mubr.bf16.mxu0 %v6965_v6  ;;  %5769 = vmatprep.subr.bf16.mxu0 %v6411_v35  ;;  %v6423_v35 = vld [vmem:[#allocation15 + $0xf8] ss:$12 sps:$4 sm:$0xff]  }
 0x497   : > { %v3236_v12 = vmax.f32 %v3067_v45, 0.0  ;;  %v5933_v29 = vpop.f32.mrf.mxu0  ;;  %5945 = vmatprep.subr.bf16.mxu1 %v6413_v27  ;;  %v7877_v19 = vpack.c.bf16 %v3235_v54, %v3232_v49  ;;  %v3071_v58 = vadd.f32 %v3070_v17, %v7846_v15 }
 0x498   : > { %v3072_v50 = vpop.f32.mrf.mxu1  ;;  %v3188_v57 = vadd.f32 %v5933_v29, %v7849_v36  ;;  %v6428_v29 = vld [vmem:[#allocation15 + $0x1a0] ss:$12 sps:$4 sm:$0xff]  }
 0x499   : > { %v7873_v63 = vpack.c.bf16 %v3236_v12, %v3233_v38  ;;  %v3179_v1 = vpop.f32.mrf.mxu0  ;;  %5770 = vmatpush3.bf16.msra.mxu0 %v6412_v10  ;;  %5946 = vmatpush3.bf16.msra.mxu1 %v6413_v27  ;;  %v3073_v34 = vadd.f32 %v3072_v50, %v7843_v23  ;;  %v3238_v51 = vmax.f32 %v3071_v58, 0.0  ;;  %v6425_v27 = vld [vmem:[#allocation15 + $0x1b8] ss:$12 sps:$4 sm:$0xff]  }
 0x49a   : > { %v3074_v28 = vpop.f32.mrf.mxu1  ;;  %5771 = vmatprep.subr.bf16.mxu0 %v6414_v61  ;;  %5947 = vmatprep.subr.bf16.mxu1 %v6416_v7  ;;  %v3180_v22 = vadd.f32 %v3179_v1, %v7849_v36  ;;  %v6424_v10 = vld [vmem:[#allocation15 + $0x38] ss:$12 sps:$4 sm:$0xff]   ;;  %v6426_v61 = vld [vmem:[#allocation15 + $0xe0] ss:$12 sps:$4 sm:$0xff]   ;;  %v3246_v60 = vmax.f32 %v3188_v57, 0.0 }
 0x49b   : > { %v3075_v52 = vadd.f32 %v3074_v28, %v7846_v15  ;;  %v5934_v31 = vpop.f32.mrf.mxu0  ;;  %3837 = vmatprep.mubr.bf16.mxu1 %v7873_v63  ;;  %v3239_v13 = vmax.f32 %v3073_v34, 0.0  ;;  %v6427_v28 = vld [vmem:[#allocation15 + $0x20] ss:$12 sps:$4 sm:$0xff]  }
 0x49c   : > { %v3076_v42 = vpop.f32.mrf.mxu1  ;;  %3838 = vmatmul.mubr.bf16.gmra.mxu1 %v7877_v19  ;;  %3951 = vmatmul.mubr.bf16.gmra.mxu0 %v7875_v4  ;;  %v3240_v16 = vmax.f32 %v3180_v22, 0.0  ;;  %v3191_v24 = vadd.f32 %v5934_v31, %v7849_v36  ;;  %v6429_v31 = vld [vmem:[#allocation15 + $0xc8] ss:$12 sps:$4 sm:$0xff]  }
 0x49d   : > { %v3077_v25 = vadd.f32 %v3076_v42, %v7843_v23  ;;  %v3182_v14 = vpop.f32.mrf.mxu0  ;;  %3960 = vmatprep.mubr.bf16.mxu0 %v6965_v6  ;;  %5772 = vmatpush3.bf16.msra.mxu0 %v6415_v62  ;;  %v3241_v40 = vmax.f32 %v3075_v52, 0.0  ;;  %v6431_v42 = vld [vmem:[#allocation15 + $0x188] ss:$12 sps:$4 sm:$0xff]  }
 0x49e   : > { %v3183_v8 = vadd.f32 %v3182_v14, %v7849_v36  ;;  %v3080_v9 = vpop.f32.mrf.mxu1  ;;  %5948 = vmatpush3.bf16.msra.mxu1 %v6416_v7  ;;  %5773 = vmatprep.subr.bf16.mxu0 %v6417_v30  ;;  %v3249_v46 = vmax.f32 %v3191_v24, 0.0 }
 0x49f   : > { %v3242_v47 = vmax.f32 %v3077_v25, 0.0  ;;  %5949 = vmatprep.subr.bf16.mxu1 %v6419_v33  ;;  %v7891_v48 = vpack.c.bf16 %v3241_v40, %v3238_v51  ;;  %v3081_v59 = vadd.f32 %v3080_v9, %v7846_v15  ;;  %v6430_v9 = vld [vmem:[#allocation15 + $0x8] ss:$12 sps:$4 sm:$0xff]  }
 0x4a0   : > { %v3243_v2 = vmax.f32 %v3183_v8, 0.0  ;;  %v3082_v32 = vpop.f32.mrf.mxu1  ;;  %v7907_v30 = vpack.c.bf16 %v3249_v46, %v3246_v60 }
 0x4a1   : > { %v7889_v5 = vpack.c.bf16 %v3242_v47, %v3239_v13  ;;  %5774 = vmatpush3.bf16.msra.mxu0 %v6418_v39  ;;  %v3083_v37 = vadd.f32 %v3082_v32, %v7843_v23  ;;  %v3244_v49 = vmax.f32 %v3081_v59, 0.0 }
 0x4a2   : > { %v7894_v44 = vpack.c.bf16 %v3243_v2, %v3240_v16  ;;  %v3084_v20 = vpop.f32.mrf.mxu1  ;;  %5950 = vmatpush3.bf16.msra.mxu1 %v6419_v33  ;;  %5775 = vmatprep.subr.bf16.mxu0 %v6420_v43 }
 0x4a3   : > { %v3085_v55 = vadd.f32 %v3084_v20, %v7846_v15  ;;  %3847 = vmatprep.mubr.bf16.mxu1 %v7889_v5  ;;  %5951 = vmatprep.subr.bf16.mxu1 %v6422_v11  ;;  %v3245_v7 = vmax.f32 %v3083_v37, 0.0 }
 0x4a4   : > { %v3086_v18 = vpop.f32.mrf.mxu1  ;;  %3848 = vmatmul.mubr.bf16.gmra.mxu1 %v7891_v48  ;;  %3961 = vmatmul.mubr.bf16.gmra.mxu0 %v7894_v44 }
 0x4a5   : > { %v3087_v45 = vadd.f32 %v3086_v18, %v7843_v23  ;;  %3970 = vmatprep.mubr.bf16.mxu0 %v6965_v6  ;;  %5776 = vmatpush3.bf16.msra.mxu0 %v6421_v56  ;;  %v3247_v54 = vmax.f32 %v3085_v55, 0.0 }
 0x4a6   : > { %v3090_v17 = vpop.f32.mrf.mxu1  ;;  %5952 = vmatpush3.bf16.msra.mxu1 %v6422_v11  ;;  %5777 = vmatprep.subr.bf16.mxu0 %v6423_v35  ;;  %v6434_v11 = vld [vmem:[#allocation17 + $0x74] ss:$8 sps:$4 sm:$0xff]  }
 0x4a7   : > { %v3248_v38 = vmax.f32 %v3087_v45, 0.0  ;;  %v5937_v12 = vpop.f32.mrf.mxu0  ;;  %5953 = vmatprep.subr.bf16.mxu1 %v6425_v27  ;;  %v7909_v34 = vpack.c.bf16 %v3247_v54, %v3244_v49  ;;  %v3091_v25 = vadd.f32 %v3090_v17, %v7846_v15 }
 0x4a8   : > { %v3092_v50 = vpop.f32.mrf.mxu1  ;;  %v3204_v18 = vadd.f32 %v5937_v12, %v7849_v36 }
 0x4a9   : > { %v7905_v1 = vpack.c.bf16 %v3248_v38, %v3245_v7  ;;  %v3195_v62 = vpop.f32.mrf.mxu0  ;;  %5778 = vmatpush3.bf16.msra.mxu0 %v6424_v10  ;;  %v3093_v33 = vadd.f32 %v3092_v50, %v7843_v23  ;;  %v3250_v2 = vmax.f32 %v3091_v25, 0.0 }
 0x4aa   : > { %v3094_v52 = vpop.f32.mrf.mxu1  ;;  %5954 = vmatpush3.bf16.msra.mxu1 %v6425_v27  ;;  %5779 = vmatprep.subr.bf16.mxu0 %v6426_v61  ;;  %v3196_v14 = vadd.f32 %v3195_v62, %v7849_v36  ;;  %v3258_v60 = vmax.f32 %v3204_v18, 0.0 }
 0x4ab   : > { %v3095_v58 = vadd.f32 %v3094_v52, %v7846_v15  ;;  %v5938_v22 = vpop.f32.mrf.mxu0  ;;  %3857 = vmatprep.mubr.bf16.mxu1 %v7905_v1  ;;  %5955 = vmatprep.subr.bf16.mxu1 %v6428_v29  ;;  %v3251_v51 = vmax.f32 %v3093_v33, 0.0 }
 0x4ac   : > { %v3096_v39 = vpop.f32.mrf.mxu1  ;;  %3858 = vmatmul.mubr.bf16.gmra.mxu1 %v7909_v34  ;;  %3971 = vmatmul.mubr.bf16.gmra.mxu0 %v7907_v30  ;;  %v3252_v32 = vmax.f32 %v3196_v14, 0.0  ;;  %v3207_v37 = vadd.f32 %v5938_v22, %v7849_v36 }
 0x4ad   : > { %v3097_v40 = vadd.f32 %v3096_v39, %v7843_v23  ;;  %v3198_v8 = vpop.f32.mrf.mxu0  ;;  %3980 = vmatprep.mubr.bf16.mxu0 %v6965_v6  ;;  %5780 = vmatpush3.bf16.msra.mxu0 %v6427_v28  ;;  %v3253_v43 = vmax.f32 %v3095_v58, 0.0 }
 0x4ae   : > { %v3199_v13 = vadd.f32 %v3198_v8, %v7849_v36  ;;  %v3100_v47 = vpop.f32.mrf.mxu1  ;;  %5956 = vmatpush3.bf16.msra.mxu1 %v6428_v29  ;;  %5781 = vmatprep.subr.bf16.mxu0 %v6429_v31  ;;  %v3261_v54 = vmax.f32 %v3207_v37, 0.0 }
 0x4af   : > { %v3254_v16 = vmax.f32 %v3097_v40, 0.0  ;;  %5957 = vmatprep.subr.bf16.mxu1 %v6431_v42  ;;  %v7923_v35 = vpack.c.bf16 %v3253_v43, %v3250_v2  ;;  %v3101_v45 = vadd.f32 %v3100_v47, %v7846_v15 }
 0x4b0   : > { %v3255_v56 = vmax.f32 %v3199_v13, 0.0  ;;  %v3102_v24 = vpop.f32.mrf.mxu1  ;;  %v7939_v28 = vpack.c.bf16 %v3261_v54, %v3258_v60 }
 0x4b1   : > { %v7921_v20 = vpack.c.bf16 %v3254_v16, %v3251_v51  ;;  %5782 = vmatpush3.bf16.msra.mxu0 %v6430_v9  ;;  %v3103_v57 = vadd.f32 %v3102_v24, %v7843_v23  ;;  %v3256_v49 = vmax.f32 %v3101_v45, 0.0 }
 0x4b2   : > { %v7926_v55 = vpack.c.bf16 %v3255_v56, %v3252_v32  ;;  %v3104_v27 = vpop.f32.mrf.mxu1  ;;  %5958 = vmatpush3.bf16.msra.mxu1 %v6431_v42  ;;  %4587 = vmatprep.subr.bf16.mxu0 %v6434_v11 }
 0x4b3   : > { %v3105_v59 = vadd.f32 %v3104_v27, %v7846_v15  ;;  %3867 = vmatprep.mubr.bf16.mxu1 %v7921_v20  ;;  %v3257_v7 = vmax.f32 %v3103_v57, 0.0 }
 0x4b4   : > { %v3106_v10 = vpop.f32.mrf.mxu1  ;;  %3868 = vmatmul.mubr.bf16.gmra.mxu1 %v7923_v35  ;;  %3981 = vmatmul.mubr.bf16.gmra.mxu0 %v7926_v55 }
 0x4b5   : > { %v3107_v46 = vadd.f32 %v3106_v10, %v7843_v23  ;;  %3990 = vmatprep.mubr.bf16.mxu0 %v6965_v6  ;;  %v3259_v17 = vmax.f32 %v3105_v59, 0.0 }
 0x4b6   : > { %v3110_v61 = vpop.f32.mrf.mxu1 }
 0x4b7   : > { %v3260_v38 = vmax.f32 %v3107_v46, 0.0  ;;  %v5941_v29 = vpop.f32.mrf.mxu0  ;;  %v7941_v52 = vpack.c.bf16 %v3259_v17, %v3256_v49  ;;  %v3111_v42 = vadd.f32 %v3110_v61, %v7846_v15 }
 0x4b8   : > { %v3112_v12 = vpop.f32.mrf.mxu1  ;;  %v3220_v18 = vadd.f32 %v5941_v29, %v7849_v36  ;;  %v6435_v29 = vld [vmem:[#allocation17 + $0x60] ss:$8 sps:$4 sm:$0xff]  }
 0x4b9   : > { %v7937_v50 = vpack.c.bf16 %v3260_v38, %v3257_v7  ;;  %v3211_v62 = vpop.f32.mrf.mxu0  ;;  %v3113_v33 = vadd.f32 %v3112_v12, %v7843_v23  ;;  %v3262_v11 = vmax.f32 %v3111_v42, 0.0  ;;  %v6470_v42 = vld [vmem:[#allocation17 + $0xb4] ss:$8 sps:$4 sm:$0xff]  }
 0x4ba   : > { %v3114_v31 = vpop.f32.mrf.mxu1  ;;  %v3212_v25 = vadd.f32 %v3211_v62, %v7849_v36  ;;  %v3270_v38 = vmax.f32 %v3220_v18, 0.0  ;;  %v6440_v62 = vld [vmem:[#allocation17 + $0x54] ss:$8 sps:$4 sm:$0xff]  }
 0x4bb   : > { %v3115_v58 = vadd.f32 %v3114_v31, %v7846_v15  ;;  %v5942_v22 = vpop.f32.mrf.mxu0  ;;  %3877 = vmatprep.mubr.bf16.mxu1 %v7937_v50  ;;  %v3263_v13 = vmax.f32 %v3113_v33, 0.0  ;;  %v6438_v31 = vld [vmem:[#allocation17 + $0x50] ss:$8 sps:$4 sm:$0xff]   ;;  %v6459_v33 = vld [vmem:[#allocation17 + $0xe0] ss:$8 sps:$4 sm:$0xff]  }
 0x4bc   : > { %v3116_v14 = vpop.f32.mrf.mxu1  ;;  %3878 = vmatmul.mubr.bf16.gmra.mxu1 %v7941_v52  ;;  %3991 = vmatmul.mubr.bf16.gmra.mxu0 %v7939_v28  ;;  %v3264_v51 = vmax.f32 %v3212_v25, 0.0  ;;  %v3223_v24 = vadd.f32 %v5942_v22, %v7849_v36  ;;  %v6465_v22 = vld [vmem:[#allocation17 + $0xc0] ss:$8 sps:$4 sm:$0xff]   ;;  %v6482_v25 = vld [vmem:[#allocation17 + $0x174] ss:$8 sps:$4 sm:$0xff]  }
 0x4bd   : > { %v3117_v39 = vadd.f32 %v3116_v14, %v7843_v23  ;;  %v3214_v40 = vpop.f32.mrf.mxu0  ;;  %4000 = vmatprep.mubr.bf16.mxu0 %v6965_v6  ;;  %v3265_v8 = vmax.f32 %v3115_v58, 0.0  ;;  %v6467_v58 = vld [vmem:[#allocation17 + $0xc4] ss:$8 sps:$4 sm:$0xff]   ;;  %v6480_v14 = vld [vmem:[#allocation17 + $0x170] ss:$8 sps:$4 sm:$0xff]   ;;  %4700 = vmatprep.subr.bf16.mxu1 %v6482_v25 }
 0x4be   : > { %v3215_v9 = vadd.f32 %v3214_v40, %v7849_v36  ;;  %v3120_v43 = vpop.f32.mrf.mxu1  ;;  %v3273_v54 = vmax.f32 %v3223_v24, 0.0  ;;  %v6485_v40 = vld [vmem:[#allocation17 + $0x164] ss:$8 sps:$4 sm:$0xff]   ;;  %v6495_v24 = vld [vmem:[#allocation17 + $0x120] ss:$8 sps:$4 sm:$0xff]  }
 0x4bf   : > { %v3266_v47 = vmax.f32 %v3117_v39, 0.0  ;;  %v7955_v56 = vpack.c.bf16 %v3265_v8, %v3262_v11  ;;  %v3121_v45 = vadd.f32 %v3120_v43, %v7846_v15  ;;  %v6471_v39 = vld [vmem:[#allocation17 + $0xa0] ss:$8 sps:$4 sm:$0xff]   ;;  %v6479_v43 = vld [vmem:[#allocation17 + $0x84] ss:$8 sps:$4 sm:$0xff]  }
 0x4c0   : > { %v3267_v16 = vmax.f32 %v3215_v9, 0.0  ;;  %v3122_v2 = vpop.f32.mrf.mxu1  ;;  %v3297_v12 = vpack.c.bf16 %v3273_v54, %v3270_v38  ;;  %v6483_v8 = vld [vmem:[#allocation17 + $0x160] ss:$8 sps:$4 sm:$0xff]   ;;  %v6474_v9 = vld [vmem:[#allocation17 + $0x90] ss:$8 sps:$4 sm:$0xff]  }
 0x4c1   : > { %v7953_v32 = vpack.c.bf16 %v3266_v47, %v3263_v13  ;;  %v3123_v57 = vadd.f32 %v3122_v2, %v7843_v23  ;;  %v3268_v60 = vmax.f32 %v3121_v45, 0.0  ;;  %v6488_v13 = vld [vmem:[#allocation17 + $0x154] ss:$8 sps:$4 sm:$0xff]   ;;  %v6486_v47 = vld [vmem:[#allocation17 + $0x150] ss:$8 sps:$4 sm:$0xff]  }
 0x4c2   : > { %v3294_v37 = vpack.c.bf16 %v3267_v16, %v3264_v51  ;;  %v3124_v27 = vpop.f32.mrf.mxu1  ;;  %v6477_v11 = vld [vmem:[#allocation17 + $0x80] ss:$8 sps:$4 sm:$0xff]   ;;  %v6491_v51 = vld [vmem:[#allocation17 + $0x144] ss:$8 sps:$4 sm:$0xff]   ;;  %v6494_v2 = vld [vmem:[#allocation17 + $0x134] ss:$8 sps:$4 sm:$0xff]  }
 0x4c3   : > { %v3125_v59 = vadd.f32 %v3124_v27, %v7846_v15  ;;  %3887 = vmatprep.mubr.bf16.mxu1 %v7953_v32  ;;  %v3269_v61 = vmax.f32 %v3123_v57, 0.0  ;;  %v6437_v15 = vld [vmem:[#allocation17 + $0x64] ss:$8 sps:$4 sm:$0xff]   ;;  %v6489_v16 = vld [vmem:[#allocation17 + $0x140] ss:$8 sps:$4 sm:$0xff]  }
 0x4c4   : > { %v3126_v10 = vpop.f32.mrf.mxu1  ;;  %3888 = vmatmul.mubr.bf16.gmra.mxu1 %v7955_v56  ;;  %4001 = vmatmul.mubr.bf16.gmra.mxu0 %v3294_v37  ;;  %v6498_v27 = vld [vmem:[#allocation17 + $0x110] ss:$8 sps:$4 sm:$0xff]   ;;  %v6503_v57 = vld [vmem:[#allocation17 + $0x104] ss:$8 sps:$4 sm:$0xff]   ;;  %v7998_v18 = vld [vmem:[%s8329_s12] sm:$0x7] }
 0x4c5   : > { %v3127_v46 = vadd.f32 %v3126_v10, %v7843_v23  ;;  %4010 = vmatprep.mubr.bf16.mxu0 %v6965_v6  ;;  %v3271_v17 = vmax.f32 %v3125_v59, 0.0  ;;  %v6432_v23 = vld [vmem:[#allocation17 + $0x70] ss:$8 sps:$4 sm:$0xff]   ;;  %v6501_v59 = vld [vmem:[#allocation17 + $0x100] ss:$8 sps:$4 sm:$0xff]   ;;  %v8002_v45 = vrot.slane %v7998_v18, %v7435_v0  ;;  %v8006_v10 = vrot.slane %v7998_v18, %v7440_v3 }
 0x4c7   : > { %v3272_v7 = vmax.f32 %v3127_v46, 0.0  ;;  %v7968_v36 = vpack.c.bf16 %v3271_v17, %v3268_v60 }
 0x4c9   : > { %v7966_v49 = vpack.c.bf16 %v3272_v7, %v3269_v61 }
 0x4cb   : > { %3897 = vmatprep.mubr.bf16.mxu1 %v7966_v49 }
 0x4cc   : > { %3898 = vmatmul.mubr.bf16.gmra.mxu1 %v7968_v36  ;;  %4011 = vmatmul.mubr.bf16.gmra.mxu0 %v3297_v12 }
 0x4cd   : > { %4053 = vmatprep.mubr.bf16.mxu0 %v7857_v26  ;;  %5959 = vmatprep.mubr.bf16.mxu1 %v7862_v41  ;;  %v6443_v26 = vld [vmem:[#allocation17 + $0x44] ss:$8 sps:$4 sm:$0xff]   ;;  %v6446_v41 = vld [vmem:[#allocation17 + $0x34] ss:$8 sps:$4 sm:$0xff]  }
 0x4d4   : > { %4054 = vmatmul.mubr.bf16.vlgmr.msra.gmra.mxu0 %v7859_v53  ;;  %5960 = vmatmul.mubr.bf16.vlgmr.msra.gmra.mxu1 %v7875_v4  ;;  %v6441_v53 = vld [vmem:[#allocation17 + $0x40] ss:$8 sps:$4 sm:$0xff]   ;;  %v6449_v4 = vld [vmem:[#allocation17 + $0x24] ss:$8 sps:$4 sm:$0xff]  }
 0x4d5   : > { %4061 = vmatprep.mubr.bf16.mxu0 %v7873_v63  ;;  %5963 = vmatprep.mubr.bf16.mxu1 %v7894_v44  ;;  %v6444_v63 = vld [vmem:[#allocation17 + $0x30] ss:$8 sps:$4 sm:$0xff]  }
 0x4d6   : > { %4588 = vmatpush1.bf16.msra.mxu0 %v6432_v23  ;;  %v6450_v44 = vld [vmem:[#allocation17 + $0x10] ss:$8 sps:$4 sm:$0xff]   ;;  %4701 = vmatpush1.bf16.msra.mxu1 %v6480_v14 }
 0x4d7   : > { %4589 = vmatprep.subr.bf16.mxu0 %v6437_v15  ;;  %4702 = vmatprep.subr.bf16.mxu1 %v6485_v40 }
 0x4da   : > { %4590 = vmatpush1.bf16.msra.mxu0 %v6435_v29  ;;  %4703 = vmatpush1.bf16.msra.mxu1 %v6483_v8 }
 0x4db   : > { %4591 = vmatprep.subr.bf16.mxu0 %v6440_v62  ;;  %4704 = vmatprep.subr.bf16.mxu1 %v6488_v13 }
 0x4dc   : > { %4062 = vmatmul.mubr.bf16.gmra.mxu0 %v7877_v19  ;;  %5964 = vmatmul.mubr.bf16.gmra.mxu1 %v7907_v30  ;;  %v6447_v19 = vld [vmem:[#allocation17 + $0x20] ss:$8 sps:$4 sm:$0xff]   ;;  %v6455_v30 = vld [vmem:[#allocation17 + $0x4] ss:$8 sps:$4 sm:$0xff]  }
 0x4dd   : > { %4069 = vmatprep.mubr.bf16.mxu0 %v7889_v5  ;;  %5967 = vmatprep.mubr.bf16.mxu1 %v7926_v55  ;;  %v6452_v5 = vld [vmem:[#allocation17 + $0x14] ss:$8 sps:$4 sm:$0xff]   ;;  %v6456_v55 = vld [vmem:[#allocation17 + $0xf0] ss:$8 sps:$4 sm:$0xff]  }
 0x4de   : > { %4592 = vmatpush1.bf16.msra.mxu0 %v6438_v31  ;;  %4705 = vmatpush1.bf16.msra.mxu1 %v6486_v47 }
 0x4df   : > { %4593 = vmatprep.subr.bf16.mxu0 %v6443_v26  ;;  %4706 = vmatprep.subr.bf16.mxu1 %v6491_v51 }
 0x4e2   : > { %4594 = vmatpush1.bf16.msra.mxu0 %v6441_v53  ;;  %4707 = vmatpush1.bf16.msra.mxu1 %v6489_v16 }
 0x4e3   : > { %4595 = vmatprep.subr.bf16.mxu0 %v6446_v41  ;;  %4708 = vmatprep.subr.bf16.mxu1 %v6494_v2 }
 0x4e4   : > { %4070 = vmatmul.mubr.bf16.gmra.mxu0 %v7891_v48  ;;  %5968 = vmatmul.mubr.bf16.gmra.mxu1 %v7939_v28  ;;  %v6453_v48 = vld [vmem:[#allocation17] ss:$8 sps:$4 sm:$0xff]   ;;  %v6461_v28 = vld [vmem:[#allocation17 + $0xe4] ss:$8 sps:$4 sm:$0xff]  }
 0x4e5   : > { %4077 = vmatprep.mubr.bf16.mxu0 %v7905_v1  ;;  %5971 = vmatprep.mubr.bf16.mxu1 %v3294_v37  ;;  %v6458_v1 = vld [vmem:[#allocation17 + $0xf4] ss:$8 sps:$4 sm:$0xff]  }
 0x4e6   : > { %4596 = vmatpush1.bf16.msra.mxu0 %v6444_v63  ;;  %v6500_v37 = vld [vmem:[#allocation17 + $0x114] ss:$8 sps:$4 sm:$0xff]  }
 0x4e7   : > { %4597 = vmatprep.subr.bf16.mxu0 %v6449_v4 }
 0x4ea   : > { %4598 = vmatpush1.bf16.msra.mxu0 %v6447_v19 }
 0x4eb   : > { %4599 = vmatprep.subr.bf16.mxu0 %v6452_v5 }
 0x4ec   : > { %4078 = vmatmul.mubr.bf16.gmra.mxu0 %v7909_v34  ;;  %5972 = vmatmul.mubr.bf16.gmra.mxu1 %v3297_v12  ;;  %v6464_v34 = vld [vmem:[#allocation17 + $0xd4] ss:$8 sps:$4 sm:$0xff]  }
 0x4ed   : > { %4085 = vmatprep.mubr.bf16.mxu0 %v7921_v20  ;;  %4732 = vmatprep.mubr.bf16.mxu1 %v6965_v6  ;;  %v6462_v20 = vld [vmem:[#allocation17 + $0xd0] ss:$8 sps:$4 sm:$0xff]  }
 0x4ee   : > { %4600 = vmatpush1.bf16.msra.mxu0 %v6450_v44 }
 0x4ef   : > { %4601 = vmatprep.subr.bf16.mxu0 %v6455_v30 }
 0x4f2   : > { %4602 = vmatpush1.bf16.msra.mxu0 %v6453_v48 }
 0x4f3   : > { %4603 = vmatprep.subr.bf16.mxu0 %v6458_v1 }
 0x4f4   : > { %4086 = vmatmul.mubr.bf16.gmra.mxu0 %v7923_v35  ;;  %v6468_v35 = vld [vmem:[#allocation17 + $0xb0] ss:$8 sps:$4 sm:$0xff]  }
 0x4f5   : > { %4093 = vmatprep.mubr.bf16.mxu0 %v7937_v50  ;;  %v6473_v50 = vld [vmem:[#allocation17 + $0xa4] ss:$8 sps:$4 sm:$0xff]  }
 0x4f6   : > { %4604 = vmatpush2.bf16.msra.mxu0 %v6456_v55 }
 0x4f7   : > { %4605 = vmatprep.subr.bf16.mxu0 %v6461_v28 }
 0x4fa   : > { %4606 = vmatpush2.bf16.msra.mxu0 %v6459_v33 }
 0x4fb   : > { %4607 = vmatprep.subr.bf16.mxu0 %v6464_v34 }
 0x4fc   : > { %4094 = vmatmul.mubr.bf16.gmra.mxu0 %v7941_v52  ;;  %v6476_v52 = vld [vmem:[#allocation17 + $0x94] ss:$8 sps:$4 sm:$0xff]  }
 0x4fd   : > { %4101 = vmatprep.mubr.bf16.mxu0 %v7953_v32  ;;  %v6492_v32 = vld [vmem:[#allocation17 + $0x130] ss:$8 sps:$4 sm:$0xff]  }
 0x4fe   : > { %4608 = vmatpush2.bf16.msra.mxu0 %v6462_v20  ;;  %4709 = vmatpush1.bf16.msra.mxu1 %v6492_v32 }
 0x4ff   : > { %4609 = vmatprep.subr.bf16.mxu0 %v6467_v58 }
 0x502   : > { %4610 = vmatpush2.bf16.msra.mxu0 %v6465_v22 }
 0x503   : > { %4611 = vmatprep.subr.bf16.mxu0 %v6470_v42 }
 0x504   : > { %4102 = vmatmul.mubr.bf16.gmra.mxu0 %v7955_v56  ;;  %v6497_v56 = vld [vmem:[#allocation17 + $0x124] ss:$8 sps:$4 sm:$0xff]  }
 0x505   : > { %4109 = vmatprep.mubr.bf16.mxu0 %v7966_v49  ;;  %4710 = vmatprep.subr.bf16.mxu1 %v6497_v56 }
 0x506   : > { %4612 = vmatpush2.bf16.msra.mxu0 %v6468_v35  ;;  %4711 = vmatpush1.bf16.msra.mxu1 %v6495_v24 }
 0x507   : > { %4613 = vmatprep.subr.bf16.mxu0 %v6473_v50  ;;  %4712 = vmatprep.subr.bf16.mxu1 %v6500_v37 }
 0x50a   : > { %4614 = vmatpush2.bf16.msra.mxu0 %v6471_v39  ;;  %4713 = vmatpush1.bf16.msra.mxu1 %v6498_v27 }
 0x50b   : > { %4615 = vmatprep.subr.bf16.mxu0 %v6476_v52  ;;  %4714 = vmatprep.subr.bf16.mxu1 %v6503_v57 }
 0x50c   : > { %4110 = vmatmul.mubr.bf16.gmra.mxu0 %v7968_v36 }
 0x50e   : > { %4616 = vmatpush2.bf16.msra.mxu0 %v6474_v9  ;;  %4715 = vmatpush1.bf16.msra.mxu1 %v6501_v59 }
 0x50f   : > { %4617 = vmatprep.subr.bf16.mxu0 %v6479_v43 }
 0x512   : > { %4618 = vmatpush2.bf16.msra.mxu0 %v6477_v11 }
 0x554   : > { %v3829_v46 = vpop.f32.mrf.mxu1  ;;  %v3942_v54 = vpop.f32.mrf.mxu0 }
 0x555   : > { %v3830_v38 = vadd.f32 %v3829_v46, %v8006_v10 }
 0x556   : > { %v3831_v17 = vpop.f32.mrf.mxu1  ;;  %v3944_v61 = vpop.f32.mrf.mxu0 }
 0x557   : > { %v3832_v7 = vadd.f32 %v3831_v17, %v8002_v45  ;;  %v3943_v31 = vadd.f32 %v3942_v54, %v3830_v38 }
 0x558   : > { %v3833_v60 = vpop.f32.mrf.mxu1  ;;  %v3946_v49 = vpop.f32.mrf.mxu0 }
 0x559   : > { %v3834_v12 = vadd.f32 %v3833_v60, %v8006_v10  ;;  %v3945_v15 = vadd.f32 %v3944_v61, %v3832_v7  ;;  %v4215_v48 = vmax.f32 %v3943_v31, 0.0 }
 0x55a   : > { %v3835_v36 = vpop.f32.mrf.mxu1  ;;  %v3948_v23 = vpop.f32.mrf.mxu0 }
 0x55b   : > { %v3947_v29 = vadd.f32 %v3946_v49, %v3834_v12  ;;  %v3836_v62 = vadd.f32 %v3835_v36, %v8002_v45  ;;  %v4216_v5 = vmax.f32 %v3945_v15, 0.0 }
 0x55c   : > { %v3839_v26 = vpop.f32.mrf.mxu1  ;;  %v3952_v53 = vpop.f32.mrf.mxu0 }
 0x55d   : > { %v3949_v41 = vadd.f32 %v3948_v23, %v3836_v62  ;;  %v4218_v63 = vmax.f32 %v3947_v29, 0.0  ;;  %v3840_v1 = vadd.f32 %v3839_v26, %v8006_v10 }
 0x55e   : > { %v3841_v4 = vpop.f32.mrf.mxu1  ;;  %v3954_v19 = vpop.f32.mrf.mxu0 }
 0x55f   : > { %v4219_v44 = vmax.f32 %v3949_v41, 0.0  ;;  %v3842_v30 = vadd.f32 %v3841_v4, %v8002_v45  ;;  %v4263_v20 = vpack.c.bf16 %v4218_v63, %v4215_v48  ;;  %v3953_v25 = vadd.f32 %v3952_v53, %v3840_v1 }
 0x560   : > { %v3843_v55 = vpop.f32.mrf.mxu1  ;;  %v3956_v28 = vpop.f32.mrf.mxu0 }
 0x561   : > { %v4264_v33 = vpack.c.bf16 %v4219_v44, %v4216_v5  ;;  %v3844_v34 = vadd.f32 %v3843_v55, %v8006_v10  ;;  %v3955_v42 = vadd.f32 %v3954_v19, %v3842_v30  ;;  %v4221_v11 = vmax.f32 %v3953_v25, 0.0 }
 0x562   : > { %v3845_v58 = vpop.f32.mrf.mxu1  ;;  %v3958_v22 = vpop.f32.mrf.mxu0 }
 0x563   : > { %v3957_v35 = vadd.f32 %v3956_v28, %v3844_v34  ;;  %v3846_v50 = vadd.f32 %v3845_v58, %v8002_v45  ;;  %4619 = vmatprep.mubr.bf16.mxu0 %v4264_v33  ;;  %v4222_v43 = vmax.f32 %v3955_v42, 0.0 }
 0x564   : > { %v3849_v14 = vpop.f32.mrf.mxu1  ;;  %v3962_v39 = vpop.f32.mrf.mxu0  ;;  %4620 = vmatmul.mubr.bf16.vlgmr.msra.gmra.mxu0 %v4263_v20 }
 0x565   : > { %v3959_v52 = vadd.f32 %v3958_v22, %v3846_v50  ;;  %v4224_v40 = vmax.f32 %v3957_v35, 0.0  ;;  %v3850_v51 = vadd.f32 %v3849_v14, %v8006_v10 }
 0x566   : > { %v3851_v8 = vpop.f32.mrf.mxu1  ;;  %v3964_v9 = vpop.f32.mrf.mxu0 }
 0x567   : > { %v4225_v13 = vmax.f32 %v3959_v52, 0.0  ;;  %v3852_v47 = vadd.f32 %v3851_v8, %v8002_v45  ;;  %v4266_v24 = vpack.c.bf16 %v4224_v40, %v4221_v11  ;;  %v3963_v54 = vadd.f32 %v3962_v39, %v3850_v51 }
 0x568   : > { %v3853_v16 = vpop.f32.mrf.mxu1  ;;  %v3966_v2 = vpop.f32.mrf.mxu0 }
 0x569   : > { %v4267_v32 = vpack.c.bf16 %v4225_v13, %v4222_v43  ;;  %v3854_v56 = vadd.f32 %v3853_v16, %v8006_v10  ;;  %v3965_v57 = vadd.f32 %v3964_v9, %v3852_v47  ;;  %v4227_v15 = vmax.f32 %v3963_v54, 0.0 }
 0x56a   : > { %v3855_v37 = vpop.f32.mrf.mxu1  ;;  %v3968_v27 = vpop.f32.mrf.mxu0 }
 0x56b   : > { %v3967_v59 = vadd.f32 %v3966_v2, %v3854_v56  ;;  %v3856_v46 = vadd.f32 %v3855_v37, %v8002_v45  ;;  %4629 = vmatprep.mubr.bf16.mxu0 %v4267_v32  ;;  %v4228_v12 = vmax.f32 %v3965_v57, 0.0 }
 0x56c   : > { %v3859_v17 = vpop.f32.mrf.mxu1  ;;  %v3972_v61 = vpop.f32.mrf.mxu0  ;;  %4630 = vmatmul.mubr.bf16.gmra.mxu0 %v4266_v24 }
 0x56d   : > { %v3969_v7 = vadd.f32 %v3968_v27, %v3856_v46  ;;  %v4230_v38 = vmax.f32 %v3967_v59, 0.0  ;;  %v3860_v29 = vadd.f32 %v3859_v17, %v8006_v10 }
 0x56e   : > { %v3861_v60 = vpop.f32.mrf.mxu1  ;;  %v3974_v49 = vpop.f32.mrf.mxu0 }
 0x56f   : > { %v4231_v36 = vmax.f32 %v3969_v7, 0.0  ;;  %v3862_v23 = vadd.f32 %v3861_v60, %v8002_v45  ;;  %v4269_v41 = vpack.c.bf16 %v4230_v38, %v4227_v15  ;;  %v3973_v30 = vadd.f32 %v3972_v61, %v3860_v29 }
 0x570   : > { %v3863_v62 = vpop.f32.mrf.mxu1  ;;  %v3976_v31 = vpop.f32.mrf.mxu0 }
 0x571   : > { %v4270_v26 = vpack.c.bf16 %v4231_v36, %v4228_v12  ;;  %v3864_v53 = vadd.f32 %v3863_v62, %v8006_v10  ;;  %v3975_v19 = vadd.f32 %v3974_v49, %v3862_v23  ;;  %v4233_v42 = vmax.f32 %v3973_v30, 0.0 }
 0x572   : > { %v3865_v63 = vpop.f32.mrf.mxu1  ;;  %v3978_v4 = vpop.f32.mrf.mxu0 }
 0x573   : > { %v3977_v5 = vadd.f32 %v3976_v31, %v3864_v53  ;;  %v3866_v44 = vadd.f32 %v3865_v63, %v8002_v45  ;;  %4639 = vmatprep.mubr.bf16.mxu0 %v4270_v26  ;;  %v4234_v20 = vmax.f32 %v3975_v19, 0.0 }
 0x574   : > { %v3869_v48 = vpop.f32.mrf.mxu1  ;;  %v3982_v1 = vpop.f32.mrf.mxu0  ;;  %4640 = vmatmul.mubr.bf16.gmra.mxu0 %v4269_v41 }
 0x575   : > { %v3979_v55 = vadd.f32 %v3978_v4, %v3866_v44  ;;  %v4236_v28 = vmax.f32 %v3977_v5, 0.0  ;;  %v3870_v35 = vadd.f32 %v3869_v48, %v8006_v10 }
 0x576   : > { %v3871_v33 = vpop.f32.mrf.mxu1  ;;  %v3984_v34 = vpop.f32.mrf.mxu0 }
 0x577   : > { %v4237_v58 = vmax.f32 %v3979_v55, 0.0  ;;  %v3872_v22 = vadd.f32 %v3871_v33, %v8002_v45  ;;  %v4272_v52 = vpack.c.bf16 %v4236_v28, %v4233_v42  ;;  %v3983_v47 = vadd.f32 %v3982_v1, %v3870_v35 }
 0x578   : > { %v3873_v50 = vpop.f32.mrf.mxu1  ;;  %v3986_v25 = vpop.f32.mrf.mxu0 }
 0x579   : > { %v4273_v14 = vpack.c.bf16 %v4237_v58, %v4234_v20  ;;  %v3874_v39 = vadd.f32 %v3873_v50, %v8006_v10  ;;  %v3985_v9 = vadd.f32 %v3984_v34, %v3872_v22  ;;  %v4239_v57 = vmax.f32 %v3983_v47, 0.0 }
 0x57a   : > { %v3875_v40 = vpop.f32.mrf.mxu1  ;;  %v3988_v8 = vpop.f32.mrf.mxu0 }
 0x57b   : > { %v3987_v43 = vadd.f32 %v3986_v25, %v3874_v39  ;;  %v3876_v13 = vadd.f32 %v3875_v40, %v8002_v45  ;;  %4649 = vmatprep.mubr.bf16.mxu0 %v4273_v14  ;;  %v4240_v24 = vmax.f32 %v3985_v9, 0.0 }
 0x57c   : > { %v3879_v11 = vpop.f32.mrf.mxu1  ;;  %v3992_v51 = vpop.f32.mrf.mxu0  ;;  %4650 = vmatmul.mubr.bf16.gmra.mxu0 %v4272_v52 }
 0x57d   : > { %v3989_v16 = vadd.f32 %v3988_v8, %v3876_v13  ;;  %v4242_v2 = vmax.f32 %v3987_v43, 0.0  ;;  %v3880_v59 = vadd.f32 %v3879_v11, %v8006_v10 }
 0x57e   : > { %v3881_v32 = vpop.f32.mrf.mxu1  ;;  %v3994_v56 = vpop.f32.mrf.mxu0 }
 0x57f   : > { %v4243_v37 = vmax.f32 %v3989_v16, 0.0  ;;  %v3882_v27 = vadd.f32 %v3881_v32, %v8002_v45  ;;  %v4275_v7 = vpack.c.bf16 %v4242_v2, %v4239_v57  ;;  %v3993_v23 = vadd.f32 %v3992_v51, %v3880_v59 }
 0x580   : > { %v3883_v46 = vpop.f32.mrf.mxu1  ;;  %v3996_v54 = vpop.f32.mrf.mxu0 }
 0x581   : > { %v4276_v17 = vpack.c.bf16 %v4243_v37, %v4240_v24  ;;  %v3884_v61 = vadd.f32 %v3883_v46, %v8006_v10  ;;  %v3995_v49 = vadd.f32 %v3994_v56, %v3882_v27  ;;  %v4245_v19 = vmax.f32 %v3993_v23, 0.0 }
 0x582   : > { %v3885_v38 = vpop.f32.mrf.mxu1  ;;  %v3998_v60 = vpop.f32.mrf.mxu0 }
 0x583   : > { %v3997_v12 = vadd.f32 %v3996_v54, %v3884_v61  ;;  %v3886_v36 = vadd.f32 %v3885_v38, %v8002_v45  ;;  %4659 = vmatprep.mubr.bf16.mxu0 %v4276_v17  ;;  %v4246_v41 = vmax.f32 %v3995_v49, 0.0  ;;  %v8042_v54 = vrot.slane %v7998_v18, %v7410_v21 }
 0x584   : > { %v3889_v15 = vpop.f32.mrf.mxu1  ;;  %v4002_v29 = vpop.f32.mrf.mxu0  ;;  %4660 = vmatmul.mubr.bf16.gmra.mxu0 %v4275_v7 }
 0x585   : > { %v3999_v62 = vadd.f32 %v3998_v60, %v3886_v36  ;;  %v4248_v31 = vmax.f32 %v3997_v12, 0.0  ;;  %v3890_v5 = vadd.f32 %v3889_v15, %v8006_v10 }
 0x586   : > { %v3891_v26 = vpop.f32.mrf.mxu1  ;;  %v4004_v53 = vpop.f32.mrf.mxu0 }
 0x587   : > { %v4249_v63 = vmax.f32 %v3999_v62, 0.0  ;;  %v3892_v4 = vadd.f32 %v3891_v26, %v8002_v45  ;;  %v4278_v55 = vpack.c.bf16 %v4248_v31, %v4245_v19  ;;  %v4003_v22 = vadd.f32 %v4002_v29, %v3890_v5 }
 0x588   : > { %v3893_v44 = vpop.f32.mrf.mxu1  ;;  %v4006_v30 = vpop.f32.mrf.mxu0 }
 0x589   : > { %v4279_v48 = vpack.c.bf16 %v4249_v63, %v4246_v41  ;;  %v3894_v1 = vadd.f32 %v3893_v44, %v8006_v10  ;;  %v4005_v34 = vadd.f32 %v4004_v53, %v3892_v4  ;;  %v4251_v9 = vmax.f32 %v4003_v22, 0.0 }
 0x58a   : > { %v3895_v28 = vpop.f32.mrf.mxu1  ;;  %v4008_v33 = vpop.f32.mrf.mxu0 }
 0x58b   : > { %v4007_v20 = vadd.f32 %v4006_v30, %v3894_v1  ;;  %v3896_v58 = vadd.f32 %v3895_v28, %v8002_v45  ;;  %4669 = vmatprep.mubr.bf16.mxu0 %v4279_v48  ;;  %v4252_v52 = vmax.f32 %v4005_v34, 0.0 }
 0x58c   : > { %v3899_v42 = vpop.f32.mrf.mxu1  ;;  %v4012_v35 = vpop.f32.mrf.mxu0  ;;  %4670 = vmatmul.mubr.bf16.gmra.mxu0 %v4278_v55 }
 0x58d   : > { %v4009_v50 = vadd.f32 %v4008_v33, %v3896_v58  ;;  %v4254_v25 = vmax.f32 %v4007_v20, 0.0  ;;  %v3900_v43 = vadd.f32 %v3899_v42, %v8006_v10 }
 0x58e   : > { %v3901_v14 = vpop.f32.mrf.mxu1  ;;  %v4014_v39 = vpop.f32.mrf.mxu0 }
 0x58f   : > { %v4255_v40 = vmax.f32 %v4009_v50, 0.0  ;;  %v3902_v8 = vadd.f32 %v3901_v14, %v8002_v45  ;;  %v4281_v16 = vpack.c.bf16 %v4254_v25, %v4251_v9  ;;  %v4013_v27 = vadd.f32 %v4012_v35, %v3900_v43 }
 0x590   : > { %v3903_v13 = vpop.f32.mrf.mxu1  ;;  %v4016_v47 = vpop.f32.mrf.mxu0 }
 0x591   : > { %v4282_v11 = vpack.c.bf16 %v4255_v40, %v4252_v52  ;;  %v3904_v51 = vadd.f32 %v3903_v13, %v8006_v10  ;;  %v4015_v56 = vadd.f32 %v4014_v39, %v3902_v8  ;;  %v4257_v49 = vmax.f32 %v4013_v27, 0.0 }
 0x592   : > { %v3905_v2 = vpop.f32.mrf.mxu1  ;;  %v4018_v32 = vpop.f32.mrf.mxu0 }
 0x593   : > { %v4017_v24 = vadd.f32 %v4016_v47, %v3904_v51  ;;  %v3906_v37 = vadd.f32 %v3905_v2, %v8002_v45  ;;  %4679 = vmatprep.mubr.bf16.mxu0 %v4282_v11  ;;  %v4258_v7 = vmax.f32 %v4015_v56, 0.0 }
 0x594   : > { %v5783_v57 = vpop.f32.mrf.mxu0  ;;  %v5961_v59 = vpop.f32.mrf.mxu1  ;;  %4680 = vmatmul.mubr.bf16.gmra.mxu0 %v4281_v16 }
 0x595   : > { %v4019_v46 = vadd.f32 %v4018_v32, %v3906_v37  ;;  %v4260_v17 = vmax.f32 %v4017_v24, 0.0 }
 0x596   : > { %v5784_v61 = vpop.f32.mrf.mxu0  ;;  %v4152_v10 = vpop.f32.mrf.mxu1 }
 0x597   : > { %v4261_v38 = vmax.f32 %v4019_v46, 0.0  ;;  %v5785_v60 = vadd.f32 %v5784_v61, %v5783_v57  ;;  %v4284_v23 = vpack.c.bf16 %v4260_v17, %v4257_v49 }
 0x598   : > { %v5786_v12 = vpop.f32.mrf.mxu0  ;;  %v5962_v15 = vpop.f32.mrf.mxu1 }
 0x599   : > { %v4285_v36 = vpack.c.bf16 %v4261_v38, %v4258_v7  ;;  %v4056_v45 = vadd.f32 %v5785_v60, %v8042_v54 }
 0x59a   : > { %v5787_v29 = vpop.f32.mrf.mxu0  ;;  %v4155_v26 = vpop.f32.mrf.mxu1 }
 0x59b   : > { %v5788_v62 = vadd.f32 %v5787_v29, %v5786_v12  ;;  %4689 = vmatprep.mubr.bf16.mxu0 %v4285_v36  ;;  %v4153_v21 = vadd.f32 %v4152_v10, %v4056_v45 }
 0x59c   : > { %v5789_v31 = vpop.f32.mrf.mxu0  ;;  %4690 = vmatmul.mubr.bf16.gmra.mxu0 %v4284_v23  ;;  %v5965_v30 = vpop.f32.mrf.mxu1 }
 0x59d   : > { %v4059_v18 = vadd.f32 %v5788_v62, %v8042_v54  ;;  %v4217_v19 = vmax.f32 %v4153_v21, 0.0 }
 0x59e   : > { %v5790_v53 = vpop.f32.mrf.mxu0  ;;  %v4168_v20 = vpop.f32.mrf.mxu1 }
 0x59f   : > { %v4156_v41 = vadd.f32 %v4155_v26, %v4059_v18  ;;  %v5791_v63 = vadd.f32 %v5790_v53, %v5789_v31 }
 0x5a0   : > { %v5792_v4 = vpop.f32.mrf.mxu0  ;;  %v5966_v39 = vpop.f32.mrf.mxu1 }
 0x5a1   : > { %v4220_v5 = vmax.f32 %v4156_v41, 0.0  ;;  %v4064_v44 = vadd.f32 %v5791_v63, %v8042_v54 }
 0x5a2   : > { %v5793_v48 = vpop.f32.mrf.mxu0  ;;  %v4171_v47 = vpop.f32.mrf.mxu1 }
 0x5a3   : > { %v4265_v1 = vpack.c.bf16 %v4220_v5, %v4217_v19  ;;  %v5794_v55 = vadd.f32 %v5793_v48, %v5792_v4  ;;  %v4161_v33 = vadd.f32 %v5961_v59, %v4064_v44 }
 0x5a4   : > { %v5795_v28 = vpop.f32.mrf.mxu0  ;;  %v5969_v37 = vpop.f32.mrf.mxu1 }
 0x5a5   : > { %v4067_v34 = vadd.f32 %v5794_v55, %v8042_v54  ;;  %4733 = vmatmul.mubr.bf16.vlgmr.msra.gmra.mxu1 %v4265_v1  ;;  %v4223_v50 = vmax.f32 %v4161_v33, 0.0 }
 0x5a6   : > { %v5796_v58 = vpop.f32.mrf.mxu0  ;;  %4742 = vmatprep.mubr.bf16.mxu1 %v6965_v6  ;;  %v4184_v10 = vpop.f32.mrf.mxu1 }
 0x5a7   : > { %v4164_v22 = vadd.f32 %v5962_v15, %v4067_v34  ;;  %v5797_v42 = vadd.f32 %v5796_v58, %v5795_v28 }
 0x5a8   : > { %v5798_v35 = vpop.f32.mrf.mxu0  ;;  %v5970_v23 = vpop.f32.mrf.mxu1 }
 0x5a9   : > { %v4226_v25 = vmax.f32 %v4164_v22, 0.0  ;;  %v4072_v14 = vadd.f32 %v5797_v42, %v8042_v54 }
 0x5aa   : > { %v5799_v52 = vpop.f32.mrf.mxu0  ;;  %v4187_v26 = vpop.f32.mrf.mxu1 }
 0x5ab   : > { %v4268_v40 = vpack.c.bf16 %v4226_v25, %v4223_v50  ;;  %v5800_v8 = vadd.f32 %v5799_v52, %v5798_v35  ;;  %v4169_v43 = vadd.f32 %v4168_v20, %v4072_v14 }
 0x5ac   : > { %v5801_v9 = vpop.f32.mrf.mxu0 }
 0x5ad   : > { %v4075_v13 = vadd.f32 %v5800_v8, %v8042_v54  ;;  %4743 = vmatmul.mubr.bf16.gmra.mxu1 %v4268_v40  ;;  %v4229_v32 = vmax.f32 %v4169_v43, 0.0 }
 0x5ae   : > { %v5802_v11 = vpop.f32.mrf.mxu0  ;;  %4752 = vmatprep.mubr.bf16.mxu1 %v6965_v6 }
 0x5af   : > { %v4172_v51 = vadd.f32 %v4171_v47, %v4075_v13  ;;  %v5803_v16 = vadd.f32 %v5802_v11, %v5801_v9 }
 0x5b0   : > { %v5804_v2 = vpop.f32.mrf.mxu0 }
 0x5b1   : > { %v4232_v56 = vmax.f32 %v4172_v51, 0.0  ;;  %v4080_v24 = vadd.f32 %v5803_v16, %v8042_v54 }
 0x5b2   : > { %v5805_v27 = vpop.f32.mrf.mxu0 }
 0x5b3   : > { %v4271_v57 = vpack.c.bf16 %v4232_v56, %v4229_v32  ;;  %v5806_v59 = vadd.f32 %v5805_v27, %v5804_v2  ;;  %v4177_v17 = vadd.f32 %v5965_v30, %v4080_v24  ;;  %v5973_v30 = vpop.f32.mrf.mxu1 }
 0x5b4   : > { %v5807_v46 = vpop.f32.mrf.mxu0 }
 0x5b5   : > { %v4083_v61 = vadd.f32 %v5806_v59, %v8042_v54  ;;  %4753 = vmatmul.mubr.bf16.gmra.mxu1 %v4271_v57  ;;  %v4235_v12 = vmax.f32 %v4177_v17, 0.0  ;;  %v4200_v20 = vpop.f32.mrf.mxu1 }
 0x5b6   : > { %v5808_v7 = vpop.f32.mrf.mxu0  ;;  %4762 = vmatprep.mubr.bf16.mxu1 %v6965_v6 }
 0x5b7   : > { %v4180_v38 = vadd.f32 %v5966_v39, %v4083_v61  ;;  %v5809_v60 = vadd.f32 %v5808_v7, %v5807_v46  ;;  %v5974_v39 = vpop.f32.mrf.mxu1 }
 0x5b8   : > { %v5810_v49 = vpop.f32.mrf.mxu0 }
 0x5b9   : > { %v4238_v36 = vmax.f32 %v4180_v38, 0.0  ;;  %v4088_v45 = vadd.f32 %v5809_v60, %v8042_v54  ;;  %v4203_v47 = vpop.f32.mrf.mxu1 }
 0x5ba   : > { %v5811_v15 = vpop.f32.mrf.mxu0 }
 0x5bb   : > { %v4274_v29 = vpack.c.bf16 %v4238_v36, %v4235_v12  ;;  %v5812_v62 = vadd.f32 %v5811_v15, %v5810_v49  ;;  %v4185_v21 = vadd.f32 %v4184_v10, %v4088_v45 }
 0x5bc   : > { %v5813_v31 = vpop.f32.mrf.mxu0 }
 0x5bd   : > { %v4091_v18 = vadd.f32 %v5812_v62, %v8042_v54  ;;  %4763 = vmatmul.mubr.bf16.gmra.mxu1 %v4274_v29  ;;  %v4241_v19 = vmax.f32 %v4185_v21, 0.0 }
 0x5be   : > { %v5814_v53 = vpop.f32.mrf.mxu0  ;;  %4772 = vmatprep.mubr.bf16.mxu1 %v6965_v6 }
 0x5bf   : > { %v4188_v41 = vadd.f32 %v4187_v26, %v4091_v18  ;;  %v5815_v63 = vadd.f32 %v5814_v53, %v5813_v31 }
 0x5c0   : > { %v5816_v4 = vpop.f32.mrf.mxu0 }
 0x5c1   : > { %v4244_v5 = vmax.f32 %v4188_v41, 0.0  ;;  %v4096_v44 = vadd.f32 %v5815_v63, %v8042_v54 }
 0x5c2   : > { %v5817_v48 = vpop.f32.mrf.mxu0 }
 0x5c3   : > { %v4277_v1 = vpack.c.bf16 %v4244_v5, %v4241_v19  ;;  %v5818_v55 = vadd.f32 %v5817_v48, %v5816_v4  ;;  %v4193_v33 = vadd.f32 %v5969_v37, %v4096_v44 }
 0x5c4   : > { %v5819_v28 = vpop.f32.mrf.mxu0 }
 0x5c5   : > { %v4099_v34 = vadd.f32 %v5818_v55, %v8042_v54  ;;  %4773 = vmatmul.mubr.bf16.gmra.mxu1 %v4277_v1  ;;  %v4247_v50 = vmax.f32 %v4193_v33, 0.0 }
 0x5c6   : > { %v5820_v58 = vpop.f32.mrf.mxu0  ;;  %4782 = vmatprep.mubr.bf16.mxu1 %v6965_v6 }
 0x5c7   : > { %v4196_v22 = vadd.f32 %v5970_v23, %v4099_v34  ;;  %v5821_v42 = vadd.f32 %v5820_v58, %v5819_v28 }
 0x5c8   : > { %v5822_v35 = vpop.f32.mrf.mxu0 }
 0x5c9   : > { %v4250_v25 = vmax.f32 %v4196_v22, 0.0  ;;  %v4104_v14 = vadd.f32 %v5821_v42, %v8042_v54 }
 0x5ca   : > { %v5823_v52 = vpop.f32.mrf.mxu0 }
 0x5cb   : > { %v4280_v40 = vpack.c.bf16 %v4250_v25, %v4247_v50  ;;  %v5824_v8 = vadd.f32 %v5823_v52, %v5822_v35  ;;  %v4201_v43 = vadd.f32 %v4200_v20, %v4104_v14 }
 0x5cc   : > { %v5825_v9 = vpop.f32.mrf.mxu0 }
 0x5cd   : > { %v4107_v13 = vadd.f32 %v5824_v8, %v8042_v54  ;;  %4783 = vmatmul.mubr.bf16.gmra.mxu1 %v4280_v40  ;;  %v4253_v32 = vmax.f32 %v4201_v43, 0.0 }
 0x5ce   : > { %v5826_v11 = vpop.f32.mrf.mxu0  ;;  %4792 = vmatprep.mubr.bf16.mxu1 %v6965_v6 }
 0x5cf   : > { %v4204_v51 = vadd.f32 %v4203_v47, %v4107_v13  ;;  %v5827_v16 = vadd.f32 %v5826_v11, %v5825_v9 }
 0x5d0   : > { %v5828_v2 = vpop.f32.mrf.mxu0 }
 0x5d1   : > { %v4256_v56 = vmax.f32 %v4204_v51, 0.0  ;;  %v4112_v24 = vadd.f32 %v5827_v16, %v8042_v54 }
 0x5d2   : > { %v5829_v37 = vpop.f32.mrf.mxu0 }
 0x5d3   : > { %v4283_v27 = vpack.c.bf16 %v4256_v56, %v4253_v32  ;;  %v5830_v57 = vadd.f32 %v5829_v37, %v5828_v2  ;;  %v4209_v59 = vadd.f32 %v5973_v30, %v4112_v24 }
 0x5d5   : > { %v4115_v46 = vadd.f32 %v5830_v57, %v8042_v54  ;;  %4793 = vmatmul.mubr.bf16.gmra.mxu1 %v4283_v27  ;;  %v4259_v61 = vmax.f32 %v4209_v59, 0.0 }
 0x5d6   : > { %4802 = vmatprep.mubr.bf16.mxu1 %v6965_v6 }
 0x5d7   : > { %v4212_v17 = vadd.f32 %v5974_v39, %v4115_v46 }
 0x5d9   : > { %v4262_v10 = vmax.f32 %v4212_v17, 0.0 }
 0x5db   : > { %v4286_v7 = vpack.c.bf16 %v4262_v10, %v4259_v61 }
 0x5dd   : > { %4803 = vmatmul.mubr.bf16.gmra.mxu1 %v4286_v7 }
 0x624   : > { %v8067_v38 = vpop.f32.mrf.mxu0 }
 0x626   : > { %v8069_v60 = vpop.f32.mrf.mxu0 }
 0x628   : > { %v8071_v49 = vpop.f32.mrf.mxu0 }
 0x62a   : > { %v8073_v12 = vpop.f32.mrf.mxu0 }
 0x62c   : > { %v8075_v36 = vpop.f32.mrf.mxu0 }
 0x62e   : > { %v8088_v6 = vpop.f32.mrf.mxu0 }
 0x62f   : > { %6819 = shalt.err (!%p6816_p7)
}
 0x630   : > { %s6820_s29 = scalar_lea.hbm %s8084_s13, 2048  ;;  %s6824_s14 = scalar_lea.hbm %s8333_s16, 4096 }
 0x631   : > { %p6821_p8 = scmp.ne.s32.totalorder %s8084_s13, %s6820_s29  ;;  %p6825_p10 = scmp.lt.s32.totalorder %s8084_s13, %s8333_s16 }
 0x632   : > { %p6826_p9 = scmp.lt.s32.totalorder %s6824_s14, %s6820_s29 }
 0x633   : > { %p6822_p11 = pnand %p6821_p8, %p8397_p5 }
 0x634   : > { %p6827_p12 = por %p6826_p9, %p6825_p10 }
 0x635   : > { %p6823_p2 = pneg %p6822_p11 }
 0x637   : > { %p6828_p13 = pnand %p6827_p12, %p6823_p2 }
 0x639   : > { %6831 = shalt.err (!%p6828_p13)
}
 0x63a   : > { %s6967_s1 = smov 128   ;;  %s6968_s26 = smov 8   ;;  %v8125_v54 = vpop.f32.mrf.mxu0 }
 0x63b   : > { %6008 = dma.vmem_to_hbm [thread:$0]  (%p8397_p5), %s8086_s25, 2048, %s8084_s13, %s8092_s15, %s6967_s1, %s6967_s1, %s6968_s26  }
 0x63c   : > { %s8123_s9 = scalar_lea.hbm %s8334_s17, %s5525_s11  ;;  %s4966_s22 = sshll.u32 %s7722_s21, 4  ;;  %s4967_s22 = int_to_ptr.vmem [resolvable:$true] %s4966_s22 }
 0x63d   : > { %s6832_s29 = scalar_lea.vmem %s4967_s22, 2048  ;;  %s6969_s3 = smov [#allocation21]  }
 0x63e   : > { %p6833_p1 = scmp.ne.s32.totalorder %s4967_s22, %s6832_s29  ;;  %s6836_s18 = sshll.u32 %s6969_s3, 4  ;;  %s6837_s18 = int_to_ptr.vmem [resolvable:$false] %s6836_s18 }
 0x63f   : > { %s6838_s14 = scalar_lea.vmem %s6837_s18, 4096  ;;  %p6839_p0 = scmp.lt.s32.totalorder %s4967_s22, %s6837_s18 }
 0x640   : > { %p6834_p4 = pnand %p6833_p1, %p8397_p5  ;;  %p6840_p3 = scmp.lt.s32.totalorder %s6838_s14, %s6832_s29 }
 0x642   : > { %p6835_p6 = pneg %p6834_p4  ;;  %p6841_p7 = por %p6840_p3, %p6839_p0 }
 0x644   : > { %p6842_p8 = pnand %p6841_p7, %p6835_p6 }
 0x646   : > { %6845 = shalt.err (!%p6842_p8)
}
 0x647   : > { %s6846_s21 = scalar_lea.hbm %s8123_s9, 2048  ;;  %s6850_s13 = scalar_lea.hbm %s8334_s17, 4096 }
 0x648   : > { %p6847_p11 = scmp.ne.s32.totalorder %s8123_s9, %s6846_s21  ;;  %p6851_p9 = scmp.lt.s32.totalorder %s8123_s9, %s8334_s17 }
 0x649   : > { %p6852_p12 = scmp.lt.s32.totalorder %s6850_s13, %s6846_s21 }
 0x64a   : > { %p6848_p2 = pnand %p6847_p11, %p8397_p5 }
 0x64b   : > { %p6853_p13 = por %p6852_p12, %p6851_p9 }
 0x64c   : > { %p6849_p10 = pneg %p6848_p2 }
 0x64e   : > { %p6854_p1 = pnand %p6853_p13, %p6849_p10 }
 0x650   : > { %6857 = shalt.err (!%p6854_p1)
}
 0x651   : > { %6009 = dma.vmem_to_hbm [thread:$0]  (%p8397_p5), %s4967_s22, 2048, %s8123_s9, %s8092_s15, %s6967_s1, %s6967_s1, %s6968_s26   ;;  %v4637_v45 = vpop.f32.mrf.mxu0 }
 0x652   : > { %s8398_s29 = sld [smem:[#allocation43_spill]]  ;;  %s8194_s15 = scalar_lea.vmem [#allocation18], %s5207_s7 }
 0x653   : > { %v4641_v23 = vpop.f32.mrf.mxu0  ;;  %s5524_s7 = sshll.u32 %s7087_s19, 12  ;;  %s4934_s1 = sshll.u32 %s8194_s15, 4  ;;  %s8270_s1 = int_to_ptr.vmem [resolvable:$true] %s4934_s1 }
 0x654   : > { %s8399_s22 = sld [smem:[#allocation44_spill]]  ;;  %s4910_s18 = scalar_lea.sflag [#allocation5], %s7304_s30 }
 0x655   : > { %v4643_v15 = vpop.f32.mrf.mxu0  ;;  %s6858_s14 = scalar_lea.vmem %s8270_s1, 4096  ;;  %s6970_s19 = smov [#allocation18]  }
 0x656   : > { %p6859_p4 = scmp.ne.s32.totalorder %s8270_s1, %s6858_s14  ;;  %s6862_s21 = sshll.u32 %s6970_s19, 4  ;;  %s6863_s21 = int_to_ptr.vmem [resolvable:$false] %s6862_s21 }
 0x657   : > { %v4645_v29 = vpop.f32.mrf.mxu0  ;;  %s6864_s11 = scalar_lea.vmem %s6863_s21, 8192  ;;  %p6865_p3 = scmp.lt.s32.totalorder %s8270_s1, %s6863_s21 }
 0x658   : > { %v4335_v26 = vld [vmem:[%s8398_s29] sm:$0x3]  ;;  %p6860_p6 = pnand %p6859_p4, %p8397_p5  ;;  %p6866_p7 = scmp.lt.s32.totalorder %s6864_s11, %s6858_s14 }
 0x659   : > { %v4647_v62 = vpop.f32.mrf.mxu0  ;;  %v8160_v41 = vrot.slane %v4335_v26, %v7440_v3  ;;  %v8163_v63 = vrot.slane %v4335_v26, %v7435_v0 }
 0x65a   : > { %s8268_s3 = scalar_lea.hbm %s8399_s22, %s5524_s7  ;;  %p6861_p0 = pneg %p6860_p6 }
 0x65b   : > { %v8148_v31 = vpop.f32.mrf.mxu0  ;;  %v4622_v19 = vadd.f32 %v8067_v38, %v8160_v41  ;;  %v4624_v44 = vadd.f32 %v8069_v60, %v8163_v63  ;;  %v4626_v3 = vadd.f32 %v8071_v49, %v8160_v41  ;;  %v4628_v28 = vadd.f32 %v8073_v12, %v8163_v63  ;;  %p6867_p8 = por %p6866_p7, %p6865_p3 }
 0x65c   : > { %v4632_v58 = vadd.f32 %v8075_v36, %v8160_v41  ;;  %v4634_v35 = vadd.f32 %v8088_v6, %v8163_v63  ;;  %v4636_v39 = vadd.f32 %v8125_v54, %v8160_v41  ;;  %v4638_v8 = vadd.f32 %v4637_v45, %v8163_v63 }
 0x65d   : > { %v8150_v21 = vpop.f32.mrf.mxu0  ;;  %v4642_v47 = vadd.f32 %v4641_v23, %v8160_v41  ;;  %v4644_v2 = vadd.f32 %v4643_v15, %v8163_v63  ;;  %v4646_v27 = vadd.f32 %v4645_v29, %v8160_v41  ;;  %v4648_v17 = vadd.f32 %v4647_v62, %v8163_v63  ;;  %p6868_p11 = pnand %p6867_p8, %p6861_p0 }
 0x65e   : > { %v4652_v60 = vadd.f32 %v8148_v31, %v8160_v41  ;;  %v4654_v6 = vadd.f32 %v8150_v21, %v8163_v63 }
 0x65f   : > { %v8152_v18 = vpop.f32.mrf.mxu0 }
 0x660   : > { %v4656_v29 = vadd.f32 %v8152_v18, %v8160_v41 }
 0x661   : > { %v8157_v53 = vpop.f32.mrf.mxu0 }
 0x663   : > { %v8165_v4 = vpop.f32.mrf.mxu0 }
 0x665   : > { %v4734_v5 = vpop.f32.mrf.mxu1  ;;  %v8171_v48 = vpop.f32.mrf.mxu0 }
 0x666   : > { %v4735_v30 = vadd.f32 %v4734_v5, %v4622_v19  ;;  %v4658_v19 = vadd.f32 %v8157_v53, %v8163_v63 }
 0x667   : > { %v4736_v1 = vpop.f32.mrf.mxu1  ;;  %v8177_v34 = vpop.f32.mrf.mxu0 }
 0x668   : > { %6504 = vtanh.f32 %v4735_v30  ;;  %v4737_v55 = vadd.f32 %v4736_v1, %v4624_v44  ;;  %v4662_v1 = vadd.f32 %v8165_v4, %v8160_v41 }
 0x669   : > { %v4738_v0 = vpop.f32.mrf.mxu1  ;;  %v8183_v25 = vpop.f32.mrf.mxu0 }
 0x66a   : > { %6506 = vtanh.f32 %v4737_v55  ;;  %v4739_v33 = vadd.f32 %v4738_v0, %v4626_v3  ;;  %v4664_v0 = vadd.f32 %v8171_v48, %v8163_v63 }
 0x66b   : > { %v4740_v20 = vpop.f32.mrf.mxu1  ;;  %v8188_v43 = vpop.f32.mrf.mxu0 }
 0x66c   : > { %6508 = vtanh.f32 %v4739_v33  ;;  %v4741_v22 = vadd.f32 %v4740_v20, %v4628_v28 }
 0x66d   : > { %v4744_v42 = vpop.f32.mrf.mxu1  ;;  %v8197_v24 = vpop.f32.mrf.mxu0 }
 0x66e   : > { %6510 = vtanh.f32 %v4741_v22  ;;  %v4745_v50 = vadd.f32 %v4744_v42, %v4632_v58  ;;  %v4666_v58 = vadd.f32 %v8177_v34, %v8160_v41 }
 0x66f   : > { %v4746_v14 = vpop.f32.mrf.mxu1  ;;  %v8203_v7 = vpop.f32.mrf.mxu0 }
 0x670   : > { %6512 = vtanh.f32 %v4745_v50  ;;  %v4747_v52 = vadd.f32 %v4746_v14, %v4634_v35  ;;  %v4668_v35 = vadd.f32 %v8183_v25, %v8163_v63 }
 0x671   : > { %v4748_v40 = vpop.f32.mrf.mxu1  ;;  %v4677_v23 = vpop.f32.mrf.mxu0 }
 0x672   : > { %6514 = vtanh.f32 %v4747_v52  ;;  %v4749_v9 = vadd.f32 %v4748_v40, %v4636_v39  ;;  %v4672_v52 = vadd.f32 %v8188_v43, %v8160_v41 }
 0x673   : > { %v4750_v13 = vpop.f32.mrf.mxu1  ;;  %v4681_v44 = vpop.f32.mrf.mxu0 }
 0x674   : > { %6516 = vtanh.f32 %v4749_v9  ;;  %v4751_v11 = vadd.f32 %v4750_v13, %v4638_v8  ;;  %v4674_v9 = vadd.f32 %v8197_v24, %v8163_v63 }
 0x675   : > { %v6505_v51 = vpop.eup %6504  ;;  %v4754_v16 = vpop.f32.mrf.mxu1 }
 0x676   : > { %4845 = vst [vmem:[%s8194_s15] sm:$0xff] %v6505_v51  ;;  %6518 = vtanh.f32 %v4751_v11  ;;  %v4755_v32 = vadd.f32 %v4754_v16, %v4642_v47  ;;  %v4683_v33 = vpop.f32.mrf.mxu0  ;;  %v4676_v51 = vadd.f32 %v8203_v7, %v8160_v41 }
 0x677   : > { %v6507_v56 = vpop.eup %6506  ;;  %v4756_v37 = vpop.f32.mrf.mxu1 }
 0x678   : > { %4846 = vst [vmem:[%s8194_s15 + $0x8] sm:$0xff] %v6507_v56  ;;  %6520 = vtanh.f32 %v4755_v32  ;;  %v4757_v57 = vadd.f32 %v4756_v37, %v4644_v2  ;;  %v4685_v14 = vpop.f32.mrf.mxu0  ;;  %v4678_v32 = vadd.f32 %v4677_v23, %v8163_v63 }
 0x679   : > { %v6509_v59 = vpop.eup %6508  ;;  %v4758_v46 = vpop.f32.mrf.mxu1 }
 0x67a   : > { %4847 = vst [vmem:[%s8194_s15 + $0x10] sm:$0xff] %v6509_v59  ;;  %6522 = vtanh.f32 %v4757_v57  ;;  %v4759_v61 = vadd.f32 %v4758_v46, %v4646_v27  ;;  %v4687_v47 = vpop.f32.mrf.mxu0  ;;  %v4682_v57 = vadd.f32 %v4681_v44, %v8160_v41 }
 0x67b   : > { %v6511_v10 = vpop.eup %6510  ;;  %v4760_v38 = vpop.f32.mrf.mxu1 }
 0x67c   : > { %4848 = vst [vmem:[%s8194_s15 + $0x18] sm:$0xff] %v6511_v10  ;;  %6524 = vtanh.f32 %v4759_v61  ;;  %v4761_v49 = vadd.f32 %v4760_v38, %v4648_v17  ;;  %v4691_v37 = vpop.f32.mrf.mxu0  ;;  %v4684_v61 = vadd.f32 %v4683_v33, %v8163_v63 }
 0x67d   : > { %v6513_v12 = vpop.eup %6512  ;;  %v4764_v36 = vpop.f32.mrf.mxu1 }
 0x67e   : > { %4849 = vst [vmem:[%s8194_s15 + $0x20] sm:$0xff] %v6513_v12  ;;  %6526 = vtanh.f32 %v4761_v49  ;;  %v4765_v54 = vadd.f32 %v4764_v36, %v4652_v60  ;;  %v4693_v38 = vpop.f32.mrf.mxu0  ;;  %v4686_v49 = vadd.f32 %v4685_v14, %v8160_v41 }
 0x67f   : > { %v6515_v45 = vpop.eup %6514  ;;  %v4766_v15 = vpop.f32.mrf.mxu1 }
 0x680   : > { %4850 = vst [vmem:[%s8194_s15 + $0x28] sm:$0xff] %v6515_v45  ;;  %6528 = vtanh.f32 %v4765_v54  ;;  %v4767_v62 = vadd.f32 %v4766_v15, %v4654_v6  ;;  %v4688_v54 = vadd.f32 %v4687_v47, %v8163_v63  ;;  %v4695_v15 = vpop.f32.mrf.mxu0 }
 0x681   : > { %v6517_v31 = vpop.eup %6516  ;;  %v4768_v26 = vpop.f32.mrf.mxu1 }
 0x682   : > { %4851 = vst [vmem:[%s8194_s15 + $0x30] sm:$0xff] %v6517_v31  ;;  %6530 = vtanh.f32 %v4767_v62  ;;  %v4769_v21 = vadd.f32 %v4768_v26, %v4656_v29  ;;  %v4692_v62 = vadd.f32 %v4691_v37, %v8160_v41 }
 0x683   : > { %v6519_v5 = vpop.eup %6518  ;;  %v4770_v30 = vpop.f32.mrf.mxu1 }
 0x684   : > { %4852 = vst [vmem:[%s8194_s15 + $0x38] sm:$0xff] %v6519_v5  ;;  %6532 = vtanh.f32 %v4769_v21  ;;  %v4771_v18 = vadd.f32 %v4770_v30, %v4658_v19  ;;  %v4694_v21 = vadd.f32 %v4693_v38, %v8163_v63  ;;  %v4697_v30 = vpop.f32.mrf.mxu0 }
 0x685   : > { %v6521_v3 = vpop.eup %6520  ;;  %v4774_v55 = vpop.f32.mrf.mxu1 }
 0x686   : > { %4853 = vst [vmem:[%s8194_s15 + $0x40] sm:$0xff] %v6521_v3  ;;  %6534 = vtanh.f32 %v4771_v18  ;;  %v4775_v53 = vadd.f32 %v4774_v55, %v4662_v1  ;;  %v4696_v18 = vadd.f32 %v4695_v15, %v8160_v41 }
 0x687   : > { %v6523_v28 = vpop.eup %6522  ;;  %v4776_v20 = vpop.f32.mrf.mxu1 }
 0x688   : > { %4854 = vst [vmem:[%s8194_s15 + $0x48] sm:$0xff] %v6523_v28  ;;  %6536 = vtanh.f32 %v4775_v53  ;;  %v4777_v4 = vadd.f32 %v4776_v20, %v4664_v0  ;;  %v4698_v53 = vadd.f32 %v4697_v30, %v8163_v63 }
 0x689   : > { %v6525_v22 = vpop.eup %6524  ;;  %v4778_v42 = vpop.f32.mrf.mxu1 }
 0x68a   : > { %4855 = vst [vmem:[%s8194_s15 + $0x50] sm:$0xff] %v6525_v22  ;;  %6538 = vtanh.f32 %v4777_v4  ;;  %v4779_v48 = vadd.f32 %v4778_v42, %v4666_v58 }
 0x68b   : > { %v6527_v50 = vpop.eup %6526  ;;  %v4780_v39 = vpop.f32.mrf.mxu1 }
 0x68c   : > { %4856 = vst [vmem:[%s8194_s15 + $0x58] sm:$0xff] %v6527_v50  ;;  %6540 = vtanh.f32 %v4779_v48  ;;  %v4781_v34 = vadd.f32 %v4780_v39, %v4668_v35 }
 0x68d   : > { %v6529_v40 = vpop.eup %6528  ;;  %v4784_v8 = vpop.f32.mrf.mxu1 }
 0x68e   : > { %4857 = vst [vmem:[%s8194_s15 + $0x60] sm:$0xff] %v6529_v40  ;;  %6542 = vtanh.f32 %v4781_v34  ;;  %v4785_v25 = vadd.f32 %v4784_v8, %v4672_v52 }
 0x68f   : > { %v6531_v13 = vpop.eup %6530  ;;  %v4786_v11 = vpop.f32.mrf.mxu1 }
 0x690   : > { %4858 = vst [vmem:[%s8194_s15 + $0x68] sm:$0xff] %v6531_v13  ;;  %6544 = vtanh.f32 %v4785_v25  ;;  %v4787_v43 = vadd.f32 %v4786_v11, %v4674_v9 }
 0x691   : > { %v6533_v16 = vpop.eup %6532  ;;  %v4788_v2 = vpop.f32.mrf.mxu1 }
 0x692   : > { %4859 = vst [vmem:[%s8194_s15 + $0x70] sm:$0xff] %v6533_v16  ;;  %6546 = vtanh.f32 %v4787_v43  ;;  %v4789_v56 = vadd.f32 %v4788_v2, %v4676_v51 }
 0x693   : > { %v6535_v24 = vpop.eup %6534  ;;  %v4790_v27 = vpop.f32.mrf.mxu1 }
 0x694   : > { %4860 = vst [vmem:[%s8194_s15 + $0x78] sm:$0xff] %v6535_v24  ;;  %6548 = vtanh.f32 %v4789_v56  ;;  %v4791_v59 = vadd.f32 %v4790_v27, %v4678_v32 }
 0x695   : > { %v6537_v46 = vpop.eup %6536  ;;  %v4794_v17 = vpop.f32.mrf.mxu1 }
 0x696   : > { %4861 = vst [vmem:[%s8194_s15 + $0x80] sm:$0xff] %v6537_v46  ;;  %6550 = vtanh.f32 %v4791_v59  ;;  %v4795_v10 = vadd.f32 %v4794_v17, %v4682_v57 }
 0x697   : > { %v6539_v7 = vpop.eup %6538  ;;  %v4796_v60 = vpop.f32.mrf.mxu1 }
 0x698   : > { %4862 = vst [vmem:[%s8194_s15 + $0x88] sm:$0xff] %v6539_v7  ;;  %6552 = vtanh.f32 %v4795_v10  ;;  %v4797_v12 = vadd.f32 %v4796_v60, %v4684_v61 }
 0x699   : > { %v6541_v36 = vpop.eup %6540  ;;  %v4798_v6 = vpop.f32.mrf.mxu1 }
 0x69a   : > { %4863 = vst [vmem:[%s8194_s15 + $0x90] sm:$0xff] %v6541_v36  ;;  %6554 = vtanh.f32 %v4797_v12  ;;  %v4799_v45 = vadd.f32 %v4798_v6, %v4686_v49 }
 0x69b   : > { %v6543_v23 = vpop.eup %6542  ;;  %v4800_v29 = vpop.f32.mrf.mxu1 }
 0x69c   : > { %4864 = vst [vmem:[%s8194_s15 + $0x98] sm:$0xff] %v6543_v23  ;;  %6556 = vtanh.f32 %v4799_v45  ;;  %v4801_v31 = vadd.f32 %v4800_v29, %v4688_v54 }
 0x69d   : > { %v6545_v26 = vpop.eup %6544  ;;  %v4804_v19 = vpop.f32.mrf.mxu1 }
 0x69e   : > { %4865 = vst [vmem:[%s8194_s15 + $0xa0] sm:$0xff] %v6545_v26  ;;  %6558 = vtanh.f32 %v4801_v31  ;;  %v4805_v5 = vadd.f32 %v4804_v19, %v4692_v62 }
 0x69f   : > { %v6547_v44 = vpop.eup %6546  ;;  %v4806_v1 = vpop.f32.mrf.mxu1 }
 0x6a0   : > { %4866 = vst [vmem:[%s8194_s15 + $0xa8] sm:$0xff] %v6547_v44  ;;  %6560 = vtanh.f32 %v4805_v5  ;;  %v4807_v3 = vadd.f32 %v4806_v1, %v4694_v21 }
 0x6a1   : > { %v6549_v55 = vpop.eup %6548  ;;  %v4808_v0 = vpop.f32.mrf.mxu1 }
 0x6a2   : > { %4867 = vst [vmem:[%s8194_s15 + $0xb0] sm:$0xff] %v6549_v55  ;;  %6562 = vtanh.f32 %v4807_v3  ;;  %v4809_v28 = vadd.f32 %v4808_v0, %v4696_v18 }
 0x6a3   : > { %v6551_v33 = vpop.eup %6550  ;;  %v4810_v20 = vpop.f32.mrf.mxu1 }
 0x6a4   : > { %4868 = vst [vmem:[%s8194_s15 + $0xb8] sm:$0xff] %v6551_v33  ;;  %6564 = vtanh.f32 %v4809_v28  ;;  %v4811_v41 = vadd.f32 %v4810_v20, %v4698_v53 }
 0x6a5   : > { %v6553_v58 = vpop.eup %6552 }
 0x6a6   : > { %4869 = vst [vmem:[%s8194_s15 + $0xc0] sm:$0xff] %v6553_v58  ;;  %6566 = vtanh.f32 %v4811_v41 }
 0x6a7   : > { %v6555_v4 = vpop.eup %6554 }
 0x6a8   : > { %4870 = vst [vmem:[%s8194_s15 + $0xc8] sm:$0xff] %v6555_v4 }
 0x6a9   : > { %v6557_v63 = vpop.eup %6556 }
 0x6aa   : > { %4871 = vst [vmem:[%s8194_s15 + $0xd0] sm:$0xff] %v6557_v63 }
 0x6ab   : > { %v6559_v22 = vpop.eup %6558 }
 0x6ac   : > { %4872 = vst [vmem:[%s8194_s15 + $0xd8] sm:$0xff] %v6559_v22 }
 0x6ad   : > { %v6561_v42 = vpop.eup %6560 }
 0x6ae   : > { %4873 = vst [vmem:[%s8194_s15 + $0xe0] sm:$0xff] %v6561_v42 }
 0x6af   : > { %v6563_v35 = vpop.eup %6562 }
 0x6b0   : > { %4874 = vst [vmem:[%s8194_s15 + $0xe8] sm:$0xff] %v6563_v35 }
 0x6b1   : > { %v6565_v48 = vpop.eup %6564 }
 0x6b2   : > { %4875 = vst [vmem:[%s8194_s15 + $0xf0] sm:$0xff] %v6565_v48 }
 0x6b3   : > { %v6567_v50 = vpop.eup %6566 }
 0x6b4   : > { %4876 = vst [vmem:[%s8194_s15 + $0xf8] sm:$0xff] %v6567_v50 }
 0x6b5   : > { %6871 = shalt.err (!%p6868_p11)
}
 0x6b6   : > { %s6872_s25 = scalar_lea.hbm %s8268_s3, 4096  ;;  %s6876_s5 = scalar_lea.hbm %s8399_s22, 8192 }
 0x6b7   : > { %p6873_p2 = scmp.ne.s32.totalorder %s8268_s3, %s6872_s25  ;;  %p6877_p12 = scmp.lt.s32.totalorder %s8268_s3, %s8399_s22 }
 0x6b8   : > { %p6878_p13 = scmp.lt.s32.totalorder %s6876_s5, %s6872_s25 }
 0x6b9   : > { %p6874_p10 = pnand %p6873_p2, %p8397_p5 }
 0x6ba   : > { %p6879_p1 = por %p6878_p13, %p6877_p12 }
 0x6bb   : > { %p6875_p9 = pneg %p6874_p10 }
 0x6bd   : > { %p6880_p4 = pnand %p6879_p1, %p6875_p9 }
 0x6bf   : > { %6883 = shalt.err (!%p6880_p4)
}
 0x6c0   : > { %s6971_s29 = smov 256   ;;  %s6972_s15 = smov 16  }
 0x6c1   : > { %6007 = dma.vmem_to_hbm [thread:$0]  (%p8397_p5), %s8270_s1, 4096, %s8268_s3, %s4910_s18, %s6971_s29, %s6971_s29, %s6972_s15  }
 0x6c2 PF: > { %s8400_s7 = sld [smem:[#allocation33_spill]]  ;;  %s4981_s26 = sand.u32 1, %s6934_s27  }
 0x6c3   : > { %p8402_p0 = scmp.ge.s32.totalorder %s6946_s0, 2  ;;  %s4982_s9 = scalar_lea.sflag [#allocation5], %s4981_s26 }
 0x6c8   : > { %p8401_p6 = scmp.ne.s32.totalorder %s8400_s7, 0 }
 0x6ca   : > { %p6043_p3 = pnand %p8402_p0, %p8401_p6 }
 0x6cc   : > { %p6044_p7 = pneg %p6043_p3 }
 0x6ce   : > { %6925 = dma.done.wait (%p6044_p7), %s4982_s9, 4096  }
 0x6cf   : > { %6927 = vsyncadd (%p6044_p7), %s4982_s9, 4294963200  ;;  %s8403_s14 = sadd.s32 4294967294, %s6946_s0  }
 0x6d0   : > { %s4990_s19 = sand.u32 1, %s8403_s14  }
 0x6d1   : > { %s4991_s21 = scalar_lea.sflag [#allocation20], %s4990_s19 }
 0x6d2   : > { %6929 = dma.done.wait (%p6044_p7), %s4991_s21, 4096  }
 0x6d3   : > { %6931 = vsyncadd (%p6044_p7), %s4991_s21, 4294963200  ;;  %s8404_s0 = sld [smem:[#allocation31_spill]]  ;;  %s8407_s27 = smov %s6938_s28 }
 0x6d4   : > { %s8405_s8 = sld [smem:[#allocation30_spill]] }
 0x6d5   : > { %s8406_s29 = sld [smem:[#allocation32_spill]] }
 0x6d9   : > { %p41_p5 = scmp.ge.s32.totalorder %s8404_s0, 4  }
 0x6da   : > { %s8408_s28 = smov %s8405_s8 }
 0x6db   :  { %43 = sbr.rel (!%p41_p5) target bundleno = 31 (0x1f), region = 198 }
 0x6e0   :  { %5005 = vsyncpa [#allocation4], 1 }
 0x6e1   :  { %5007 = vsyncpa [#allocation4 + $0x1], 1 }
 0x6e2   :  { %5008 = vsyncpa [#allocation7], 1 }
 0x6e3   :  { %5010 = vsyncpa [#allocation7 + $0x1], 1 }
 0x6e4   :  { %5011 = vsyncpa [#allocation10], 1 }
 0x6e5   :  { %5012 = vsyncpa [#allocation13], 1 }
 0x6e6   :  { %5013 = vsyncpa [#allocation16], 1 }
 0x6e7   :  { %5014 = vsyncpa [#allocation5], 1 }
 0x6e8   :  { %5016 = vsyncpa [#allocation5 + $0x1], 1 }
 0x6e9   :  { %5017 = vsyncpa [#allocation20], 1 }
 0x6ea   :  { %5019 = vsyncpa [#allocation20 + $0x1], 1 }

</bundles_post_ra>
